<compile_context>
chip_gen: v7x
topology: tpu7x:2x2x1
jax: 0.10.0
libtpu: 0.0.40
codegen_flags: <defaults>
</compile_context>

<pallas_src>
import functools

import jax
import jax.numpy as jnp
from jax.experimental import pallas as pl
from jax.experimental.pallas import tpu as pltpu


def _direct_kernel(x_ref, o_ref, acc_ref, *, kh, kw, oh, ow, stride, dilation):
    """Direct kh*kw-tap sum. x_ref: (TN, H, W, TC) NHWC; o_ref/acc_ref: (TN, OH, OW, TC)."""
    acc_ref[...] = jnp.zeros_like(acc_ref)
    for i in range(kh):
        for j in range(kw):
            r0 = i * dilation
            c0 = j * dilation
            if stride == 1:
                patch = x_ref[:, pl.ds(r0, oh), pl.ds(c0, ow), :]
            else:
                # Strides land on H / W (slab / sublane) dims only; the
                # channel (lane) dim stays contiguous and full width.
                patch = x_ref[:, pl.ds(r0, oh, stride), pl.ds(c0, ow, stride), :]
            acc_ref[...] += patch.astype(jnp.float32)
    o_ref[...] = (acc_ref[...] * (1.0 / float(kh * kw))).astype(o_ref.dtype)


def _separable_kernel(x_ref, o_ref, acc_ref, hsum_ref, *,
                      kh, kw, oh, ow, stride, dilation):
    """Separable window sum: kw horizontal adds into a VMEM row-sum scratch,
    then kh vertical adds (kh+kw adds instead of kh*kw).  Each (possibly
    strided) slice touches a single non-lane dimension."""
    hrows = hsum_ref.shape[1]
    hsum_ref[...] = jnp.zeros_like(hsum_ref)
    for j in range(kw):
        c0 = j * dilation
        if stride == 1:
            cols = x_ref[:, pl.ds(0, hrows), pl.ds(c0, ow), :]
        else:
            cols = x_ref[:, pl.ds(0, hrows), pl.ds(c0, ow, stride), :]
        hsum_ref[...] += cols.astype(jnp.float32)
    acc_ref[...] = jnp.zeros_like(acc_ref)
    for i in range(kh):
        r0 = i * dilation
        if stride == 1:
            acc_ref[...] += hsum_ref[:, pl.ds(r0, oh), :, :]
        else:
            acc_ref[...] += hsum_ref[:, pl.ds(r0, oh, stride), :, :]
    o_ref[...] = (acc_ref[...] * (1.0 / float(kh * kw))).astype(o_ref.dtype)


def avg_feat_agg2d(x, kernel_size, output_size, dilation=1, stride=1):
    """Pallas equivalent of AvgFeatAGG2d.forward.

    x: (N, C, H, W)  ->  (N, C, output_size[0] * output_size[1])
    """
    N, C, H, W = x.shape
    kh, kw = kernel_size
    oh, ow = output_size

    # Input rows actually touched by the window sum.
    hrows = (oh - 1) * stride + (kh - 1) * dilation + 1

    # Separable sum pays off for larger windows; it is also the stride>1
    # path (keeps every strided slice on exactly one non-lane dim).
    separable = (stride > 1) or (kh > 1 and kw > 1 and kh * kw > kh + kw)

    # NCHW -> NHWC so channels sit on the lane axis.  Wrapper-level glue;
    # callers already holding NHWC activations can skip both transposes.
    x_nhwc = jnp.transpose(x, (0, 2, 3, 1))  # (N, H, W, C)

    elem = jnp.dtype(x.dtype).itemsize

    def block_bytes(tn, tc):
        b = 2 * (H * W + oh * ow) * elem * tn * tc        # double-buffered in/out blocks
        b += oh * ow * 4 * tn * tc                        # f32 accumulator scratch
        if separable:
            b += hrows * ow * 4 * tn * tc                 # f32 row-sum scratch
        return b

    TINY_BYTES = 2 * 1024 * 1024     # below this, one grid step beats pipelining
    VMEM_BUDGET = 24 * 1024 * 1024   # per-block budget (headroom on v7x's 64 MiB VMEM)

    if block_bytes(N, C) <= TINY_BYTES:
        # Tiny problem: one grid step for the whole thing (overhead-dominated regime).
        tn, tc = N, C
    else:
        # 1) Lane-dense channel tile (multiples of 128 when C has to be split;
        #    edge block is padded automatically).
        if block_bytes(1, C) <= VMEM_BUDGET:
            tc = C
        else:
            tc = 128
            while tc + 128 <= C and block_bytes(1, tc + 128) <= VMEM_BUDGET:
                tc += 128
        # 2) Grow the batch tile inside the remaining budget: fewer, larger
        #    grid steps -> less fixed per-step overhead, bigger DMAs.
        tn = max(1, min(N, VMEM_BUDGET // max(1, block_bytes(1, tc))))
        # 3) Keep >= 2 grid steps so v7x's second TensorCore gets work and the
        #    BlockSpec double buffer has something to overlap.
        if pl.cdiv(N, tn) * pl.cdiv(C, tc) < 2:
            if N >= 2:
                tn = pl.cdiv(N, 2)
            elif C >= 256:
                tc = max(128, ((C // 2) // 128) * 128)

    kern_kwargs = dict(kh=kh, kw=kw, oh=oh, ow=ow, stride=stride, dilation=dilation)
    scratch = [pltpu.VMEM((tn, oh, ow, tc), jnp.float32)]
    if separable:
        kern = functools.partial(_separable_kernel, **kern_kwargs)
        scratch.append(pltpu.VMEM((tn, hrows, ow, tc), jnp.float32))
    else:
        kern = functools.partial(_direct_kernel, **kern_kwargs)

    out_nhwc = pl.pallas_call(
        kern,
        out_shape=jax.ShapeDtypeStruct((N, oh, ow, C), x.dtype),
        grid=(pl.cdiv(N, tn), pl.cdiv(C, tc)),
        in_specs=[pl.BlockSpec((tn, H, W, tc), lambda n, c: (n, 0, 0, c))],
        out_specs=pl.BlockSpec((tn, oh, ow, tc), lambda n, c: (n, 0, 0, c)),
        scratch_shapes=scratch,
        compiler_params=pltpu.CompilerParams(
            dimension_semantics=("parallel", "parallel"),
            vmem_limit_bytes=48 * 1024 * 1024,
        ),
    )(x_nhwc)

    # Back to the module's (N, C, OH*OW) layout; row-major spatial flatten
    # matches torch.Unfold's column ordering.
    return jnp.transpose(out_nhwc.reshape(N, oh * ow, C), (0, 2, 1))


def _reference(x, kernel_size, output_size, dilation=1, stride=1):
    """Pure-JAX reference mirroring Unfold -> reshape -> mean(dim=2)."""
    N, C, H, W = x.shape
    kh, kw = kernel_size
    oh, ow = output_size
    taps = []
    for i in range(kh):
        for j in range(kw):
            r0 = i * dilation
            c0 = j * dilation
            taps.append(
                x[:, :, r0: r0 + (oh - 1) * stride + 1: stride,
                        c0: c0 + (ow - 1) * stride + 1: stride])
    stacked = jnp.stack(taps, axis=2)          # (N, C, kh*kw, oh, ow)
    return jnp.mean(stacked, axis=2).reshape(N, C, oh * ow)


def _out_hw(H, W, kh, kw, dilation, stride):
    oh = (H - dilation * (kh - 1) - 1) // stride + 1
    ow = (W - dilation * (kw - 1) - 1) // stride + 1
    return oh, ow


if __name__ == "__main__":
    key = jax.random.PRNGKey(0)
    N, C, H, W = 2, 4, 16, 16
    x = jax.random.normal(key, (N, C, H, W), dtype=jnp.float32)

    # Config 1: typical DFR use (3x3 window, stride 1) -> separable path.
    ks, dil, st = (3, 3), 1, 1
    osz = _out_hw(H, W, ks[0], ks[1], dil, st)        # (14, 14) -> L = 196
    out = jax.block_until_ready(avg_feat_agg2d(x, ks, osz, dilation=dil, stride=st))
    ref = _reference(x, ks, osz, dilation=dil, stride=st)
    assert out.shape == (N, C, osz[0] * osz[1]), out.shape
    assert jnp.allclose(out, ref, atol=1e-5, rtol=1e-5), "mismatch (3x3 separable)"

    # Config 2: small window -> direct-accumulation path.
    ks2, dil2, st2 = (2, 2), 1, 1
    osz2 = _out_hw(H, W, ks2[0], ks2[1], dil2, st2)   # (15, 15)
    out2 = jax.block_until_ready(avg_feat_agg2d(x, ks2, osz2, dilation=dil2, stride=st2))
    ref2 = _reference(x, ks2, osz2, dilation=dil2, stride=st2)
    assert out2.shape == (N, C, osz2[0] * osz2[1]), out2.shape
    assert jnp.allclose(out2, ref2, atol=1e-5, rtol=1e-5), "mismatch (2x2 direct)"

    print("KERNEL_OK")
</pallas_src>

<mosaic_0001>
module attributes {stable_mosaic.version = 11 : i64} {
  func.func @_separable_kernel(%arg0: i32, %arg1: i32, %arg2: memref<2x16x16x4xf32, #tpu.memory_space<vmem>>, %arg3: memref<2x14x14x4xf32, #tpu.memory_space<vmem>>, %arg4: memref<2x14x14x4xf32, #tpu.memory_space<vmem>>, %arg5: memref<2x16x14x4xf32, #tpu.memory_space<vmem>>) attributes {dimension_semantics = [#tpu.dimension_semantics<parallel>, #tpu.dimension_semantics<parallel>], iteration_bounds = array<i64: 1, 1>, scalar_prefetch = 0 : i64, scratch_operands = 2 : i64, tpu.core_type = #tpu.core_type<tc>, window_params = [{transform_indices = @transform_0, window_bounds = array<i64: 2, 16, 16, 4>}, {transform_indices = @transform_1, window_bounds = array<i64: 2, 14, 14, 4>}]} {
    %cst = arith.constant 0.000000e+00 : f32
    %0 = vector.broadcast %cst : f32 to vector<2x16x14x4xf32>
    %c0 = arith.constant 0 : index
    %c0_0 = arith.constant 0 : index
    %c0_1 = arith.constant 0 : index
    %c0_2 = arith.constant 0 : index
    %1 = vector.load %arg5[%c0, %c0_0, %c0_1, %c0_2] : memref<2x16x14x4xf32, #tpu.memory_space<vmem>>, vector<2x16x14x4xf32>
    tpu.vector_store %arg5[%c0, %c0_0, %c0_1, %c0_2], %0 {strides = array<i32>} : memref<2x16x14x4xf32, #tpu.memory_space<vmem>>, vector<2x16x14x4xf32>,
    %c0_3 = arith.constant 0 : index
    %c0_4 = arith.constant 0 : index
    %c0_5 = arith.constant 0 : index
    %c0_6 = arith.constant 0 : index
    %2 = vector.load %arg2[%c0_3, %c0_4, %c0_5, %c0_6] : memref<2x16x16x4xf32, #tpu.memory_space<vmem>>, vector<2x16x14x4xf32>
    %c0_7 = arith.constant 0 : index
    %c0_8 = arith.constant 0 : index
    %c0_9 = arith.constant 0 : index
    %c0_10 = arith.constant 0 : index
    %3 = vector.load %arg5[%c0_7, %c0_8, %c0_9, %c0_10] : memref<2x16x14x4xf32, #tpu.memory_space<vmem>>, vector<2x16x14x4xf32>
    %4 = arith.addf %3, %2 : vector<2x16x14x4xf32>
    %c0_11 = arith.constant 0 : index
    %c0_12 = arith.constant 0 : index
    %c0_13 = arith.constant 0 : index
    %c0_14 = arith.constant 0 : index
    %5 = vector.load %arg5[%c0_11, %c0_12, %c0_13, %c0_14] : memref<2x16x14x4xf32, #tpu.memory_space<vmem>>, vector<2x16x14x4xf32>
    tpu.vector_store %arg5[%c0_11, %c0_12, %c0_13, %c0_14], %4 {strides = array<i32>} : memref<2x16x14x4xf32, #tpu.memory_space<vmem>>, vector<2x16x14x4xf32>,
    %c0_15 = arith.constant 0 : index
    %c0_16 = arith.constant 0 : index
    %c1 = arith.constant 1 : index
    %c0_17 = arith.constant 0 : index
    %6 = vector.load %arg2[%c0_15, %c0_16, %c1, %c0_17] : memref<2x16x16x4xf32, #tpu.memory_space<vmem>>, vector<2x16x14x4xf32>
    %c0_18 = arith.constant 0 : index
    %c0_19 = arith.constant 0 : index
    %c0_20 = arith.constant 0 : index
    %c0_21 = arith.constant 0 : index
    %7 = vector.load %arg5[%c0_18, %c0_19, %c0_20, %c0_21] : memref<2x16x14x4xf32, #tpu.memory_space<vmem>>, vector<2x16x14x4xf32>
    %8 = arith.addf %7, %6 : vector<2x16x14x4xf32>
    %c0_22 = arith.constant 0 : index
    %c0_23 = arith.constant 0 : index
    %c0_24 = arith.constant 0 : index
    %c0_25 = arith.constant 0 : index
    %9 = vector.load %arg5[%c0_22, %c0_23, %c0_24, %c0_25] : memref<2x16x14x4xf32, #tpu.memory_space<vmem>>, vector<2x16x14x4xf32>
    tpu.vector_store %arg5[%c0_22, %c0_23, %c0_24, %c0_25], %8 {strides = array<i32>} : memref<2x16x14x4xf32, #tpu.memory_space<vmem>>, vector<2x16x14x4xf32>,
    %c0_26 = arith.constant 0 : index
    %c0_27 = arith.constant 0 : index
    %c2 = arith.constant 2 : index
    %c0_28 = arith.constant 0 : index
    %10 = vector.load %arg2[%c0_26, %c0_27, %c2, %c0_28] : memref<2x16x16x4xf32, #tpu.memory_space<vmem>>, vector<2x16x14x4xf32>
    %c0_29 = arith.constant 0 : index
    %c0_30 = arith.constant 0 : index
    %c0_31 = arith.constant 0 : index
    %c0_32 = arith.constant 0 : index
    %11 = vector.load %arg5[%c0_29, %c0_30, %c0_31, %c0_32] : memref<2x16x14x4xf32, #tpu.memory_space<vmem>>, vector<2x16x14x4xf32>
    %12 = arith.addf %11, %10 : vector<2x16x14x4xf32>
    %c0_33 = arith.constant 0 : index
    %c0_34 = arith.constant 0 : index
    %c0_35 = arith.constant 0 : index
    %c0_36 = arith.constant 0 : index
    %13 = vector.load %arg5[%c0_33, %c0_34, %c0_35, %c0_36] : memref<2x16x14x4xf32, #tpu.memory_space<vmem>>, vector<2x16x14x4xf32>
    tpu.vector_store %arg5[%c0_33, %c0_34, %c0_35, %c0_36], %12 {strides = array<i32>} : memref<2x16x14x4xf32, #tpu.memory_space<vmem>>, vector<2x16x14x4xf32>,
    %cst_37 = arith.constant 0.000000e+00 : f32
    %14 = vector.broadcast %cst_37 : f32 to vector<2x14x14x4xf32>
    %c0_38 = arith.constant 0 : index
    %c0_39 = arith.constant 0 : index
    %c0_40 = arith.constant 0 : index
    %c0_41 = arith.constant 0 : index
    %15 = vector.load %arg4[%c0_38, %c0_39, %c0_40, %c0_41] : memref<2x14x14x4xf32, #tpu.memory_space<vmem>>, vector<2x14x14x4xf32>
    tpu.vector_store %arg4[%c0_38, %c0_39, %c0_40, %c0_41], %14 {strides = array<i32>} : memref<2x14x14x4xf32, #tpu.memory_space<vmem>>, vector<2x14x14x4xf32>,
    %c0_42 = arith.constant 0 : index
    %c0_43 = arith.constant 0 : index
    %c0_44 = arith.constant 0 : index
    %c0_45 = arith.constant 0 : index
    %16 = vector.load %arg4[%c0_42, %c0_43, %c0_44, %c0_45] : memref<2x14x14x4xf32, #tpu.memory_space<vmem>>, vector<2x14x14x4xf32>
    %c0_46 = arith.constant 0 : index
    %c0_47 = arith.constant 0 : index
    %c0_48 = arith.constant 0 : index
    %c0_49 = arith.constant 0 : index
    %17 = vector.load %arg5[%c0_46, %c0_47, %c0_48, %c0_49] : memref<2x16x14x4xf32, #tpu.memory_space<vmem>>, vector<2x14x14x4xf32>
    %18 = arith.addf %16, %17 : vector<2x14x14x4xf32>
    %c0_50 = arith.constant 0 : index
    %c0_51 = arith.constant 0 : index
    %c0_52 = arith.constant 0 : index
    %c0_53 = arith.constant 0 : index
    %19 = vector.load %arg4[%c0_50, %c0_51, %c0_52, %c0_53] : memref<2x14x14x4xf32, #tpu.memory_space<vmem>>, vector<2x14x14x4xf32>
    tpu.vector_store %arg4[%c0_50, %c0_51, %c0_52, %c0_53], %18 {strides = array<i32>} : memref<2x14x14x4xf32, #tpu.memory_space<vmem>>, vector<2x14x14x4xf32>,
    %c0_54 = arith.constant 0 : index
    %c0_55 = arith.constant 0 : index
    %c0_56 = arith.constant 0 : index
    %c0_57 = arith.constant 0 : index
    %20 = vector.load %arg4[%c0_54, %c0_55, %c0_56, %c0_57] : memref<2x14x14x4xf32, #tpu.memory_space<vmem>>, vector<2x14x14x4xf32>
    %c0_58 = arith.constant 0 : index
    %c1_59 = arith.constant 1 : index
    %c0_60 = arith.constant 0 : index
    %c0_61 = arith.constant 0 : index
    %21 = vector.load %arg5[%c0_58, %c1_59, %c0_60, %c0_61] : memref<2x16x14x4xf32, #tpu.memory_space<vmem>>, vector<2x14x14x4xf32>
    %22 = arith.addf %20, %21 : vector<2x14x14x4xf32>
    %c0_62 = arith.constant 0 : index
    %c0_63 = arith.constant 0 : index
    %c0_64 = arith.constant 0 : index
    %c0_65 = arith.constant 0 : index
    %23 = vector.load %arg4[%c0_62, %c0_63, %c0_64, %c0_65] : memref<2x14x14x4xf32, #tpu.memory_space<vmem>>, vector<2x14x14x4xf32>
    tpu.vector_store %arg4[%c0_62, %c0_63, %c0_64, %c0_65], %22 {strides = array<i32>} : memref<2x14x14x4xf32, #tpu.memory_space<vmem>>, vector<2x14x14x4xf32>,
    %c0_66 = arith.constant 0 : index
    %c0_67 = arith.constant 0 : index
    %c0_68 = arith.constant 0 : index
    %c0_69 = arith.constant 0 : index
    %24 = vector.load %arg4[%c0_66, %c0_67, %c0_68, %c0_69] : memref<2x14x14x4xf32, #tpu.memory_space<vmem>>, vector<2x14x14x4xf32>
    %c0_70 = arith.constant 0 : index
    %c2_71 = arith.constant 2 : index
    %c0_72 = arith.constant 0 : index
    %c0_73 = arith.constant 0 : index
    %25 = vector.load %arg5[%c0_70, %c2_71, %c0_72, %c0_73] : memref<2x16x14x4xf32, #tpu.memory_space<vmem>>, vector<2x14x14x4xf32>
    %26 = arith.addf %24, %25 : vector<2x14x14x4xf32>
    %c0_74 = arith.constant 0 : index
    %c0_75 = arith.constant 0 : index
    %c0_76 = arith.constant 0 : index
    %c0_77 = arith.constant 0 : index
    %27 = vector.load %arg4[%c0_74, %c0_75, %c0_76, %c0_77] : memref<2x14x14x4xf32, #tpu.memory_space<vmem>>, vector<2x14x14x4xf32>
    tpu.vector_store %arg4[%c0_74, %c0_75, %c0_76, %c0_77], %26 {strides = array<i32>} : memref<2x14x14x4xf32, #tpu.memory_space<vmem>>, vector<2x14x14x4xf32>,
    %c0_78 = arith.constant 0 : index
    %c0_79 = arith.constant 0 : index
    %c0_80 = arith.constant 0 : index
    %c0_81 = arith.constant 0 : index
    %28 = vector.load %arg4[%c0_78, %c0_79, %c0_80, %c0_81] : memref<2x14x14x4xf32, #tpu.memory_space<vmem>>, vector<2x14x14x4xf32>
    %cst_82 = arith.constant 0.111111112 : f32
    %29 = vector.broadcast %cst_82 : f32 to vector<2x14x14x4xf32>
    %30 = arith.mulf %28, %29 : vector<2x14x14x4xf32>
    %c0_83 = arith.constant 0 : index
    %c0_84 = arith.constant 0 : index
    %c0_85 = arith.constant 0 : index
    %c0_86 = arith.constant 0 : index
    %31 = vector.load %arg3[%c0_83, %c0_84, %c0_85, %c0_86] : memref<2x14x14x4xf32, #tpu.memory_space<vmem>>, vector<2x14x14x4xf32>
    tpu.vector_store %arg3[%c0_83, %c0_84, %c0_85, %c0_86], %30 {strides = array<i32>} : memref<2x14x14x4xf32, #tpu.memory_space<vmem>>, vector<2x14x14x4xf32>,
    return
  }
  func.func @transform_0(%arg0: i32, %arg1: i32) -> (i32, i32, i32, i32) {
    %c0_i32 = arith.constant 0 : i32
    %c0_i32_0 = arith.constant 0 : i32
    %c0_i32_1 = arith.constant 0 : i32
    return %arg0, %c0_i32, %c0_i32_0, %arg1 : i32, i32, i32, i32
  }
  func.func @transform_1(%arg0: i32, %arg1: i32) -> (i32, i32, i32, i32) {
    %c0_i32 = arith.constant 0 : i32
    %c0_i32_0 = arith.constant 0 : i32
    %c0_i32_1 = arith.constant 0 : i32
    return %arg0, %c0_i32, %c0_i32_0, %arg1 : i32, i32, i32, i32
  }
}

</mosaic_0001>

<bundles_post_ra>
// kernel: tpu_custom_call.1
= control target key start
LH: loop header
LB: loop body
LE: loop exit
PB: predicated region body
PF: predicated region fallthrough
CT: control target
= control target key end

     0   :  { %vm8_vm0 = vcmask 31744   ;;  %vm10_vm1 = vcmask 29696   ;;  %v1745_v0 = vmov 0.0   ;;  %s3292_s0 = inlined_call_operand.vmem [shape: f32[2,16,16,4], index: 0, kind: input, shape index: {}]   ;;  %s3293_s1 = inlined_call_operand.vmem [shape: f32[2,14,14,4], index: 1, kind: output, shape index: {}]  }
   0x1   :  { %9 = vst.msk [vmem:[#allocation3] sm:$0xff] %vm8_vm0, %v1745_v0  ;;  %12 = vst.msk [vmem:[#allocation3 + $0x10] sm:$0xff] %vm8_vm0, %v1745_v0  ;;  %v74_v1 = vld [vmem:[%s3292_s0] sm:$0xff]  ;;  %v75_v2 = vld [vmem:[%s3292_s0 + $0x8] sm:$0x3f] }
   0x2   :  { %14 = vst.msk [vmem:[#allocation3 + $0x20] sm:$0xff] %vm8_vm0, %v1745_v0  ;;  %16 = vst.msk [vmem:[#allocation3 + $0x30] sm:$0xff] %vm8_vm0, %v1745_v0  ;;  %v76_v3 = vld [vmem:[%s3292_s0 + $0x10] sm:$0xff]  ;;  %v77_v4 = vld [vmem:[%s3292_s0 + $0x18] sm:$0x3f] }
   0x3   :  { %18 = vst.msk [vmem:[#allocation3 + $0x40] sm:$0xff] %vm8_vm0, %v1745_v0  ;;  %20 = vst.msk [vmem:[#allocation3 + $0x50] sm:$0xff] %vm8_vm0, %v1745_v0  ;;  %v78_v5 = vld [vmem:[%s3292_s0 + $0x20] sm:$0xff]  ;;  %v79_v6 = vld [vmem:[%s3292_s0 + $0x28] sm:$0x3f] }
   0x4   :  { %22 = vst.msk [vmem:[#allocation3 + $0x60] sm:$0xff] %vm8_vm0, %v1745_v0  ;;  %24 = vst.msk [vmem:[#allocation3 + $0x70] sm:$0xff] %vm8_vm0, %v1745_v0  ;;  %v80_v7 = vld [vmem:[%s3292_s0 + $0x30] sm:$0xff]  ;;  %v81_v8 = vld [vmem:[%s3292_s0 + $0x38] sm:$0x3f] }
   0x5   :  { %26 = vst.msk [vmem:[#allocation3 + $0x80] sm:$0xff] %vm8_vm0, %v1745_v0  ;;  %28 = vst.msk [vmem:[#allocation3 + $0x90] sm:$0xff] %vm8_vm0, %v1745_v0  ;;  %v82_v9 = vld [vmem:[%s3292_s0 + $0x40] sm:$0xff]  ;;  %v83_v10 = vld [vmem:[%s3292_s0 + $0x48] sm:$0x3f] }
   0x6   :  { %30 = vst.msk [vmem:[#allocation3 + $0xa0] sm:$0xff] %vm8_vm0, %v1745_v0  ;;  %32 = vst.msk [vmem:[#allocation3 + $0xb0] sm:$0xff] %vm8_vm0, %v1745_v0  ;;  %v84_v11 = vld [vmem:[%s3292_s0 + $0x50] sm:$0xff]  ;;  %v85_v12 = vld [vmem:[%s3292_s0 + $0x58] sm:$0x3f] }
   0x7   :  { %34 = vst.msk [vmem:[#allocation3 + $0xc0] sm:$0xff] %vm8_vm0, %v1745_v0  ;;  %36 = vst.msk [vmem:[#allocation3 + $0xd0] sm:$0xff] %vm8_vm0, %v1745_v0  ;;  %v86_v16 = vld [vmem:[%s3292_s0 + $0x60] sm:$0xff]  ;;  %v87_v17 = vld [vmem:[%s3292_s0 + $0x68] sm:$0x3f] }
   0x8   :  { %38 = vst.msk [vmem:[#allocation3 + $0xe0] sm:$0xff] %vm8_vm0, %v1745_v0  ;;  %40 = vst.msk [vmem:[#allocation3 + $0xf0] sm:$0xff] %vm8_vm0, %v1745_v0  ;;  %v138_v13 = vld [vmem:[#allocation3] sm:$0xff]  ;;  %v140_v15 = vld [vmem:[#allocation3 + $0x10] sm:$0xff] }
   0x9   :  { %42 = vst.msk [vmem:[#allocation3 + $0x100] sm:$0xff] %vm8_vm0, %v1745_v0  ;;  %44 = vst.msk [vmem:[#allocation3 + $0x110] sm:$0xff] %vm8_vm0, %v1745_v0  ;;  %v88_v18 = vld [vmem:[%s3292_s0 + $0x70] sm:$0xff]  ;;  %v202_v19 = vadd.f32 %v138_v13, %v74_v1  ;;  %v204_v21 = vadd.f32 %v140_v15, %v76_v3  ;;  %v142_v23 = vld [vmem:[#allocation3 + $0x20] sm:$0xff] }
   0xa   :  { %46 = vst.msk [vmem:[#allocation3 + $0x120] sm:$0xff] %vm8_vm0, %v1745_v0  ;;  %48 = vst.msk [vmem:[#allocation3 + $0x130] sm:$0xff] %vm8_vm0, %v1745_v0  ;;  %v89_v25 = vld [vmem:[%s3292_s0 + $0x78] sm:$0x3f]  ;;  %v90_v26 = vld [vmem:[%s3292_s0 + $0x80] sm:$0xff]  ;;  %v206_v29 = vadd.f32 %v142_v23, %v78_v5 }
   0xb   :  { %50 = vst.msk [vmem:[#allocation3 + $0x140] sm:$0xff] %vm8_vm0, %v1745_v0  ;;  %52 = vst.msk [vmem:[#allocation3 + $0x150] sm:$0xff] %vm8_vm0, %v1745_v0  ;;  %v91_v27 = vld [vmem:[%s3292_s0 + $0x88] sm:$0x3f]  ;;  %v144_v31 = vld [vmem:[#allocation3 + $0x30] sm:$0xff] }
   0xc   :  { %54 = vst.msk [vmem:[#allocation3 + $0x160] sm:$0xff] %vm8_vm0, %v1745_v0  ;;  %56 = vst.msk [vmem:[#allocation3 + $0x170] sm:$0xff] %vm8_vm0, %v1745_v0  ;;  %v146_v33 = vld [vmem:[#allocation3 + $0x40] sm:$0xff]  ;;  %v92_v34 = vld [vmem:[%s3292_s0 + $0x90] sm:$0xff]  ;;  %v208_v37 = vadd.f32 %v144_v31, %v80_v7 }
   0xd   :  { %58 = vst.msk [vmem:[#allocation3 + $0x180] sm:$0xff] %vm8_vm0, %v1745_v0  ;;  %60 = vst.msk [vmem:[#allocation3 + $0x190] sm:$0xff] %vm8_vm0, %v1745_v0  ;;  %v93_v35 = vld [vmem:[%s3292_s0 + $0x98] sm:$0x3f]  ;;  %v94_v36 = vld [vmem:[%s3292_s0 + $0xa0] sm:$0xff]  ;;  %v210_v39 = vadd.f32 %v146_v33, %v82_v9 }
   0xe   :  { %62 = vst.msk [vmem:[#allocation3 + $0x1a0] sm:$0xff] %vm8_vm0, %v1745_v0  ;;  %64 = vst.msk [vmem:[#allocation3 + $0x1b0] sm:$0xff] %vm8_vm0, %v1745_v0  ;;  %v148_v41 = vld [vmem:[#allocation3 + $0x50] sm:$0xff]  ;;  %v150_v46 = vld [vmem:[#allocation3 + $0x60] sm:$0xff] }
   0xf   :  { %66 = vst.msk [vmem:[#allocation3 + $0x1c0] sm:$0xff] %vm8_vm0, %v1745_v0  ;;  %68 = vst.msk [vmem:[#allocation3 + $0x1d0] sm:$0xff] %vm8_vm0, %v1745_v0  ;;  %v212_v44 = vadd.f32 %v148_v41, %v84_v11  ;;  %v152_v48 = vld [vmem:[#allocation3 + $0x70] sm:$0xff]  ;;  %v214_v49 = vadd.f32 %v150_v46, %v86_v16  ;;  %v154_v53 = vld [vmem:[#allocation3 + $0x80] sm:$0xff] }
  0x10   :  { %70 = vst.msk [vmem:[#allocation3 + $0x1e0] sm:$0xff] %vm8_vm0, %v1745_v0  ;;  %72 = vst.msk [vmem:[#allocation3 + $0x1f0] sm:$0xff] %vm8_vm0, %v1745_v0  ;;  %v216_v51 = vadd.f32 %v152_v48, %v88_v18  ;;  %v218_v56 = vadd.f32 %v154_v53, %v90_v26  ;;  %v156_v58 = vld [vmem:[#allocation3 + $0x90] sm:$0xff]  ;;  %v158_v60 = vld [vmem:[#allocation3 + $0xa0] sm:$0xff] }
  0x11   :  { %842 = vst.msk [vmem:[#allocation2] sm:$0xff] %vm8_vm0, %v1745_v0  ;;  %844 = vst.msk [vmem:[#allocation2 + $0x10] sm:$0xff] %vm8_vm0, %v1745_v0  ;;  %v220_v61 = vadd.f32 %v156_v58, %v92_v34  ;;  %v222_v63 = vadd.f32 %v158_v60, %v94_v36  ;;  %v97_v5 = vld [vmem:[%s3292_s0 + $0xb8] sm:$0x3f]  ;;  %v98_v9 = vld [vmem:[%s3292_s0 + $0xc0] sm:$0xff] }
  0x12   :  { %846 = vst.msk [vmem:[#allocation2 + $0x20] sm:$0xff] %vm8_vm0, %v1745_v0  ;;  %848 = vst.msk [vmem:[#allocation2 + $0x30] sm:$0xff] %vm8_vm0, %v1745_v0  ;;  %v99_v11 = vld [vmem:[%s3292_s0 + $0xc8] sm:$0x3f]  ;;  %v164_v15 = vld [vmem:[#allocation3 + $0xd0] sm:$0xff] }
  0x13   :  { %850 = vst.msk [vmem:[#allocation2 + $0x40] sm:$0xff] %vm8_vm0, %v1745_v0  ;;  %852 = vst.msk [vmem:[#allocation2 + $0x50] sm:$0xff] %vm8_vm0, %v1745_v0  ;;  %v101_v18 = vld [vmem:[%s3292_s0 + $0xd8] sm:$0x3f]  ;;  %v107_v23 = vld [vmem:[%s3292_s0 + $0x108] sm:$0x3f] }
  0x14   :  { %854 = vst.msk [vmem:[#allocation2 + $0x60] sm:$0xff] %vm8_vm0, %v1745_v0  ;;  %856 = vst.msk [vmem:[#allocation2 + $0x70] sm:$0xff] %vm8_vm0, %v1745_v0  ;;  %v174_v33 = vld [vmem:[#allocation3 + $0x120] sm:$0xff]  ;;  %v111_v36 = vld [vmem:[%s3292_s0 + $0x128] sm:$0x3f] }
  0x15   :  { %858 = vst.msk [vmem:[#allocation2 + $0x80] sm:$0xff] %vm8_vm0, %v1745_v0  ;;  %860 = vst.msk [vmem:[#allocation2 + $0x90] sm:$0xff] %vm8_vm0, %v1745_v0  ;;  %v113_v41 = vld [vmem:[%s3292_s0 + $0x138] sm:$0x3f]  ;;  %v178_v46 = vld [vmem:[#allocation3 + $0x140] sm:$0xff] }
  0x16   :  { %862 = vst.msk [vmem:[#allocation2 + $0xa0] sm:$0xff] %vm8_vm0, %v1745_v0  ;;  %864 = vst.msk [vmem:[#allocation2 + $0xb0] sm:$0xff] %vm8_vm0, %v1745_v0  ;;  %v182_v58 = vld [vmem:[#allocation3 + $0x160] sm:$0xff] }
  0x17   :  { %866 = vst.msk [vmem:[#allocation2 + $0xc0] sm:$0xff] %vm8_vm0, %v1745_v0  ;;  %868 = vst.msk [vmem:[#allocation2 + $0xd0] sm:$0xff] %vm8_vm0, %v1745_v0 }
  0x18   :  { %870 = vst.msk [vmem:[#allocation2 + $0xe0] sm:$0xff] %vm8_vm0, %v1745_v0  ;;  %872 = vst.msk [vmem:[#allocation2 + $0xf0] sm:$0xff] %vm8_vm0, %v1745_v0 }
  0x19   :  { %874 = vst.msk [vmem:[#allocation2 + $0x100] sm:$0xff] %vm8_vm0, %v1745_v0  ;;  %876 = vst.msk [vmem:[#allocation2 + $0x110] sm:$0xff] %vm8_vm0, %v1745_v0 }
  0x1a   :  { %878 = vst.msk [vmem:[#allocation2 + $0x120] sm:$0xff] %vm8_vm0, %v1745_v0  ;;  %880 = vst.msk [vmem:[#allocation2 + $0x130] sm:$0xff] %vm8_vm0, %v1745_v0 }
  0x1b   :  { %882 = vst.msk [vmem:[#allocation2 + $0x140] sm:$0xff] %vm8_vm0, %v1745_v0  ;;  %884 = vst.msk [vmem:[#allocation2 + $0x150] sm:$0xff] %vm8_vm0, %v1745_v0 }
  0x1c   :  { %886 = vst.msk [vmem:[#allocation2 + $0x160] sm:$0xff] %vm8_vm0, %v1745_v0  ;;  %888 = vst.msk [vmem:[#allocation2 + $0x170] sm:$0xff] %vm8_vm0, %v1745_v0 }
  0x1d   :  { %890 = vst.msk [vmem:[#allocation2 + $0x180] sm:$0xff] %vm8_vm0, %v1745_v0  ;;  %892 = vst.msk [vmem:[#allocation2 + $0x190] sm:$0xff] %vm8_vm0, %v1745_v0 }
  0x1e   :  { %894 = vst.msk [vmem:[#allocation2 + $0x1a0] sm:$0xff] %vm8_vm0, %v1745_v0  ;;  %896 = vst.msk [vmem:[#allocation2 + $0x1b0] sm:$0xff] %vm8_vm0, %v1745_v0 }
  0x1f   :  { %11 = vst.msk [vmem:[#allocation3 + $0x8] sm:$0x3f] %vm10_vm1, %v1745_v0  ;;  %13 = vst.msk [vmem:[#allocation3 + $0x18] sm:$0x3f] %vm10_vm1, %v1745_v0 }
  0x20   :  { %15 = vst.msk [vmem:[#allocation3 + $0x28] sm:$0x3f] %vm10_vm1, %v1745_v0  ;;  %17 = vst.msk [vmem:[#allocation3 + $0x38] sm:$0x3f] %vm10_vm1, %v1745_v0 }
  0x21   :  { %19 = vst.msk [vmem:[#allocation3 + $0x48] sm:$0x3f] %vm10_vm1, %v1745_v0  ;;  %21 = vst.msk [vmem:[#allocation3 + $0x58] sm:$0x3f] %vm10_vm1, %v1745_v0 }
  0x22   :  { %23 = vst.msk [vmem:[#allocation3 + $0x68] sm:$0x3f] %vm10_vm1, %v1745_v0  ;;  %25 = vst.msk [vmem:[#allocation3 + $0x78] sm:$0x3f] %vm10_vm1, %v1745_v0 }
  0x23   :  { %27 = vst.msk [vmem:[#allocation3 + $0x88] sm:$0x3f] %vm10_vm1, %v1745_v0  ;;  %29 = vst.msk [vmem:[#allocation3 + $0x98] sm:$0x3f] %vm10_vm1, %v1745_v0 }
  0x24   :  { %31 = vst.msk [vmem:[#allocation3 + $0xa8] sm:$0x3f] %vm10_vm1, %v1745_v0  ;;  %33 = vst.msk [vmem:[#allocation3 + $0xb8] sm:$0x3f] %vm10_vm1, %v1745_v0 }
  0x25   :  { %35 = vst.msk [vmem:[#allocation3 + $0xc8] sm:$0x3f] %vm10_vm1, %v1745_v0  ;;  %37 = vst.msk [vmem:[#allocation3 + $0xd8] sm:$0x3f] %vm10_vm1, %v1745_v0 }
  0x26   :  { %39 = vst.msk [vmem:[#allocation3 + $0xe8] sm:$0x3f] %vm10_vm1, %v1745_v0  ;;  %41 = vst.msk [vmem:[#allocation3 + $0xf8] sm:$0x3f] %vm10_vm1, %v1745_v0  ;;  %v139_v14 = vld [vmem:[#allocation3 + $0x8] sm:$0x3f] }
  0x27   :  { %43 = vst.msk [vmem:[#allocation3 + $0x108] sm:$0x3f] %vm10_vm1, %v1745_v0  ;;  %45 = vst.msk [vmem:[#allocation3 + $0x118] sm:$0x3f] %vm10_vm1, %v1745_v0  ;;  %v203_v20 = vadd.f32 %v139_v14, %v75_v2  ;;  %v141_v22 = vld [vmem:[#allocation3 + $0x18] sm:$0x3f] }
  0x28   :  { %47 = vst.msk [vmem:[#allocation3 + $0x128] sm:$0x3f] %vm10_vm1, %v1745_v0  ;;  %49 = vst.msk [vmem:[#allocation3 + $0x138] sm:$0x3f] %vm10_vm1, %v1745_v0  ;;  %v143_v24 = vld [vmem:[#allocation3 + $0x28] sm:$0x3f]  ;;  %v205_v28 = vadd.f32 %v141_v22, %v77_v4 }
  0x29   :  { %51 = vst.msk [vmem:[#allocation3 + $0x148] sm:$0x3f] %vm10_vm1, %v1745_v0  ;;  %53 = vst.msk [vmem:[#allocation3 + $0x158] sm:$0x3f] %vm10_vm1, %v1745_v0  ;;  %v207_v30 = vadd.f32 %v143_v24, %v79_v6  ;;  %v145_v32 = vld [vmem:[#allocation3 + $0x38] sm:$0x3f] }
  0x2a   :  { %55 = vst.msk [vmem:[#allocation3 + $0x168] sm:$0x3f] %vm10_vm1, %v1745_v0  ;;  %57 = vst.msk [vmem:[#allocation3 + $0x178] sm:$0x3f] %vm10_vm1, %v1745_v0  ;;  %v209_v38 = vadd.f32 %v145_v32, %v81_v8  ;;  %v147_v40 = vld [vmem:[#allocation3 + $0x48] sm:$0x3f] }
  0x2b   :  { %59 = vst.msk [vmem:[#allocation3 + $0x188] sm:$0x3f] %vm10_vm1, %v1745_v0  ;;  %61 = vst.msk [vmem:[#allocation3 + $0x198] sm:$0x3f] %vm10_vm1, %v1745_v0  ;;  %v149_v42 = vld [vmem:[#allocation3 + $0x58] sm:$0x3f]  ;;  %v211_v43 = vadd.f32 %v147_v40, %v83_v10 }
  0x2c   :  { %63 = vst.msk [vmem:[#allocation3 + $0x1a8] sm:$0x3f] %vm10_vm1, %v1745_v0  ;;  %65 = vst.msk [vmem:[#allocation3 + $0x1b8] sm:$0x3f] %vm10_vm1, %v1745_v0  ;;  %v213_v45 = vadd.f32 %v149_v42, %v85_v12  ;;  %v151_v47 = vld [vmem:[#allocation3 + $0x68] sm:$0x3f] }
  0x2d   :  { %67 = vst.msk [vmem:[#allocation3 + $0x1c8] sm:$0x3f] %vm10_vm1, %v1745_v0  ;;  %69 = vst.msk [vmem:[#allocation3 + $0x1d8] sm:$0x3f] %vm10_vm1, %v1745_v0  ;;  %v215_v50 = vadd.f32 %v151_v47, %v87_v17  ;;  %v153_v52 = vld [vmem:[#allocation3 + $0x78] sm:$0x3f] }
  0x2e   :  { %71 = vst.msk [vmem:[#allocation3 + $0x1e8] sm:$0x3f] %vm10_vm1, %v1745_v0  ;;  %73 = vst.msk [vmem:[#allocation3 + $0x1f8] sm:$0x3f] %vm10_vm1, %v1745_v0  ;;  %v155_v54 = vld [vmem:[#allocation3 + $0x88] sm:$0x3f]  ;;  %v217_v55 = vadd.f32 %v153_v52, %v89_v25 }
  0x2f   :  { %843 = vst.msk [vmem:[#allocation2 + $0x8] sm:$0x3f] %vm10_vm1, %v1745_v0  ;;  %845 = vst.msk [vmem:[#allocation2 + $0x18] sm:$0x3f] %vm10_vm1, %v1745_v0  ;;  %v219_v57 = vadd.f32 %v155_v54, %v91_v27  ;;  %v157_v59 = vld [vmem:[#allocation3 + $0x98] sm:$0x3f] }
  0x30   :  { %847 = vst.msk [vmem:[#allocation2 + $0x28] sm:$0x3f] %vm10_vm1, %v1745_v0  ;;  %849 = vst.msk [vmem:[#allocation2 + $0x38] sm:$0x3f] %vm10_vm1, %v1745_v0  ;;  %v221_v62 = vadd.f32 %v157_v59, %v93_v35  ;;  %v159_v1 = vld [vmem:[#allocation3 + $0xa8] sm:$0x3f] }
  0x31   :  { %851 = vst.msk [vmem:[#allocation2 + $0x48] sm:$0x3f] %vm10_vm1, %v1745_v0  ;;  %853 = vst.msk [vmem:[#allocation2 + $0x58] sm:$0x3f] %vm10_vm1, %v1745_v0  ;;  %v96_v2 = vld [vmem:[%s3292_s0 + $0xb0] sm:$0xff]  ;;  %v162_v10 = vld [vmem:[#allocation3 + $0xc0] sm:$0xff] }
  0x32   :  { %855 = vst.msk [vmem:[#allocation2 + $0x68] sm:$0x3f] %vm10_vm1, %v1745_v0  ;;  %857 = vst.msk [vmem:[#allocation2 + $0x78] sm:$0x3f] %vm10_vm1, %v1745_v0  ;;  %v160_v4 = vld [vmem:[#allocation3 + $0xb0] sm:$0xff]  ;;  %v226_v12 = vadd.f32 %v162_v10, %v98_v9  ;;  %v170_v22 = vld [vmem:[#allocation3 + $0x100] sm:$0xff] }
  0x33   :  { %859 = vst.msk [vmem:[#allocation2 + $0x88] sm:$0x3f] %vm10_vm1, %v1745_v0  ;;  %861 = vst.msk [vmem:[#allocation2 + $0x98] sm:$0x3f] %vm10_vm1, %v1745_v0  ;;  %v161_v6 = vld [vmem:[#allocation3 + $0xb8] sm:$0x3f]  ;;  %v224_v7 = vadd.f32 %v160_v4, %v96_v2 }
  0x34   :  { %863 = vst.msk [vmem:[#allocation2 + $0xa8] sm:$0x3f] %vm10_vm1, %v1745_v0  ;;  %865 = vst.msk [vmem:[#allocation2 + $0xb8] sm:$0x3f] %vm10_vm1, %v1745_v0  ;;  %v225_v8 = vadd.f32 %v161_v6, %v97_v5  ;;  %v163_v13 = vld [vmem:[#allocation3 + $0xc8] sm:$0x3f] }
  0x35   :  { %867 = vst.msk [vmem:[#allocation2 + $0xc8] sm:$0x3f] %vm10_vm1, %v1745_v0  ;;  %869 = vst.msk [vmem:[#allocation2 + $0xd8] sm:$0x3f] %vm10_vm1, %v1745_v0  ;;  %v100_v14 = vld [vmem:[%s3292_s0 + $0xd0] sm:$0xff]  ;;  %v227_v16 = vadd.f32 %v163_v13, %v99_v11  ;;  %v110_v32 = vld [vmem:[%s3292_s0 + $0x120] sm:$0xff] }
  0x36   :  { %871 = vst.msk [vmem:[#allocation2 + $0xe8] sm:$0x3f] %vm10_vm1, %v1745_v0  ;;  %873 = vst.msk [vmem:[#allocation2 + $0xf8] sm:$0x3f] %vm10_vm1, %v1745_v0  ;;  %v228_v17 = vadd.f32 %v164_v15, %v100_v14  ;;  %v171_v24 = vld [vmem:[#allocation3 + $0x108] sm:$0x3f]  ;;  %v238_v35 = vadd.f32 %v174_v33, %v110_v32 }
  0x37   :  { %875 = vst.msk [vmem:[#allocation2 + $0x108] sm:$0x3f] %vm10_vm1, %v1745_v0  ;;  %877 = vst.msk [vmem:[#allocation2 + $0x118] sm:$0x3f] %vm10_vm1, %v1745_v0  ;;  %v235_v26 = vadd.f32 %v171_v24, %v107_v23  ;;  %v108_v27 = vld [vmem:[%s3292_s0 + $0x110] sm:$0xff]  ;;  %v122_v4 = vld [vmem:[%s3292_s0 + $0x180] sm:$0xff] }
  0x38   :  { %879 = vst.msk [vmem:[#allocation2 + $0x128] sm:$0x3f] %vm10_vm1, %v1745_v0  ;;  %881 = vst.msk [vmem:[#allocation2 + $0x138] sm:$0x3f] %vm10_vm1, %v1745_v0  ;;  %v173_v31 = vld [vmem:[#allocation3 + $0x118] sm:$0x3f] }
  0x39   :  { %883 = vst.msk [vmem:[#allocation2 + $0x148] sm:$0x3f] %vm10_vm1, %v1745_v0  ;;  %885 = vst.msk [vmem:[#allocation2 + $0x158] sm:$0x3f] %vm10_vm1, %v1745_v0  ;;  %v176_v40 = vld [vmem:[#allocation3 + $0x130] sm:$0xff]  ;;  %v186_v5 = vld [vmem:[#allocation3 + $0x180] sm:$0xff] }
  0x3a   :  { %887 = vst.msk [vmem:[#allocation2 + $0x168] sm:$0x3f] %vm10_vm1, %v1745_v0  ;;  %889 = vst.msk [vmem:[#allocation2 + $0x178] sm:$0x3f] %vm10_vm1, %v1745_v0  ;;  %v177_v42 = vld [vmem:[#allocation3 + $0x138] sm:$0x3f] }
  0x3b   :  { %891 = vst.msk [vmem:[#allocation2 + $0x188] sm:$0x3f] %vm10_vm1, %v1745_v0  ;;  %893 = vst.msk [vmem:[#allocation2 + $0x198] sm:$0x3f] %vm10_vm1, %v1745_v0  ;;  %v115_v47 = vld [vmem:[%s3292_s0 + $0x148] sm:$0x3f] }
  0x3c   :  { %895 = vst.msk [vmem:[#allocation2 + $0x1a8] sm:$0x3f] %vm10_vm1, %v1745_v0  ;;  %897 = vst.msk [vmem:[#allocation2 + $0x1b8] sm:$0x3f] %vm10_vm1, %v1745_v0  ;;  %v95_v0 = vld [vmem:[%s3292_s0 + $0xa8] sm:$0x3f] }
  0x3d   :  { %266 = vst.msk [vmem:[#allocation3] sm:$0xff] %vm8_vm0, %v202_v19  ;;  %268 = vst.msk [vmem:[#allocation3 + $0x10] sm:$0xff] %vm8_vm0, %v204_v21  ;;  %v223_v3 = vadd.f32 %v159_v1, %v95_v0  ;;  %v165_v19 = vld [vmem:[#allocation3 + $0xd8] sm:$0x3f]  ;;  %v119_v59 = vld [vmem:[%s3292_s0 + $0x168] sm:$0x3f] }
  0x3e   :  { %267 = vst.msk [vmem:[#allocation3 + $0x8] sm:$0x3f] %vm10_vm1, %v203_v20  ;;  %269 = vst.msk [vmem:[#allocation3 + $0x18] sm:$0x3f] %vm10_vm1, %v205_v28  ;;  %v106_v20 = vld [vmem:[%s3292_s0 + $0x100] sm:$0xff]  ;;  %v229_v21 = vadd.f32 %v165_v19, %v101_v18  ;;  %v172_v28 = vld [vmem:[#allocation3 + $0x110] sm:$0xff] }
  0x3f   :  { %270 = vst.msk [vmem:[#allocation3 + $0x20] sm:$0xff] %vm8_vm0, %v206_v29  ;;  %272 = vst.msk [vmem:[#allocation3 + $0x30] sm:$0xff] %vm8_vm0, %v208_v37  ;;  %v234_v25 = vadd.f32 %v170_v22, %v106_v20  ;;  %v109_v29 = vld [vmem:[%s3292_s0 + $0x118] sm:$0x3f]  ;;  %v175_v37 = vld [vmem:[#allocation3 + $0x128] sm:$0x3f] }
  0x40   :  { %271 = vst.msk [vmem:[#allocation3 + $0x28] sm:$0x3f] %vm10_vm1, %v207_v30  ;;  %273 = vst.msk [vmem:[#allocation3 + $0x38] sm:$0x3f] %vm10_vm1, %v209_v38  ;;  %v236_v30 = vadd.f32 %v172_v28, %v108_v27  ;;  %v237_v34 = vadd.f32 %v173_v31, %v109_v29  ;;  %v112_v38 = vld [vmem:[%s3292_s0 + $0x130] sm:$0xff]  ;;  %v190_v18 = vld [vmem:[#allocation3 + $0x1a0] sm:$0xff] }
  0x41   :  { %274 = vst.msk [vmem:[#allocation3 + $0x40] sm:$0xff] %vm8_vm0, %v210_v39  ;;  %276 = vst.msk [vmem:[#allocation3 + $0x50] sm:$0xff] %vm8_vm0, %v212_v44  ;;  %v239_v39 = vadd.f32 %v175_v37, %v111_v36  ;;  %v241_v44 = vadd.f32 %v177_v42, %v113_v41  ;;  %v117_v54 = vld [vmem:[%s3292_s0 + $0x158] sm:$0x3f]  ;;  %v183_v60 = vld [vmem:[#allocation3 + $0x168] sm:$0x3f] }
  0x42   :  { %275 = vst.msk [vmem:[#allocation3 + $0x48] sm:$0x3f] %vm10_vm1, %v211_v43  ;;  %277 = vst.msk [vmem:[#allocation3 + $0x58] sm:$0x3f] %vm10_vm1, %v213_v45  ;;  %v240_v43 = vadd.f32 %v176_v40, %v112_v38  ;;  %v114_v45 = vld [vmem:[%s3292_s0 + $0x140] sm:$0xff]  ;;  %v184_v0 = vld [vmem:[#allocation3 + $0x170] sm:$0xff] }
  0x43   :  { %278 = vst.msk [vmem:[#allocation3 + $0x60] sm:$0xff] %vm8_vm0, %v214_v49  ;;  %280 = vst.msk [vmem:[#allocation3 + $0x70] sm:$0xff] %vm8_vm0, %v216_v51  ;;  %v242_v48 = vadd.f32 %v178_v46, %v114_v45  ;;  %v179_v49 = vld [vmem:[#allocation3 + $0x148] sm:$0x3f]  ;;  %v180_v51 = vld [vmem:[#allocation3 + $0x150] sm:$0xff] }
  0x44   :  { %279 = vst.msk [vmem:[#allocation3 + $0x68] sm:$0x3f] %vm10_vm1, %v215_v50  ;;  %281 = vst.msk [vmem:[#allocation3 + $0x78] sm:$0x3f] %vm10_vm1, %v217_v55  ;;  %v116_v50 = vld [vmem:[%s3292_s0 + $0x150] sm:$0xff]  ;;  %v243_v52 = vadd.f32 %v179_v49, %v115_v47  ;;  %v130_v28 = vld [vmem:[%s3292_s0 + $0x1c0] sm:$0xff] }
  0x45   :  { %282 = vst.msk [vmem:[#allocation3 + $0x80] sm:$0xff] %vm8_vm0, %v218_v56  ;;  %284 = vst.msk [vmem:[#allocation3 + $0x90] sm:$0xff] %vm8_vm0, %v220_v61  ;;  %v244_v53 = vadd.f32 %v180_v51, %v116_v50  ;;  %v181_v55 = vld [vmem:[#allocation3 + $0x158] sm:$0x3f]  ;;  %v118_v56 = vld [vmem:[%s3292_s0 + $0x160] sm:$0xff] }
  0x46   :  { %283 = vst.msk [vmem:[#allocation3 + $0x88] sm:$0x3f] %vm10_vm1, %v219_v57  ;;  %285 = vst.msk [vmem:[#allocation3 + $0x98] sm:$0x3f] %vm10_vm1, %v221_v62  ;;  %v245_v57 = vadd.f32 %v181_v55, %v117_v54  ;;  %v246_v61 = vadd.f32 %v182_v58, %v118_v56  ;;  %v247_v62 = vadd.f32 %v183_v60, %v119_v59  ;;  %v121_v1 = vld [vmem:[%s3292_s0 + $0x178] sm:$0x3f] }
  0x47   :  { %286 = vst.msk [vmem:[#allocation3 + $0xa0] sm:$0xff] %vm8_vm0, %v222_v63  ;;  %288 = vst.msk [vmem:[#allocation3 + $0xb0] sm:$0xff] %vm8_vm0, %v224_v7  ;;  %v120_v63 = vld [vmem:[%s3292_s0 + $0x170] sm:$0xff]  ;;  %v250_v7 = vadd.f32 %v186_v5, %v122_v4  ;;  %v187_v9 = vld [vmem:[#allocation3 + $0x188] sm:$0x3f] }
  0x48   :  { %287 = vst.msk [vmem:[#allocation3 + $0xa8] sm:$0x3f] %vm10_vm1, %v223_v3  ;;  %289 = vst.msk [vmem:[#allocation3 + $0xb8] sm:$0x3f] %vm10_vm1, %v225_v8  ;;  %v248_v2 = vadd.f32 %v184_v0, %v120_v63  ;;  %v185_v3 = vld [vmem:[#allocation3 + $0x178] sm:$0x3f] }
  0x49   :  { %290 = vst.msk [vmem:[#allocation3 + $0xc0] sm:$0xff] %vm8_vm0, %v226_v12  ;;  %292 = vst.msk [vmem:[#allocation3 + $0xd0] sm:$0xff] %vm8_vm0, %v228_v17  ;;  %v249_v6 = vadd.f32 %v185_v3, %v121_v1  ;;  %v123_v8 = vld [vmem:[%s3292_s0 + $0x188] sm:$0x3f]  ;;  %v124_v10 = vld [vmem:[%s3292_s0 + $0x190] sm:$0xff] }
  0x4a   :  { %291 = vst.msk [vmem:[#allocation3 + $0xc8] sm:$0x3f] %vm10_vm1, %v227_v16  ;;  %293 = vst.msk [vmem:[#allocation3 + $0xd8] sm:$0x3f] %vm10_vm1, %v229_v21  ;;  %v251_v11 = vadd.f32 %v187_v9, %v123_v8  ;;  %v188_v12 = vld [vmem:[#allocation3 + $0x190] sm:$0xff]  ;;  %v126_v17 = vld [vmem:[%s3292_s0 + $0x1a0] sm:$0xff] }
  0x4b   :  { %298 = vst.msk [vmem:[#allocation3 + $0x100] sm:$0xff] %vm8_vm0, %v234_v25  ;;  %300 = vst.msk [vmem:[#allocation3 + $0x110] sm:$0xff] %vm8_vm0, %v236_v30  ;;  %v125_v13 = vld [vmem:[%s3292_s0 + $0x198] sm:$0x3f]  ;;  %v252_v15 = vadd.f32 %v188_v12, %v124_v10  ;;  %v127_v19 = vld [vmem:[%s3292_s0 + $0x1a8] sm:$0x3f]  ;;  %v254_v20 = vadd.f32 %v190_v18, %v126_v17 }
  0x4c   :  { %299 = vst.msk [vmem:[#allocation3 + $0x108] sm:$0x3f] %vm10_vm1, %v235_v26  ;;  %301 = vst.msk [vmem:[#allocation3 + $0x118] sm:$0x3f] %vm10_vm1, %v237_v34  ;;  %v189_v14 = vld [vmem:[#allocation3 + $0x198] sm:$0x3f] }
  0x4d   :  { %302 = vst.msk [vmem:[#allocation3 + $0x120] sm:$0xff] %vm8_vm0, %v238_v35  ;;  %304 = vst.msk [vmem:[#allocation3 + $0x130] sm:$0xff] %vm8_vm0, %v240_v43  ;;  %v253_v16 = vadd.f32 %v189_v14, %v125_v13  ;;  %v191_v21 = vld [vmem:[#allocation3 + $0x1a8] sm:$0x3f]  ;;  %v128_v22 = vld [vmem:[%s3292_s0 + $0x1b0] sm:$0xff] }
  0x4e   :  { %303 = vst.msk [vmem:[#allocation3 + $0x128] sm:$0x3f] %vm10_vm1, %v239_v39  ;;  %305 = vst.msk [vmem:[#allocation3 + $0x138] sm:$0x3f] %vm10_vm1, %v241_v44  ;;  %v192_v23 = vld [vmem:[#allocation3 + $0x1b0] sm:$0xff]  ;;  %v255_v24 = vadd.f32 %v191_v21, %v127_v19  ;;  %v194_v30 = vld [vmem:[#allocation3 + $0x1c0] sm:$0xff] }
  0x4f   :  { %306 = vst.msk [vmem:[#allocation3 + $0x140] sm:$0xff] %vm8_vm0, %v242_v48  ;;  %308 = vst.msk [vmem:[#allocation3 + $0x150] sm:$0xff] %vm8_vm0, %v244_v53  ;;  %v256_v25 = vadd.f32 %v192_v23, %v128_v22  ;;  %v129_v26 = vld [vmem:[%s3292_s0 + $0x1b8] sm:$0x3f]  ;;  %v131_v31 = vld [vmem:[%s3292_s0 + $0x1c8] sm:$0x3f]  ;;  %v258_v33 = vadd.f32 %v194_v30, %v130_v28 }
  0x50   :  { %307 = vst.msk [vmem:[#allocation3 + $0x148] sm:$0x3f] %vm10_vm1, %v243_v52  ;;  %309 = vst.msk [vmem:[#allocation3 + $0x158] sm:$0x3f] %vm10_vm1, %v245_v57  ;;  %v193_v27 = vld [vmem:[#allocation3 + $0x1b8] sm:$0x3f] }
  0x51   :  { %310 = vst.msk [vmem:[#allocation3 + $0x160] sm:$0xff] %vm8_vm0, %v246_v61  ;;  %312 = vst.msk [vmem:[#allocation3 + $0x170] sm:$0xff] %vm8_vm0, %v248_v2  ;;  %v257_v29 = vadd.f32 %v193_v27, %v129_v26  ;;  %v195_v32 = vld [vmem:[#allocation3 + $0x1c8] sm:$0x3f]  ;;  %v132_v35 = vld [vmem:[%s3292_s0 + $0x1d0] sm:$0xff] }
  0x52   :  { %311 = vst.msk [vmem:[#allocation3 + $0x168] sm:$0x3f] %vm10_vm1, %v247_v62  ;;  %313 = vst.msk [vmem:[#allocation3 + $0x178] sm:$0x3f] %vm10_vm1, %v249_v6  ;;  %v259_v34 = vadd.f32 %v195_v32, %v131_v31  ;;  %v196_v36 = vld [vmem:[#allocation3 + $0x1d0] sm:$0xff]  ;;  %v102_v40 = vld [vmem:[%s3292_s0 + $0xe0] sm:$0xff] }
  0x53   :  { %314 = vst.msk [vmem:[#allocation3 + $0x180] sm:$0xff] %vm8_vm0, %v250_v7  ;;  %316 = vst.msk [vmem:[#allocation3 + $0x190] sm:$0xff] %vm8_vm0, %v252_v15  ;;  %v133_v37 = vld [vmem:[%s3292_s0 + $0x1d8] sm:$0x3f]  ;;  %v260_v38 = vadd.f32 %v196_v36, %v132_v35  ;;  %v166_v41 = vld [vmem:[#allocation3 + $0xe0] sm:$0xff] }
  0x54   :  { %315 = vst.msk [vmem:[#allocation3 + $0x188] sm:$0x3f] %vm10_vm1, %v251_v11  ;;  %317 = vst.msk [vmem:[#allocation3 + $0x198] sm:$0x3f] %vm10_vm1, %v253_v16  ;;  %v197_v39 = vld [vmem:[#allocation3 + $0x1d8] sm:$0x3f]  ;;  %v230_v43 = vadd.f32 %v166_v41, %v102_v40 }
  0x55   :  { %318 = vst.msk [vmem:[#allocation3 + $0x1a0] sm:$0xff] %vm8_vm0, %v254_v20  ;;  %320 = vst.msk [vmem:[#allocation3 + $0x1b0] sm:$0xff] %vm8_vm0, %v256_v25  ;;  %v261_v42 = vadd.f32 %v197_v39, %v133_v37  ;;  %v103_v44 = vld [vmem:[%s3292_s0 + $0xe8] sm:$0x3f]  ;;  %v134_v46 = vld [vmem:[%s3292_s0 + $0x1e0] sm:$0xff] }
  0x56   :  { %319 = vst.msk [vmem:[#allocation3 + $0x1a8] sm:$0x3f] %vm10_vm1, %v255_v24  ;;  %321 = vst.msk [vmem:[#allocation3 + $0x1b8] sm:$0x3f] %vm10_vm1, %v257_v29  ;;  %v167_v45 = vld [vmem:[#allocation3 + $0xe8] sm:$0x3f] }
  0x57   :  { %322 = vst.msk [vmem:[#allocation3 + $0x1c0] sm:$0xff] %vm8_vm0, %v258_v33  ;;  %324 = vst.msk [vmem:[#allocation3 + $0x1d0] sm:$0xff] %vm8_vm0, %v260_v38  ;;  %v231_v47 = vadd.f32 %v167_v45, %v103_v44  ;;  %v198_v48 = vld [vmem:[#allocation3 + $0x1e0] sm:$0xff]  ;;  %v135_v49 = vld [vmem:[%s3292_s0 + $0x1e8] sm:$0x3f] }
  0x58   :  { %323 = vst.msk [vmem:[#allocation3 + $0x1c8] sm:$0x3f] %vm10_vm1, %v259_v34  ;;  %v199_v50 = vld [vmem:[#allocation3 + $0x1e8] sm:$0x3f]  ;;  %325 = vst.msk [vmem:[#allocation3 + $0x1d8] sm:$0x3f] %vm10_vm1, %v261_v42  ;;  %v262_v51 = vadd.f32 %v198_v48, %v134_v46 }
  0x59   :  { %294 = vst.msk [vmem:[#allocation3 + $0xe0] sm:$0xff] %vm8_vm0, %v230_v43  ;;  %v263_v52 = vadd.f32 %v199_v50, %v135_v49  ;;  %v330_v53 = vld [vmem:[%s3292_s0 + $0x1] sm:$0xff]  ;;  %v331_v55 = vld [vmem:[%s3292_s0 + $0x9] sm:$0x3f]  ;;  %v332_v58 = vld [vmem:[%s3292_s0 + $0x11] sm:$0xff] }
  0x5a   :  { %v394_v54 = vld [vmem:[#allocation3] sm:$0xff]  ;;  %295 = vst.msk [vmem:[#allocation3 + $0xe8] sm:$0x3f] %vm10_vm1, %v231_v47  ;;  %v395_v57 = vld [vmem:[#allocation3 + $0x8] sm:$0x3f]  ;;  %v396_v59 = vld [vmem:[#allocation3 + $0x10] sm:$0xff] }
  0x5b   :  { %v458_v56 = vadd.f32 %v394_v54, %v330_v53  ;;  %326 = vst.msk [vmem:[#allocation3 + $0x1e0] sm:$0xff] %vm8_vm0, %v262_v51  ;;  %v459_v60 = vadd.f32 %v395_v57, %v331_v55  ;;  %v460_v61 = vadd.f32 %v396_v59, %v332_v58  ;;  %v333_v62 = vld [vmem:[%s3292_s0 + $0x19] sm:$0x3f]  ;;  %v334_v0 = vld [vmem:[%s3292_s0 + $0x21] sm:$0xff]  ;;  %v335_v3 = vld [vmem:[%s3292_s0 + $0x29] sm:$0x3f] }
  0x5c   :  { %327 = vst.msk [vmem:[#allocation3 + $0x1e8] sm:$0x3f] %vm10_vm1, %v263_v52  ;;  %v397_v63 = vld [vmem:[#allocation3 + $0x18] sm:$0x3f]  ;;  %v398_v2 = vld [vmem:[#allocation3 + $0x20] sm:$0xff]  ;;  %v400_v8 = vld [vmem:[#allocation3 + $0x30] sm:$0xff] }
  0x5d   :  { %522 = vst.msk [vmem:[#allocation3] sm:$0xff] %vm8_vm0, %v458_v56  ;;  %v461_v1 = vadd.f32 %v397_v63, %v333_v62  ;;  %v399_v4 = vld [vmem:[#allocation3 + $0x28] sm:$0x3f]  ;;  %524 = vst.msk [vmem:[#allocation3 + $0x10] sm:$0xff] %vm8_vm0, %v460_v61  ;;  %v462_v5 = vadd.f32 %v398_v2, %v334_v0  ;;  %v336_v7 = vld [vmem:[%s3292_s0 + $0x31] sm:$0xff] }
  0x5e   :  { %523 = vst.msk [vmem:[#allocation3 + $0x8] sm:$0x3f] %vm10_vm1, %v459_v60  ;;  %v463_v6 = vadd.f32 %v399_v4, %v335_v3  ;;  %v337_v9 = vld [vmem:[%s3292_s0 + $0x39] sm:$0x3f]  ;;  %v464_v10 = vadd.f32 %v400_v8, %v336_v7  ;;  %v338_v12 = vld [vmem:[%s3292_s0 + $0x41] sm:$0xff]  ;;  %v340_v18 = vld [vmem:[%s3292_s0 + $0x51] sm:$0xff] }
  0x5f   :  { %525 = vst.msk [vmem:[#allocation3 + $0x18] sm:$0x3f] %vm10_vm1, %v461_v1  ;;  %v401_v11 = vld [vmem:[#allocation3 + $0x38] sm:$0x3f]  ;;  %v402_v13 = vld [vmem:[#allocation3 + $0x40] sm:$0xff]  ;;  %v404_v20 = vld [vmem:[#allocation3 + $0x50] sm:$0xff] }
  0x60   :  { %526 = vst.msk [vmem:[#allocation3 + $0x20] sm:$0xff] %vm8_vm0, %v462_v5  ;;  %v465_v14 = vadd.f32 %v401_v11, %v337_v9  ;;  %v466_v15 = vadd.f32 %v402_v13, %v338_v12  ;;  %v339_v16 = vld [vmem:[%s3292_s0 + $0x49] sm:$0x3f]  ;;  %528 = vst.msk [vmem:[#allocation3 + $0x30] sm:$0xff] %vm8_vm0, %v464_v10  ;;  %v341_v21 = vld [vmem:[%s3292_s0 + $0x59] sm:$0x3f]  ;;  %v468_v23 = vadd.f32 %v404_v20, %v340_v18 }
  0x61   :  { %527 = vst.msk [vmem:[#allocation3 + $0x28] sm:$0x3f] %vm10_vm1, %v463_v6  ;;  %v403_v17 = vld [vmem:[#allocation3 + $0x48] sm:$0x3f]  ;;  %v405_v22 = vld [vmem:[#allocation3 + $0x58] sm:$0x3f] }
  0x62   :  { %v467_v19 = vadd.f32 %v403_v17, %v339_v16  ;;  %529 = vst.msk [vmem:[#allocation3 + $0x38] sm:$0x3f] %vm10_vm1, %v465_v14  ;;  %v469_v24 = vadd.f32 %v405_v22, %v341_v21  ;;  %v342_v25 = vld [vmem:[%s3292_s0 + $0x61] sm:$0xff]  ;;  %v343_v27 = vld [vmem:[%s3292_s0 + $0x69] sm:$0x3f]  ;;  %v344_v30 = vld [vmem:[%s3292_s0 + $0x71] sm:$0xff] }
  0x63   :  { %530 = vst.msk [vmem:[#allocation3 + $0x40] sm:$0xff] %vm8_vm0, %v466_v15  ;;  %v406_v26 = vld [vmem:[#allocation3 + $0x60] sm:$0xff]  ;;  %v407_v29 = vld [vmem:[#allocation3 + $0x68] sm:$0x3f]  ;;  %v408_v31 = vld [vmem:[#allocation3 + $0x70] sm:$0xff] }
  0x64   :  { %531 = vst.msk [vmem:[#allocation3 + $0x48] sm:$0x3f] %vm10_vm1, %v467_v19  ;;  %v470_v28 = vadd.f32 %v406_v26, %v342_v25  ;;  %533 = vst.msk [vmem:[#allocation3 + $0x58] sm:$0x3f] %vm10_vm1, %v469_v24  ;;  %v471_v32 = vadd.f32 %v407_v29, %v343_v27  ;;  %v472_v33 = vadd.f32 %v408_v31, %v344_v30  ;;  %v345_v34 = vld [vmem:[%s3292_s0 + $0x79] sm:$0x3f] }
  0x65   :  { %532 = vst.msk [vmem:[#allocation3 + $0x50] sm:$0xff] %vm8_vm0, %v468_v23  ;;  %v409_v35 = vld [vmem:[#allocation3 + $0x78] sm:$0x3f]  ;;  %v346_v36 = vld [vmem:[%s3292_s0 + $0x81] sm:$0xff]  ;;  %v347_v39 = vld [vmem:[%s3292_s0 + $0x89] sm:$0x3f] }
  0x66   :  { %534 = vst.msk [vmem:[#allocation3 + $0x60] sm:$0xff] %vm8_vm0, %v470_v28  ;;  %v473_v37 = vadd.f32 %v409_v35, %v345_v34  ;;  %v410_v38 = vld [vmem:[#allocation3 + $0x80] sm:$0xff]  ;;  %v411_v40 = vld [vmem:[#allocation3 + $0x88] sm:$0x3f]  ;;  %536 = vst.msk [vmem:[#allocation3 + $0x70] sm:$0xff] %vm8_vm0, %v472_v33 }
  0x67   :  { %535 = vst.msk [vmem:[#allocation3 + $0x68] sm:$0x3f] %vm10_vm1, %v471_v32  ;;  %v474_v41 = vadd.f32 %v410_v38, %v346_v36  ;;  %v475_v42 = vadd.f32 %v411_v40, %v347_v39  ;;  %v348_v43 = vld [vmem:[%s3292_s0 + $0x91] sm:$0xff]  ;;  %v349_v45 = vld [vmem:[%s3292_s0 + $0x99] sm:$0x3f]  ;;  %v350_v48 = vld [vmem:[%s3292_s0 + $0xa1] sm:$0xff] }
  0x68   :  { %v412_v44 = vld [vmem:[#allocation3 + $0x90] sm:$0xff]  ;;  %537 = vst.msk [vmem:[#allocation3 + $0x78] sm:$0x3f] %vm10_vm1, %v473_v37  ;;  %v413_v47 = vld [vmem:[#allocation3 + $0x98] sm:$0x3f]  ;;  %v414_v49 = vld [vmem:[#allocation3 + $0xa0] sm:$0xff] }
  0x69   :  { %v476_v46 = vadd.f32 %v412_v44, %v348_v43  ;;  %538 = vst.msk [vmem:[#allocation3 + $0x80] sm:$0xff] %vm8_vm0, %v474_v41  ;;  %v477_v50 = vadd.f32 %v413_v47, %v349_v45  ;;  %v478_v51 = vadd.f32 %v414_v49, %v350_v48  ;;  %v351_v52 = vld [vmem:[%s3292_s0 + $0xa9] sm:$0x3f]  ;;  %v352_v54 = vld [vmem:[%s3292_s0 + $0xb1] sm:$0xff]  ;;  %v353_v57 = vld [vmem:[%s3292_s0 + $0xb9] sm:$0x3f] }
  0x6a   :  { %539 = vst.msk [vmem:[#allocation3 + $0x88] sm:$0x3f] %vm10_vm1, %v475_v42  ;;  %v415_v53 = vld [vmem:[#allocation3 + $0xa8] sm:$0x3f]  ;;  %v416_v56 = vld [vmem:[#allocation3 + $0xb0] sm:$0xff]  ;;  %v418_v62 = vld [vmem:[#allocation3 + $0xc0] sm:$0xff] }
  0x6b   :  { %540 = vst.msk [vmem:[#allocation3 + $0x90] sm:$0xff] %vm8_vm0, %v476_v46  ;;  %v479_v55 = vadd.f32 %v415_v53, %v351_v52  ;;  %v417_v58 = vld [vmem:[#allocation3 + $0xb8] sm:$0x3f]  ;;  %542 = vst.msk [vmem:[#allocation3 + $0xa0] sm:$0xff] %vm8_vm0, %v478_v51  ;;  %v480_v59 = vadd.f32 %v416_v56, %v352_v54  ;;  %v354_v61 = vld [vmem:[%s3292_s0 + $0xc1] sm:$0xff] }
  0x6c   :  { %541 = vst.msk [vmem:[#allocation3 + $0x98] sm:$0x3f] %vm10_vm1, %v477_v50  ;;  %v481_v60 = vadd.f32 %v417_v58, %v353_v57  ;;  %v355_v63 = vld [vmem:[%s3292_s0 + $0xc9] sm:$0x3f]  ;;  %v482_v0 = vadd.f32 %v418_v62, %v354_v61  ;;  %v356_v2 = vld [vmem:[%s3292_s0 + $0xd1] sm:$0xff]  ;;  %v362_v8 = vld [vmem:[%s3292_s0 + $0x101] sm:$0xff] }
  0x6d   :  { %543 = vst.msk [vmem:[#allocation3 + $0xa8] sm:$0x3f] %vm10_vm1, %v479_v55  ;;  %v419_v1 = vld [vmem:[#allocation3 + $0xc8] sm:$0x3f]  ;;  %v420_v3 = vld [vmem:[#allocation3 + $0xd0] sm:$0xff]  ;;  %v426_v10 = vld [vmem:[#allocation3 + $0x100] sm:$0xff] }
  0x6e   :  { %544 = vst.msk [vmem:[#allocation3 + $0xb0] sm:$0xff] %vm8_vm0, %v480_v59  ;;  %v483_v4 = vadd.f32 %v419_v1, %v355_v63  ;;  %v484_v5 = vadd.f32 %v420_v3, %v356_v2  ;;  %v357_v6 = vld [vmem:[%s3292_s0 + $0xd9] sm:$0x3f]  ;;  %546 = vst.msk [vmem:[#allocation3 + $0xc0] sm:$0xff] %vm8_vm0, %v482_v0  ;;  %v363_v11 = vld [vmem:[%s3292_s0 + $0x109] sm:$0x3f]  ;;  %v490_v13 = vadd.f32 %v426_v10, %v362_v8 }
  0x6f   :  { %545 = vst.msk [vmem:[#allocation3 + $0xb8] sm:$0x3f] %vm10_vm1, %v481_v60  ;;  %v421_v7 = vld [vmem:[#allocation3 + $0xd8] sm:$0x3f]  ;;  %v427_v12 = vld [vmem:[#allocation3 + $0x108] sm:$0x3f] }
  0x70   :  { %v485_v9 = vadd.f32 %v421_v7, %v357_v6  ;;  %547 = vst.msk [vmem:[#allocation3 + $0xc8] sm:$0x3f] %vm10_vm1, %v483_v4  ;;  %v491_v14 = vadd.f32 %v427_v12, %v363_v11  ;;  %v364_v15 = vld [vmem:[%s3292_s0 + $0x111] sm:$0xff]  ;;  %v365_v17 = vld [vmem:[%s3292_s0 + $0x119] sm:$0x3f]  ;;  %v366_v20 = vld [vmem:[%s3292_s0 + $0x121] sm:$0xff] }
  0x71   :  { %548 = vst.msk [vmem:[#allocation3 + $0xd0] sm:$0xff] %vm8_vm0, %v484_v5  ;;  %v428_v16 = vld [vmem:[#allocation3 + $0x110] sm:$0xff]  ;;  %v429_v19 = vld [vmem:[#allocation3 + $0x118] sm:$0x3f]  ;;  %v430_v21 = vld [vmem:[#allocation3 + $0x120] sm:$0xff] }
  0x72   :  { %549 = vst.msk [vmem:[#allocation3 + $0xd8] sm:$0x3f] %vm10_vm1, %v485_v9  ;;  %v492_v18 = vadd.f32 %v428_v16, %v364_v15  ;;  %555 = vst.msk [vmem:[#allocation3 + $0x108] sm:$0x3f] %vm10_vm1, %v491_v14  ;;  %v493_v22 = vadd.f32 %v429_v19, %v365_v17  ;;  %v494_v23 = vadd.f32 %v430_v21, %v366_v20  ;;  %v367_v24 = vld [vmem:[%s3292_s0 + $0x129] sm:$0x3f] }
  0x73   :  { %554 = vst.msk [vmem:[#allocation3 + $0x100] sm:$0xff] %vm8_vm0, %v490_v13  ;;  %v431_v25 = vld [vmem:[#allocation3 + $0x128] sm:$0x3f]  ;;  %v368_v26 = vld [vmem:[%s3292_s0 + $0x131] sm:$0xff]  ;;  %v369_v29 = vld [vmem:[%s3292_s0 + $0x139] sm:$0x3f] }
  0x74   :  { %556 = vst.msk [vmem:[#allocation3 + $0x110] sm:$0xff] %vm8_vm0, %v492_v18  ;;  %v495_v27 = vadd.f32 %v431_v25, %v367_v24  ;;  %v432_v28 = vld [vmem:[#allocation3 + $0x130] sm:$0xff]  ;;  %v433_v30 = vld [vmem:[#allocation3 + $0x138] sm:$0x3f]  ;;  %558 = vst.msk [vmem:[#allocation3 + $0x120] sm:$0xff] %vm8_vm0, %v494_v23 }
  0x75   :  { %557 = vst.msk [vmem:[#allocation3 + $0x118] sm:$0x3f] %vm10_vm1, %v493_v22  ;;  %v496_v31 = vadd.f32 %v432_v28, %v368_v26  ;;  %v497_v32 = vadd.f32 %v433_v30, %v369_v29  ;;  %v370_v33 = vld [vmem:[%s3292_s0 + $0x141] sm:$0xff]  ;;  %v371_v35 = vld [vmem:[%s3292_s0 + $0x149] sm:$0x3f]  ;;  %v372_v38 = vld [vmem:[%s3292_s0 + $0x151] sm:$0xff] }
  0x76   :  { %v434_v34 = vld [vmem:[#allocation3 + $0x140] sm:$0xff]  ;;  %559 = vst.msk [vmem:[#allocation3 + $0x128] sm:$0x3f] %vm10_vm1, %v495_v27  ;;  %v435_v37 = vld [vmem:[#allocation3 + $0x148] sm:$0x3f]  ;;  %v436_v39 = vld [vmem:[#allocation3 + $0x150] sm:$0xff] }
  0x77   :  { %v498_v36 = vadd.f32 %v434_v34, %v370_v33  ;;  %560 = vst.msk [vmem:[#allocation3 + $0x130] sm:$0xff] %vm8_vm0, %v496_v31  ;;  %v499_v40 = vadd.f32 %v435_v37, %v371_v35  ;;  %v500_v41 = vadd.f32 %v436_v39, %v372_v38  ;;  %v373_v42 = vld [vmem:[%s3292_s0 + $0x159] sm:$0x3f]  ;;  %v374_v44 = vld [vmem:[%s3292_s0 + $0x161] sm:$0xff]  ;;  %v375_v47 = vld [vmem:[%s3292_s0 + $0x169] sm:$0x3f] }
  0x78   :  { %561 = vst.msk [vmem:[#allocation3 + $0x138] sm:$0x3f] %vm10_vm1, %v497_v32  ;;  %v437_v43 = vld [vmem:[#allocation3 + $0x158] sm:$0x3f]  ;;  %v438_v46 = vld [vmem:[#allocation3 + $0x160] sm:$0xff]  ;;  %v440_v52 = vld [vmem:[#allocation3 + $0x170] sm:$0xff] }
  0x79   :  { %562 = vst.msk [vmem:[#allocation3 + $0x140] sm:$0xff] %vm8_vm0, %v498_v36  ;;  %v501_v45 = vadd.f32 %v437_v43, %v373_v42  ;;  %v439_v48 = vld [vmem:[#allocation3 + $0x168] sm:$0x3f]  ;;  %564 = vst.msk [vmem:[#allocation3 + $0x150] sm:$0xff] %vm8_vm0, %v500_v41  ;;  %v502_v49 = vadd.f32 %v438_v46, %v374_v44  ;;  %v376_v51 = vld [vmem:[%s3292_s0 + $0x171] sm:$0xff] }
  0x7a   :  { %563 = vst.msk [vmem:[#allocation3 + $0x148] sm:$0x3f] %vm10_vm1, %v499_v40  ;;  %v503_v50 = vadd.f32 %v439_v48, %v375_v47  ;;  %v377_v53 = vld [vmem:[%s3292_s0 + $0x179] sm:$0x3f]  ;;  %v504_v54 = vadd.f32 %v440_v52, %v376_v51  ;;  %v378_v56 = vld [vmem:[%s3292_s0 + $0x181] sm:$0xff]  ;;  %v380_v62 = vld [vmem:[%s3292_s0 + $0x191] sm:$0xff] }
  0x7b   :  { %565 = vst.msk [vmem:[#allocation3 + $0x158] sm:$0x3f] %vm10_vm1, %v501_v45  ;;  %v441_v55 = vld [vmem:[#allocation3 + $0x178] sm:$0x3f]  ;;  %v442_v57 = vld [vmem:[#allocation3 + $0x180] sm:$0xff]  ;;  %v444_v0 = vld [vmem:[#allocation3 + $0x190] sm:$0xff] }
  0x7c   :  { %566 = vst.msk [vmem:[#allocation3 + $0x160] sm:$0xff] %vm8_vm0, %v502_v49  ;;  %v505_v58 = vadd.f32 %v441_v55, %v377_v53  ;;  %v506_v59 = vadd.f32 %v442_v57, %v378_v56  ;;  %v379_v60 = vld [vmem:[%s3292_s0 + $0x189] sm:$0x3f]  ;;  %568 = vst.msk [vmem:[#allocation3 + $0x170] sm:$0xff] %vm8_vm0, %v504_v54  ;;  %v381_v1 = vld [vmem:[%s3292_s0 + $0x199] sm:$0x3f]  ;;  %v508_v3 = vadd.f32 %v444_v0, %v380_v62 }
  0x7d   :  { %567 = vst.msk [vmem:[#allocation3 + $0x168] sm:$0x3f] %vm10_vm1, %v503_v50  ;;  %v443_v61 = vld [vmem:[#allocation3 + $0x188] sm:$0x3f]  ;;  %v445_v2 = vld [vmem:[#allocation3 + $0x198] sm:$0x3f] }
  0x7e   :  { %v507_v63 = vadd.f32 %v443_v61, %v379_v60  ;;  %569 = vst.msk [vmem:[#allocation3 + $0x178] sm:$0x3f] %vm10_vm1, %v505_v58  ;;  %v509_v4 = vadd.f32 %v445_v2, %v381_v1  ;;  %v382_v5 = vld [vmem:[%s3292_s0 + $0x1a1] sm:$0xff]  ;;  %v383_v7 = vld [vmem:[%s3292_s0 + $0x1a9] sm:$0x3f]  ;;  %v384_v10 = vld [vmem:[%s3292_s0 + $0x1b1] sm:$0xff] }
  0x7f   :  { %570 = vst.msk [vmem:[#allocation3 + $0x180] sm:$0xff] %vm8_vm0, %v506_v59  ;;  %v446_v6 = vld [vmem:[#allocation3 + $0x1a0] sm:$0xff]  ;;  %v447_v9 = vld [vmem:[#allocation3 + $0x1a8] sm:$0x3f]  ;;  %v448_v11 = vld [vmem:[#allocation3 + $0x1b0] sm:$0xff] }
  0x80   :  { %571 = vst.msk [vmem:[#allocation3 + $0x188] sm:$0x3f] %vm10_vm1, %v507_v63  ;;  %v510_v8 = vadd.f32 %v446_v6, %v382_v5  ;;  %573 = vst.msk [vmem:[#allocation3 + $0x198] sm:$0x3f] %vm10_vm1, %v509_v4  ;;  %v511_v12 = vadd.f32 %v447_v9, %v383_v7  ;;  %v512_v13 = vadd.f32 %v448_v11, %v384_v10  ;;  %v385_v14 = vld [vmem:[%s3292_s0 + $0x1b9] sm:$0x3f] }
  0x81   :  { %572 = vst.msk [vmem:[#allocation3 + $0x190] sm:$0xff] %vm8_vm0, %v508_v3  ;;  %v449_v15 = vld [vmem:[#allocation3 + $0x1b8] sm:$0x3f]  ;;  %v386_v16 = vld [vmem:[%s3292_s0 + $0x1c1] sm:$0xff]  ;;  %v387_v19 = vld [vmem:[%s3292_s0 + $0x1c9] sm:$0x3f] }
  0x82   :  { %574 = vst.msk [vmem:[#allocation3 + $0x1a0] sm:$0xff] %vm8_vm0, %v510_v8  ;;  %v513_v17 = vadd.f32 %v449_v15, %v385_v14  ;;  %v450_v18 = vld [vmem:[#allocation3 + $0x1c0] sm:$0xff]  ;;  %v451_v20 = vld [vmem:[#allocation3 + $0x1c8] sm:$0x3f]  ;;  %576 = vst.msk [vmem:[#allocation3 + $0x1b0] sm:$0xff] %vm8_vm0, %v512_v13 }
  0x83   :  { %575 = vst.msk [vmem:[#allocation3 + $0x1a8] sm:$0x3f] %vm10_vm1, %v511_v12  ;;  %v514_v21 = vadd.f32 %v450_v18, %v386_v16  ;;  %v515_v22 = vadd.f32 %v451_v20, %v387_v19  ;;  %v388_v23 = vld [vmem:[%s3292_s0 + $0x1d1] sm:$0xff]  ;;  %v389_v25 = vld [vmem:[%s3292_s0 + $0x1d9] sm:$0x3f]  ;;  %v358_v41 = vld [vmem:[%s3292_s0 + $0xe1] sm:$0xff] }
  0x84   :  { %v452_v24 = vld [vmem:[#allocation3 + $0x1d0] sm:$0xff]  ;;  %577 = vst.msk [vmem:[#allocation3 + $0x1b8] sm:$0x3f] %vm10_vm1, %v513_v17  ;;  %v453_v27 = vld [vmem:[#allocation3 + $0x1d8] sm:$0x3f]  ;;  %v422_v42 = vld [vmem:[#allocation3 + $0xe0] sm:$0xff] }
  0x85   :  { %v516_v26 = vadd.f32 %v452_v24, %v388_v23  ;;  %v104_v28 = vld [vmem:[%s3292_s0 + $0xf0] sm:$0xff]  ;;  %578 = vst.msk [vmem:[#allocation3 + $0x1c0] sm:$0xff] %vm8_vm0, %v514_v21  ;;  %v517_v30 = vadd.f32 %v453_v27, %v389_v25  ;;  %v105_v32 = vld [vmem:[%s3292_s0 + $0xf8] sm:$0x3f]  ;;  %v359_v43 = vld [vmem:[%s3292_s0 + $0xe9] sm:$0x3f]  ;;  %v486_v44 = vadd.f32 %v422_v42, %v358_v41 }
  0x86   :  { %v168_v29 = vld [vmem:[#allocation3 + $0xf0] sm:$0xff]  ;;  %579 = vst.msk [vmem:[#allocation3 + $0x1c8] sm:$0x3f] %vm10_vm1, %v515_v22  ;;  %v169_v33 = vld [vmem:[#allocation3 + $0xf8] sm:$0x3f]  ;;  %v390_v46 = vld [vmem:[%s3292_s0 + $0x1e1] sm:$0xff] }
  0x87   :  { %v232_v31 = vadd.f32 %v168_v29, %v104_v28  ;;  %v136_v34 = vld [vmem:[%s3292_s0 + $0x1f0] sm:$0xff]  ;;  %580 = vst.msk [vmem:[#allocation3 + $0x1d0] sm:$0xff] %vm8_vm0, %v516_v26  ;;  %v233_v35 = vadd.f32 %v169_v33, %v105_v32  ;;  %v137_v37 = vld [vmem:[%s3292_s0 + $0x1f8] sm:$0x3f]  ;;  %v423_v45 = vld [vmem:[#allocation3 + $0xe8] sm:$0x3f] }
  0x88   :  { %v200_v36 = vld [vmem:[#allocation3 + $0x1f0] sm:$0xff]  ;;  %v201_v38 = vld [vmem:[#allocation3 + $0x1f8] sm:$0x3f]  ;;  %581 = vst.msk [vmem:[#allocation3 + $0x1d8] sm:$0x3f] %vm10_vm1, %v517_v30  ;;  %v454_v47 = vld [vmem:[#allocation3 + $0x1e0] sm:$0xff]  ;;  %v487_v48 = vadd.f32 %v423_v45, %v359_v43 }
  0x89   :  { %296 = vst.msk [vmem:[#allocation3 + $0xf0] sm:$0xff] %vm8_vm0, %v232_v31  ;;  %v264_v39 = vadd.f32 %v200_v36, %v136_v34  ;;  %v265_v40 = vadd.f32 %v201_v38, %v137_v37  ;;  %v518_v49 = vadd.f32 %v454_v47, %v390_v46  ;;  %v391_v50 = vld [vmem:[%s3292_s0 + $0x1e9] sm:$0x3f]  ;;  %550 = vst.msk [vmem:[#allocation3 + $0xe0] sm:$0xff] %vm8_vm0, %v486_v44  ;;  %v650_v54 = vld [vmem:[#allocation3] sm:$0xff] }
  0x8a   :  { %297 = vst.msk [vmem:[#allocation3 + $0xf8] sm:$0x3f] %vm10_vm1, %v233_v35  ;;  %v455_v51 = vld [vmem:[#allocation3 + $0x1e8] sm:$0x3f]  ;;  %551 = vst.msk [vmem:[#allocation3 + $0xe8] sm:$0x3f] %vm10_vm1, %v487_v48 }
  0x8b   :  { %328 = vst.msk [vmem:[#allocation3 + $0x1f0] sm:$0xff] %vm8_vm0, %v264_v39  ;;  %v586_v52 = vld [vmem:[%s3292_s0 + $0x2] sm:$0xff]  ;;  %v519_v53 = vadd.f32 %v455_v51, %v391_v50  ;;  %v587_v55 = vld [vmem:[%s3292_s0 + $0xa] sm:$0x3f]  ;;  %582 = vst.msk [vmem:[#allocation3 + $0x1e0] sm:$0xff] %vm8_vm0, %v518_v49 }
  0x8c   :  { %329 = vst.msk [vmem:[#allocation3 + $0x1f8] sm:$0x3f] %vm10_vm1, %v265_v40  ;;  %v651_v56 = vld [vmem:[#allocation3 + $0x8] sm:$0x3f]  ;;  %v714_v57 = vadd.f32 %v650_v54, %v586_v52  ;;  %v588_v59 = vld [vmem:[%s3292_s0 + $0x12] sm:$0xff]  ;;  %v654_v1 = vld [vmem:[#allocation3 + $0x20] sm:$0xff] }
  0x8d   :  { %v715_v58 = vadd.f32 %v651_v56, %v587_v55  ;;  %v652_v60 = vld [vmem:[#allocation3 + $0x10] sm:$0xff]  ;;  %v589_v61 = vld [vmem:[%s3292_s0 + $0x1a] sm:$0x3f]  ;;  %583 = vst.msk [vmem:[#allocation3 + $0x1e8] sm:$0x3f] %vm10_vm1, %v519_v53  ;;  %v590_v0 = vld [vmem:[%s3292_s0 + $0x22] sm:$0xff] }
  0x8e   :  { %v716_v62 = vadd.f32 %v652_v60, %v588_v59  ;;  %v653_v63 = vld [vmem:[#allocation3 + $0x18] sm:$0x3f]  ;;  %778 = vst.msk [vmem:[#allocation3] sm:$0xff] %vm8_vm0, %v714_v57  ;;  %v718_v3 = vadd.f32 %v654_v1, %v590_v0  ;;  %v591_v4 = vld [vmem:[%s3292_s0 + $0x2a] sm:$0x3f]  ;;  %v656_v8 = vld [vmem:[#allocation3 + $0x30] sm:$0xff] }
  0x8f   :  { %779 = vst.msk [vmem:[#allocation3 + $0x8] sm:$0x3f] %vm10_vm1, %v715_v58  ;;  %v717_v2 = vadd.f32 %v653_v63, %v589_v61  ;;  %v655_v5 = vld [vmem:[#allocation3 + $0x28] sm:$0x3f]  ;;  %v592_v6 = vld [vmem:[%s3292_s0 + $0x32] sm:$0xff]  ;;  %v658_v14 = vld [vmem:[#allocation3 + $0x40] sm:$0xff] }
  0x90   :  { %780 = vst.msk [vmem:[#allocation3 + $0x10] sm:$0xff] %vm8_vm0, %v716_v62  ;;  %v719_v7 = vadd.f32 %v655_v5, %v591_v4  ;;  %v593_v9 = vld [vmem:[%s3292_s0 + $0x3a] sm:$0x3f]  ;;  %782 = vst.msk [vmem:[#allocation3 + $0x20] sm:$0xff] %vm8_vm0, %v718_v3  ;;  %v720_v11 = vadd.f32 %v656_v8, %v592_v6  ;;  %v594_v13 = vld [vmem:[%s3292_s0 + $0x42] sm:$0xff] }
  0x91   :  { %v657_v10 = vld [vmem:[#allocation3 + $0x38] sm:$0x3f]  ;;  %781 = vst.msk [vmem:[#allocation3 + $0x18] sm:$0x3f] %vm10_vm1, %v717_v2  ;;  %v595_v15 = vld [vmem:[%s3292_s0 + $0x4a] sm:$0x3f]  ;;  %v722_v16 = vadd.f32 %v658_v14, %v594_v13 }
  0x92   :  { %v721_v12 = vadd.f32 %v657_v10, %v593_v9  ;;  %783 = vst.msk [vmem:[#allocation3 + $0x28] sm:$0x3f] %vm10_vm1, %v719_v7  ;;  %v659_v17 = vld [vmem:[#allocation3 + $0x48] sm:$0x3f]  ;;  %v596_v18 = vld [vmem:[%s3292_s0 + $0x52] sm:$0xff]  ;;  %v662_v26 = vld [vmem:[#allocation3 + $0x60] sm:$0xff] }
  0x93   :  { %v660_v19 = vld [vmem:[#allocation3 + $0x50] sm:$0xff]  ;;  %784 = vst.msk [vmem:[#allocation3 + $0x30] sm:$0xff] %vm8_vm0, %v720_v11  ;;  %v723_v20 = vadd.f32 %v659_v17, %v595_v15  ;;  %v597_v22 = vld [vmem:[%s3292_s0 + $0x5a] sm:$0x3f]  ;;  %v598_v24 = vld [vmem:[%s3292_s0 + $0x62] sm:$0xff] }
  0x94   :  { %785 = vst.msk [vmem:[#allocation3 + $0x38] sm:$0x3f] %vm10_vm1, %v721_v12  ;;  %v724_v21 = vadd.f32 %v660_v19, %v596_v18  ;;  %v661_v23 = vld [vmem:[#allocation3 + $0x58] sm:$0x3f]  ;;  %v599_v27 = vld [vmem:[%s3292_s0 + $0x6a] sm:$0x3f]  ;;  %v726_v29 = vadd.f32 %v662_v26, %v598_v24 }
  0x95   :  { %786 = vst.msk [vmem:[#allocation3 + $0x40] sm:$0xff] %vm8_vm0, %v722_v16  ;;  %v725_v25 = vadd.f32 %v661_v23, %v597_v22  ;;  %v663_v28 = vld [vmem:[#allocation3 + $0x68] sm:$0x3f]  ;;  %v600_v31 = vld [vmem:[%s3292_s0 + $0x72] sm:$0xff]  ;;  %v601_v33 = vld [vmem:[%s3292_s0 + $0x7a] sm:$0x3f] }
  0x96   :  { %787 = vst.msk [vmem:[#allocation3 + $0x48] sm:$0x3f] %vm10_vm1, %v723_v20  ;;  %v727_v30 = vadd.f32 %v663_v28, %v599_v27  ;;  %v664_v32 = vld [vmem:[#allocation3 + $0x70] sm:$0xff]  ;;  %v665_v35 = vld [vmem:[#allocation3 + $0x78] sm:$0x3f]  ;;  %v602_v36 = vld [vmem:[%s3292_s0 + $0x82] sm:$0xff] }
  0x97   :  { %788 = vst.msk [vmem:[#allocation3 + $0x50] sm:$0xff] %vm8_vm0, %v724_v21  ;;  %v728_v34 = vadd.f32 %v664_v32, %v600_v31  ;;  %v666_v37 = vld [vmem:[#allocation3 + $0x80] sm:$0xff]  ;;  %790 = vst.msk [vmem:[#allocation3 + $0x60] sm:$0xff] %vm8_vm0, %v726_v29  ;;  %v729_v38 = vadd.f32 %v665_v35, %v601_v33  ;;  %v603_v40 = vld [vmem:[%s3292_s0 + $0x8a] sm:$0x3f] }
  0x98   :  { %789 = vst.msk [vmem:[#allocation3 + $0x58] sm:$0x3f] %vm10_vm1, %v725_v25  ;;  %791 = vst.msk [vmem:[#allocation3 + $0x68] sm:$0x3f] %vm10_vm1, %v727_v30  ;;  %v730_v39 = vadd.f32 %v666_v37, %v602_v36  ;;  %v667_v41 = vld [vmem:[#allocation3 + $0x88] sm:$0x3f] }
  0x99   :  { %v604_v42 = vld [vmem:[%s3292_s0 + $0x92] sm:$0xff]  ;;  %792 = vst.msk [vmem:[#allocation3 + $0x70] sm:$0xff] %vm8_vm0, %v728_v34  ;;  %v731_v43 = vadd.f32 %v667_v41, %v603_v40  ;;  %v605_v45 = vld [vmem:[%s3292_s0 + $0x9a] sm:$0x3f]  ;;  %v606_v49 = vld [vmem:[%s3292_s0 + $0xa2] sm:$0xff] }
  0x9a   :  { %v668_v44 = vld [vmem:[#allocation3 + $0x90] sm:$0xff]  ;;  %v669_v46 = vld [vmem:[#allocation3 + $0x98] sm:$0x3f]  ;;  %793 = vst.msk [vmem:[#allocation3 + $0x78] sm:$0x3f] %vm10_vm1, %v729_v38  ;;  %v670_v50 = vld [vmem:[#allocation3 + $0xa0] sm:$0xff] }
  0x9b   :  { %794 = vst.msk [vmem:[#allocation3 + $0x80] sm:$0xff] %vm8_vm0, %v730_v39  ;;  %v732_v47 = vadd.f32 %v668_v44, %v604_v42  ;;  %v733_v48 = vadd.f32 %v669_v46, %v605_v45  ;;  %v607_v51 = vld [vmem:[%s3292_s0 + $0xaa] sm:$0x3f]  ;;  %v734_v52 = vadd.f32 %v670_v50, %v606_v49  ;;  %v608_v54 = vld [vmem:[%s3292_s0 + $0xb2] sm:$0xff]  ;;  %v609_v58 = vld [vmem:[%s3292_s0 + $0xba] sm:$0x3f] }
  0x9c   :  { %795 = vst.msk [vmem:[#allocation3 + $0x88] sm:$0x3f] %vm10_vm1, %v731_v43  ;;  %v671_v53 = vld [vmem:[#allocation3 + $0xa8] sm:$0x3f]  ;;  %v672_v55 = vld [vmem:[#allocation3 + $0xb0] sm:$0xff]  ;;  %v674_v62 = vld [vmem:[#allocation3 + $0xc0] sm:$0xff] }
  0x9d   :  { %796 = vst.msk [vmem:[#allocation3 + $0x90] sm:$0xff] %vm8_vm0, %v732_v47  ;;  %v735_v56 = vadd.f32 %v671_v53, %v607_v51  ;;  %v736_v57 = vadd.f32 %v672_v55, %v608_v54  ;;  %v673_v59 = vld [vmem:[#allocation3 + $0xb8] sm:$0x3f]  ;;  %v610_v60 = vld [vmem:[%s3292_s0 + $0xc2] sm:$0xff]  ;;  %798 = vst.msk [vmem:[#allocation3 + $0xa0] sm:$0xff] %vm8_vm0, %v734_v52 }
  0x9e   :  { %797 = vst.msk [vmem:[#allocation3 + $0x98] sm:$0x3f] %vm10_vm1, %v733_v48  ;;  %v737_v61 = vadd.f32 %v673_v59, %v609_v58  ;;  %v611_v63 = vld [vmem:[%s3292_s0 + $0xca] sm:$0x3f]  ;;  %v738_v1 = vadd.f32 %v674_v62, %v610_v60  ;;  %v612_v3 = vld [vmem:[%s3292_s0 + $0xd2] sm:$0xff]  ;;  %v618_v8 = vld [vmem:[%s3292_s0 + $0x102] sm:$0xff] }
  0x9f   :  { %v675_v0 = vld [vmem:[#allocation3 + $0xc8] sm:$0x3f]  ;;  %799 = vst.msk [vmem:[#allocation3 + $0xa8] sm:$0x3f] %vm10_vm1, %v735_v56  ;;  %v676_v4 = vld [vmem:[#allocation3 + $0xd0] sm:$0xff]  ;;  %v682_v9 = vld [vmem:[#allocation3 + $0x100] sm:$0xff] }
  0xa0   :  { %800 = vst.msk [vmem:[#allocation3 + $0xb0] sm:$0xff] %vm8_vm0, %v736_v57  ;;  %v739_v2 = vadd.f32 %v675_v0, %v611_v63  ;;  %v613_v5 = vld [vmem:[%s3292_s0 + $0xda] sm:$0x3f]  ;;  %v740_v6 = vadd.f32 %v676_v4, %v612_v3  ;;  %802 = vst.msk [vmem:[#allocation3 + $0xc0] sm:$0xff] %vm8_vm0, %v738_v1  ;;  %v746_v11 = vadd.f32 %v682_v9, %v618_v8  ;;  %v619_v12 = vld [vmem:[%s3292_s0 + $0x10a] sm:$0x3f] }
  0xa1   :  { %801 = vst.msk [vmem:[#allocation3 + $0xb8] sm:$0x3f] %vm10_vm1, %v737_v61  ;;  %v677_v7 = vld [vmem:[#allocation3 + $0xd8] sm:$0x3f]  ;;  %v683_v13 = vld [vmem:[#allocation3 + $0x108] sm:$0x3f] }
  0xa2   :  { %803 = vst.msk [vmem:[#allocation3 + $0xc8] sm:$0x3f] %vm10_vm1, %v739_v2  ;;  %v741_v10 = vadd.f32 %v677_v7, %v613_v5  ;;  %v620_v14 = vld [vmem:[%s3292_s0 + $0x112] sm:$0xff]  ;;  %v747_v15 = vadd.f32 %v683_v13, %v619_v12  ;;  %v621_v17 = vld [vmem:[%s3292_s0 + $0x11a] sm:$0x3f]  ;;  %v622_v21 = vld [vmem:[%s3292_s0 + $0x122] sm:$0xff] }
  0xa3   :  { %804 = vst.msk [vmem:[#allocation3 + $0xd0] sm:$0xff] %vm8_vm0, %v740_v6  ;;  %v684_v16 = vld [vmem:[#allocation3 + $0x110] sm:$0xff]  ;;  %v685_v18 = vld [vmem:[#allocation3 + $0x118] sm:$0x3f]  ;;  %810 = vst.msk [vmem:[#allocation3 + $0x100] sm:$0xff] %vm8_vm0, %v746_v11 }
  0xa4   :  { %805 = vst.msk [vmem:[#allocation3 + $0xd8] sm:$0x3f] %vm10_vm1, %v741_v10  ;;  %v748_v19 = vadd.f32 %v684_v16, %v620_v14  ;;  %v749_v20 = vadd.f32 %v685_v18, %v621_v17  ;;  %v686_v22 = vld [vmem:[#allocation3 + $0x120] sm:$0xff]  ;;  %v623_v23 = vld [vmem:[%s3292_s0 + $0x12a] sm:$0x3f]  ;;  %v624_v26 = vld [vmem:[%s3292_s0 + $0x132] sm:$0xff] }
  0xa5   :  { %811 = vst.msk [vmem:[#allocation3 + $0x108] sm:$0x3f] %vm10_vm1, %v747_v15  ;;  %v750_v24 = vadd.f32 %v686_v22, %v622_v21  ;;  %v687_v25 = vld [vmem:[#allocation3 + $0x128] sm:$0x3f]  ;;  %v688_v27 = vld [vmem:[#allocation3 + $0x130] sm:$0xff]  ;;  %v690_v34 = vld [vmem:[#allocation3 + $0x140] sm:$0xff] }
  0xa6   :  { %812 = vst.msk [vmem:[#allocation3 + $0x110] sm:$0xff] %vm8_vm0, %v748_v19  ;;  %v751_v28 = vadd.f32 %v687_v25, %v623_v23  ;;  %v752_v29 = vadd.f32 %v688_v27, %v624_v26  ;;  %v625_v30 = vld [vmem:[%s3292_s0 + $0x13a] sm:$0x3f]  ;;  %v626_v32 = vld [vmem:[%s3292_s0 + $0x142] sm:$0xff]  ;;  %v627_v35 = vld [vmem:[%s3292_s0 + $0x14a] sm:$0x3f] }
  0xa7   :  { %813 = vst.msk [vmem:[#allocation3 + $0x118] sm:$0x3f] %vm10_vm1, %v749_v20  ;;  %v689_v31 = vld [vmem:[#allocation3 + $0x138] sm:$0x3f]  ;;  %v691_v36 = vld [vmem:[#allocation3 + $0x148] sm:$0x3f]  ;;  %v754_v37 = vadd.f32 %v690_v34, %v626_v32 }
  0xa8   :  { %814 = vst.msk [vmem:[#allocation3 + $0x120] sm:$0xff] %vm8_vm0, %v750_v24  ;;  %v753_v33 = vadd.f32 %v689_v31, %v625_v30  ;;  %816 = vst.msk [vmem:[#allocation3 + $0x130] sm:$0xff] %vm8_vm0, %v752_v29  ;;  %v755_v38 = vadd.f32 %v691_v36, %v627_v35  ;;  %v628_v39 = vld [vmem:[%s3292_s0 + $0x152] sm:$0xff]  ;;  %v629_v41 = vld [vmem:[%s3292_s0 + $0x15a] sm:$0x3f] }
  0xa9   :  { %815 = vst.msk [vmem:[#allocation3 + $0x128] sm:$0x3f] %vm10_vm1, %v751_v28  ;;  %v692_v40 = vld [vmem:[#allocation3 + $0x150] sm:$0xff]  ;;  %v693_v43 = vld [vmem:[#allocation3 + $0x158] sm:$0x3f]  ;;  %v630_v44 = vld [vmem:[%s3292_s0 + $0x162] sm:$0xff] }
  0xaa   :  { %817 = vst.msk [vmem:[#allocation3 + $0x138] sm:$0x3f] %vm10_vm1, %v753_v33  ;;  %v756_v42 = vadd.f32 %v692_v40, %v628_v39  ;;  %v694_v45 = vld [vmem:[#allocation3 + $0x160] sm:$0xff]  ;;  %819 = vst.msk [vmem:[#allocation3 + $0x148] sm:$0x3f] %vm10_vm1, %v755_v38  ;;  %v757_v46 = vadd.f32 %v693_v43, %v629_v41  ;;  %v632_v50 = vld [vmem:[%s3292_s0 + $0x172] sm:$0xff] }
  0xab   :  { %818 = vst.msk [vmem:[#allocation3 + $0x140] sm:$0xff] %vm8_vm0, %v754_v37  ;;  %v758_v47 = vadd.f32 %v694_v45, %v630_v44  ;;  %v631_v48 = vld [vmem:[%s3292_s0 + $0x16a] sm:$0x3f]  ;;  %v696_v52 = vld [vmem:[#allocation3 + $0x170] sm:$0xff]  ;;  %v633_v53 = vld [vmem:[%s3292_s0 + $0x17a] sm:$0x3f] }
  0xac   :  { %v695_v49 = vld [vmem:[#allocation3 + $0x168] sm:$0x3f]  ;;  %820 = vst.msk [vmem:[#allocation3 + $0x150] sm:$0xff] %vm8_vm0, %v756_v42  ;;  %v697_v54 = vld [vmem:[#allocation3 + $0x178] sm:$0x3f]  ;;  %v760_v55 = vadd.f32 %v696_v52, %v632_v50  ;;  %v698_v58 = vld [vmem:[#allocation3 + $0x180] sm:$0xff] }
  0xad   :  { %v759_v51 = vadd.f32 %v695_v49, %v631_v48  ;;  %821 = vst.msk [vmem:[#allocation3 + $0x158] sm:$0x3f] %vm10_vm1, %v757_v46  ;;  %v761_v56 = vadd.f32 %v697_v54, %v633_v53  ;;  %v634_v57 = vld [vmem:[%s3292_s0 + $0x182] sm:$0xff]  ;;  %v635_v59 = vld [vmem:[%s3292_s0 + $0x18a] sm:$0x3f]  ;;  %v636_v62 = vld [vmem:[%s3292_s0 + $0x192] sm:$0xff] }
  0xae   :  { %822 = vst.msk [vmem:[#allocation3 + $0x160] sm:$0xff] %vm8_vm0, %v758_v47  ;;  %v762_v60 = vadd.f32 %v698_v58, %v634_v57  ;;  %v699_v61 = vld [vmem:[#allocation3 + $0x188] sm:$0x3f]  ;;  %v700_v63 = vld [vmem:[#allocation3 + $0x190] sm:$0xff]  ;;  %824 = vst.msk [vmem:[#allocation3 + $0x170] sm:$0xff] %vm8_vm0, %v760_v55 }
  0xaf   :  { %823 = vst.msk [vmem:[#allocation3 + $0x168] sm:$0x3f] %vm10_vm1, %v759_v51  ;;  %825 = vst.msk [vmem:[#allocation3 + $0x178] sm:$0x3f] %vm10_vm1, %v761_v56  ;;  %v763_v0 = vadd.f32 %v699_v61, %v635_v59  ;;  %v764_v1 = vadd.f32 %v700_v63, %v636_v62  ;;  %v637_v2 = vld [vmem:[%s3292_s0 + $0x19a] sm:$0x3f] }
  0xb0   :  { %v701_v3 = vld [vmem:[#allocation3 + $0x198] sm:$0x3f]  ;;  %v638_v4 = vld [vmem:[%s3292_s0 + $0x1a2] sm:$0xff]  ;;  %826 = vst.msk [vmem:[#allocation3 + $0x180] sm:$0xff] %vm8_vm0, %v762_v60  ;;  %v639_v7 = vld [vmem:[%s3292_s0 + $0x1aa] sm:$0x3f] }
  0xb1   :  { %v765_v5 = vadd.f32 %v701_v3, %v637_v2  ;;  %v702_v6 = vld [vmem:[#allocation3 + $0x1a0] sm:$0xff]  ;;  %v703_v8 = vld [vmem:[#allocation3 + $0x1a8] sm:$0x3f]  ;;  %827 = vst.msk [vmem:[#allocation3 + $0x188] sm:$0x3f] %vm10_vm1, %v763_v0  ;;  %v640_v11 = vld [vmem:[%s3292_s0 + $0x1b2] sm:$0xff] }
  0xb2   :  { %828 = vst.msk [vmem:[#allocation3 + $0x190] sm:$0xff] %vm8_vm0, %v764_v1  ;;  %v766_v9 = vadd.f32 %v702_v6, %v638_v4  ;;  %v767_v10 = vadd.f32 %v703_v8, %v639_v7  ;;  %v704_v12 = vld [vmem:[#allocation3 + $0x1b0] sm:$0xff]  ;;  %v641_v13 = vld [vmem:[%s3292_s0 + $0x1ba] sm:$0x3f]  ;;  %v642_v16 = vld [vmem:[%s3292_s0 + $0x1c2] sm:$0xff] }
  0xb3   :  { %829 = vst.msk [vmem:[#allocation3 + $0x198] sm:$0x3f] %vm10_vm1, %v765_v5  ;;  %v768_v14 = vadd.f32 %v704_v12, %v640_v11  ;;  %v705_v15 = vld [vmem:[#allocation3 + $0x1b8] sm:$0x3f]  ;;  %v706_v17 = vld [vmem:[#allocation3 + $0x1c0] sm:$0xff]  ;;  %v708_v24 = vld [vmem:[#allocation3 + $0x1d0] sm:$0xff] }
  0xb4   :  { %830 = vst.msk [vmem:[#allocation3 + $0x1a0] sm:$0xff] %vm8_vm0, %v766_v9  ;;  %v769_v18 = vadd.f32 %v705_v15, %v641_v13  ;;  %v770_v19 = vadd.f32 %v706_v17, %v642_v16  ;;  %v643_v20 = vld [vmem:[%s3292_s0 + $0x1ca] sm:$0x3f]  ;;  %v644_v22 = vld [vmem:[%s3292_s0 + $0x1d2] sm:$0xff]  ;;  %v645_v25 = vld [vmem:[%s3292_s0 + $0x1da] sm:$0x3f] }
  0xb5   :  { %831 = vst.msk [vmem:[#allocation3 + $0x1a8] sm:$0x3f] %vm10_vm1, %v767_v10  ;;  %v707_v21 = vld [vmem:[#allocation3 + $0x1c8] sm:$0x3f]  ;;  %v709_v26 = vld [vmem:[#allocation3 + $0x1d8] sm:$0x3f]  ;;  %v772_v27 = vadd.f32 %v708_v24, %v644_v22 }
  0xb6   :  { %832 = vst.msk [vmem:[#allocation3 + $0x1b0] sm:$0xff] %vm8_vm0, %v768_v14  ;;  %v771_v23 = vadd.f32 %v707_v21, %v643_v20  ;;  %834 = vst.msk [vmem:[#allocation3 + $0x1c0] sm:$0xff] %vm8_vm0, %v770_v19  ;;  %v773_v28 = vadd.f32 %v709_v26, %v645_v25  ;;  %v360_v29 = vld [vmem:[%s3292_s0 + $0xf1] sm:$0xff]  ;;  %v361_v31 = vld [vmem:[%s3292_s0 + $0xf9] sm:$0x3f] }
  0xb7   :  { %833 = vst.msk [vmem:[#allocation3 + $0x1b8] sm:$0x3f] %vm10_vm1, %v769_v18  ;;  %v424_v30 = vld [vmem:[#allocation3 + $0xf0] sm:$0xff]  ;;  %v425_v33 = vld [vmem:[#allocation3 + $0xf8] sm:$0x3f]  ;;  %v614_v40 = vld [vmem:[%s3292_s0 + $0xe2] sm:$0xff] }
  0xb8   :  { %835 = vst.msk [vmem:[#allocation3 + $0x1c8] sm:$0x3f] %vm10_vm1, %v771_v23  ;;  %v488_v32 = vadd.f32 %v424_v30, %v360_v29  ;;  %v392_v34 = vld [vmem:[%s3292_s0 + $0x1f1] sm:$0xff]  ;;  %837 = vst.msk [vmem:[#allocation3 + $0x1d8] sm:$0x3f] %vm10_vm1, %v773_v28  ;;  %v489_v36 = vadd.f32 %v425_v33, %v361_v31  ;;  %v678_v42 = vld [vmem:[#allocation3 + $0xe0] sm:$0xff] }
  0xb9   :  { %v456_v35 = vld [vmem:[#allocation3 + $0x1f0] sm:$0xff]  ;;  %836 = vst.msk [vmem:[#allocation3 + $0x1d0] sm:$0xff] %vm8_vm0, %v772_v27  ;;  %v393_v38 = vld [vmem:[%s3292_s0 + $0x1f9] sm:$0x3f]  ;;  %v615_v43 = vld [vmem:[%s3292_s0 + $0xea] sm:$0x3f]  ;;  %v742_v45 = vadd.f32 %v678_v42, %v614_v40 }
  0xba   :  { %v520_v37 = vadd.f32 %v456_v35, %v392_v34  ;;  %v457_v39 = vld [vmem:[#allocation3 + $0x1f8] sm:$0x3f]  ;;  %552 = vst.msk [vmem:[#allocation3 + $0xf0] sm:$0xff] %vm8_vm0, %v488_v32  ;;  %v679_v44 = vld [vmem:[#allocation3 + $0xe8] sm:$0x3f]  ;;  %v710_v48 = vld [vmem:[#allocation3 + $0x1e0] sm:$0xff] }
  0xbb   :  { %v521_v41 = vadd.f32 %v457_v39, %v393_v38  ;;  %553 = vst.msk [vmem:[#allocation3 + $0xf8] sm:$0x3f] %vm10_vm1, %v489_v36  ;;  %v743_v46 = vadd.f32 %v679_v44, %v615_v43  ;;  %v646_v47 = vld [vmem:[%s3292_s0 + $0x1e2] sm:$0xff]  ;;  %v647_v49 = vld [vmem:[%s3292_s0 + $0x1ea] sm:$0x3f]  ;;  %v900_v58 = vld [vmem:[#allocation2 + $0x10] sm:$0xff] }
  0xbc   :  { %584 = vst.msk [vmem:[#allocation3 + $0x1f0] sm:$0xff] %vm8_vm0, %v520_v37  ;;  %v774_v50 = vadd.f32 %v710_v48, %v646_v47  ;;  %v711_v51 = vld [vmem:[#allocation3 + $0x1e8] sm:$0x3f]  ;;  %v898_v52 = vld [vmem:[#allocation2] sm:$0xff]  ;;  %806 = vst.msk [vmem:[#allocation3 + $0xe0] sm:$0xff] %vm8_vm0, %v742_v45 }
  0xbd   :  { %585 = vst.msk [vmem:[#allocation3 + $0x1f8] sm:$0x3f] %vm10_vm1, %v521_v41  ;;  %v954_v53 = vld [vmem:[#allocation3] sm:$0xff]  ;;  %807 = vst.msk [vmem:[#allocation3 + $0xe8] sm:$0x3f] %vm10_vm1, %v743_v46  ;;  %v775_v54 = vadd.f32 %v711_v51, %v647_v49  ;;  %v2747_v60 = vld [vmem:[#allocation3 + $0x10] sm:$0xff] }
  0xbe   :  { %v1010_v55 = vadd.f32 %v954_v53, %v898_v52  ;;  %v899_v56 = vld [vmem:[#allocation2 + $0x8] sm:$0x3f]  ;;  %838 = vst.msk [vmem:[#allocation3 + $0x1e0] sm:$0xff] %vm8_vm0, %v774_v50  ;;  %v901_v61 = vld [vmem:[#allocation2 + $0x18] sm:$0x3f]  ;;  %v1012_v63 = vadd.f32 %v2747_v60, %v900_v58  ;;  %v902_v1 = vld [vmem:[#allocation2 + $0x20] sm:$0xff] }
  0xbf   :  { %v955_v57 = vld [vmem:[#allocation3 + $0x8] sm:$0x3f]  ;;  %v957_v62 = vld [vmem:[#allocation3 + $0x18] sm:$0x3f]  ;;  %839 = vst.msk [vmem:[#allocation3 + $0x1e8] sm:$0x3f] %vm10_vm1, %v775_v54 }
  0xc0   :  { %v1011_v59 = vadd.f32 %v955_v57, %v899_v56  ;;  %1066 = vst.msk [vmem:[#allocation2] sm:$0xff] %vm8_vm0, %v1010_v55  ;;  %v1013_v0 = vadd.f32 %v957_v62, %v901_v61  ;;  %v2752_v2 = vld [vmem:[#allocation3 + $0x20] sm:$0xff]  ;;  %v903_v3 = vld [vmem:[#allocation2 + $0x28] sm:$0x3f]  ;;  %v904_v6 = vld [vmem:[#allocation2 + $0x30] sm:$0xff] }
  0xc1   :  { %v1014_v4 = vadd.f32 %v2752_v2, %v902_v1  ;;  %v959_v5 = vld [vmem:[#allocation3 + $0x28] sm:$0x3f]  ;;  %v2756_v7 = vld [vmem:[#allocation3 + $0x30] sm:$0xff]  ;;  %1068 = vst.msk [vmem:[#allocation2 + $0x10] sm:$0xff] %vm8_vm0, %v1012_v63  ;;  %v905_v10 = vld [vmem:[#allocation2 + $0x38] sm:$0x3f] }
  0xc2   :  { %1067 = vst.msk [vmem:[#allocation2 + $0x8] sm:$0x3f] %vm10_vm1, %v1011_v59  ;;  %1069 = vst.msk [vmem:[#allocation2 + $0x18] sm:$0x3f] %vm10_vm1, %v1013_v0  ;;  %v1015_v8 = vadd.f32 %v959_v5, %v903_v3  ;;  %v1016_v9 = vadd.f32 %v2756_v7, %v904_v6  ;;  %v961_v11 = vld [vmem:[#allocation3 + $0x38] sm:$0x3f] }
  0xc3   :  { %v906_v12 = vld [vmem:[#allocation2 + $0x40] sm:$0xff]  ;;  %1070 = vst.msk [vmem:[#allocation2 + $0x20] sm:$0xff] %vm8_vm0, %v1014_v4  ;;  %v1017_v13 = vadd.f32 %v961_v11, %v905_v10  ;;  %v907_v15 = vld [vmem:[#allocation2 + $0x48] sm:$0x3f]  ;;  %v908_v19 = vld [vmem:[#allocation2 + $0x50] sm:$0xff] }
  0xc4   :  { %v2762_v14 = vld [vmem:[#allocation3 + $0x40] sm:$0xff]  ;;  %v963_v16 = vld [vmem:[#allocation3 + $0x48] sm:$0x3f]  ;;  %1071 = vst.msk [vmem:[#allocation2 + $0x28] sm:$0x3f] %vm10_vm1, %v1015_v8  ;;  %v2767_v20 = vld [vmem:[#allocation3 + $0x50] sm:$0xff] }
  0xc5   :  { %1072 = vst.msk [vmem:[#allocation2 + $0x30] sm:$0xff] %vm8_vm0, %v1016_v9  ;;  %v1018_v17 = vadd.f32 %v2762_v14, %v906_v12  ;;  %v1019_v18 = vadd.f32 %v963_v16, %v907_v15  ;;  %v909_v21 = vld [vmem:[#allocation2 + $0x58] sm:$0x3f]  ;;  %v1020_v22 = vadd.f32 %v2767_v20, %v908_v19  ;;  %v910_v24 = vld [vmem:[#allocation2 + $0x60] sm:$0xff]  ;;  %v911_v28 = vld [vmem:[#allocation2 + $0x68] sm:$0x3f] }
  0xc6   :  { %1073 = vst.msk [vmem:[#allocation2 + $0x38] sm:$0x3f] %vm10_vm1, %v1017_v13  ;;  %v965_v23 = vld [vmem:[#allocation3 + $0x58] sm:$0x3f]  ;;  %v2771_v25 = vld [vmem:[#allocation3 + $0x60] sm:$0xff]  ;;  %v912_v30 = vld [vmem:[#allocation2 + $0x70] sm:$0xff] }
  0xc7   :  { %1074 = vst.msk [vmem:[#allocation2 + $0x40] sm:$0xff] %vm8_vm0, %v1018_v17  ;;  %v1021_v26 = vadd.f32 %v965_v23, %v909_v21  ;;  %v1022_v27 = vadd.f32 %v2771_v25, %v910_v24  ;;  %v967_v29 = vld [vmem:[#allocation3 + $0x68] sm:$0x3f]  ;;  %1076 = vst.msk [vmem:[#allocation2 + $0x50] sm:$0xff] %vm8_vm0, %v1020_v22  ;;  %v2777_v32 = vld [vmem:[#allocation3 + $0x70] sm:$0xff] }
  0xc8   :  { %1075 = vst.msk [vmem:[#allocation2 + $0x48] sm:$0x3f] %vm10_vm1, %v1019_v18  ;;  %v1023_v31 = vadd.f32 %v967_v29, %v911_v28  ;;  %v913_v33 = vld [vmem:[#allocation2 + $0x78] sm:$0x3f]  ;;  %v1024_v35 = vadd.f32 %v2777_v32, %v912_v30  ;;  %v914_v37 = vld [vmem:[#allocation2 + $0x80] sm:$0xff]  ;;  %v916_v42 = vld [vmem:[#allocation2 + $0x90] sm:$0xff] }
  0xc9   :  { %v969_v34 = vld [vmem:[#allocation3 + $0x78] sm:$0x3f]  ;;  %1077 = vst.msk [vmem:[#allocation2 + $0x58] sm:$0x3f] %vm10_vm1, %v1021_v26  ;;  %v2782_v38 = vld [vmem:[#allocation3 + $0x80] sm:$0xff]  ;;  %v2786_v43 = vld [vmem:[#allocation3 + $0x90] sm:$0xff] }
  0xca   :  { %1078 = vst.msk [vmem:[#allocation2 + $0x60] sm:$0xff] %vm8_vm0, %v1022_v27  ;;  %v1025_v36 = vadd.f32 %v969_v34, %v913_v33  ;;  %v915_v39 = vld [vmem:[#allocation2 + $0x88] sm:$0x3f]  ;;  %v1026_v40 = vadd.f32 %v2782_v38, %v914_v37  ;;  %1080 = vst.msk [vmem:[#allocation2 + $0x70] sm:$0xff] %vm8_vm0, %v1024_v35  ;;  %v1028_v45 = vadd.f32 %v2786_v43, %v916_v42  ;;  %v917_v46 = vld [vmem:[#allocation2 + $0x98] sm:$0x3f] }
  0xcb   :  { %1079 = vst.msk [vmem:[#allocation2 + $0x68] sm:$0x3f] %vm10_vm1, %v1023_v31  ;;  %v971_v41 = vld [vmem:[#allocation3 + $0x88] sm:$0x3f]  ;;  %v973_v47 = vld [vmem:[#allocation3 + $0x98] sm:$0x3f] }
  0xcc   :  { %1081 = vst.msk [vmem:[#allocation2 + $0x78] sm:$0x3f] %vm10_vm1, %v1025_v36  ;;  %v1027_v44 = vadd.f32 %v971_v41, %v915_v39  ;;  %v918_v48 = vld [vmem:[#allocation2 + $0xa0] sm:$0xff]  ;;  %v1029_v49 = vadd.f32 %v973_v47, %v917_v46  ;;  %v919_v51 = vld [vmem:[#allocation2 + $0xa8] sm:$0x3f]  ;;  %v920_v55 = vld [vmem:[#allocation2 + $0xb0] sm:$0xff] }
  0xcd   :  { %1082 = vst.msk [vmem:[#allocation2 + $0x80] sm:$0xff] %vm8_vm0, %v1026_v40  ;;  %v2792_v50 = vld [vmem:[#allocation3 + $0xa0] sm:$0xff]  ;;  %v975_v52 = vld [vmem:[#allocation3 + $0xa8] sm:$0x3f]  ;;  %1084 = vst.msk [vmem:[#allocation2 + $0x90] sm:$0xff] %vm8_vm0, %v1028_v45 }
  0xce   :  { %1083 = vst.msk [vmem:[#allocation2 + $0x88] sm:$0x3f] %vm10_vm1, %v1027_v44  ;;  %v1030_v53 = vadd.f32 %v2792_v50, %v918_v48  ;;  %v1031_v54 = vadd.f32 %v975_v52, %v919_v51  ;;  %v2797_v56 = vld [vmem:[#allocation3 + $0xb0] sm:$0xff]  ;;  %v921_v57 = vld [vmem:[#allocation2 + $0xb8] sm:$0x3f]  ;;  %v922_v61 = vld [vmem:[#allocation2 + $0xc0] sm:$0xff] }
  0xcf   :  { %1085 = vst.msk [vmem:[#allocation2 + $0x98] sm:$0x3f] %vm10_vm1, %v1029_v49  ;;  %v1032_v58 = vadd.f32 %v2797_v56, %v920_v55  ;;  %v977_v59 = vld [vmem:[#allocation3 + $0xb8] sm:$0x3f]  ;;  %v2801_v62 = vld [vmem:[#allocation3 + $0xc0] sm:$0xff]  ;;  %v924_v4 = vld [vmem:[#allocation2 + $0xd0] sm:$0xff] }
  0xd0   :  { %1086 = vst.msk [vmem:[#allocation2 + $0xa0] sm:$0xff] %vm8_vm0, %v1030_v53  ;;  %v1033_v63 = vadd.f32 %v977_v59, %v921_v57  ;;  %v1034_v0 = vadd.f32 %v2801_v62, %v922_v61  ;;  %v923_v1 = vld [vmem:[#allocation2 + $0xc8] sm:$0x3f]  ;;  %v2807_v6 = vld [vmem:[#allocation3 + $0xd0] sm:$0xff]  ;;  %v925_v8 = vld [vmem:[#allocation2 + $0xd8] sm:$0x3f] }
  0xd1   :  { %1087 = vst.msk [vmem:[#allocation2 + $0xa8] sm:$0x3f] %vm10_vm1, %v1031_v54  ;;  %v979_v3 = vld [vmem:[#allocation3 + $0xc8] sm:$0x3f]  ;;  %v981_v9 = vld [vmem:[#allocation3 + $0xd8] sm:$0x3f]  ;;  %v1036_v10 = vadd.f32 %v2807_v6, %v924_v4 }
  0xd2   :  { %1088 = vst.msk [vmem:[#allocation2 + $0xb0] sm:$0xff] %vm8_vm0, %v1032_v58  ;;  %v1035_v5 = vadd.f32 %v979_v3, %v923_v1  ;;  %1090 = vst.msk [vmem:[#allocation2 + $0xc0] sm:$0xff] %vm8_vm0, %v1034_v0  ;;  %v1037_v11 = vadd.f32 %v981_v9, %v925_v8  ;;  %v926_v12 = vld [vmem:[#allocation2 + $0xe0] sm:$0xff]  ;;  %v927_v15 = vld [vmem:[#allocation2 + $0xe8] sm:$0x3f] }
  0xd3   :  { %1089 = vst.msk [vmem:[#allocation2 + $0xb8] sm:$0x3f] %vm10_vm1, %v1033_v63  ;;  %v982_v13 = vld [vmem:[#allocation3 + $0x100] sm:$0xff]  ;;  %v983_v17 = vld [vmem:[#allocation3 + $0x108] sm:$0x3f]  ;;  %v928_v18 = vld [vmem:[#allocation2 + $0xf0] sm:$0xff] }
  0xd4   :  { %1091 = vst.msk [vmem:[#allocation2 + $0xc8] sm:$0x3f] %vm10_vm1, %v1035_v5  ;;  %v1038_v16 = vadd.f32 %v982_v13, %v926_v12  ;;  %v2813_v19 = vld [vmem:[#allocation3 + $0x110] sm:$0xff]  ;;  %1093 = vst.msk [vmem:[#allocation2 + $0xd8] sm:$0x3f] %vm10_vm1, %v1037_v11  ;;  %v1039_v21 = vadd.f32 %v983_v17, %v927_v15  ;;  %v930_v26 = vld [vmem:[#allocation2 + $0x100] sm:$0xff] }
  0xd5   :  { %1092 = vst.msk [vmem:[#allocation2 + $0xd0] sm:$0xff] %vm8_vm0, %v1036_v10  ;;  %v1040_v22 = vadd.f32 %v2813_v19, %v928_v18  ;;  %v929_v23 = vld [vmem:[#allocation2 + $0xf8] sm:$0x3f]  ;;  %v2819_v28 = vld [vmem:[#allocation3 + $0x120] sm:$0xff]  ;;  %v931_v29 = vld [vmem:[#allocation2 + $0x108] sm:$0x3f] }
  0xd6   :  { %v985_v24 = vld [vmem:[#allocation3 + $0x118] sm:$0x3f]  ;;  %1094 = vst.msk [vmem:[#allocation2 + $0xe0] sm:$0xff] %vm8_vm0, %v1038_v16  ;;  %v987_v30 = vld [vmem:[#allocation3 + $0x128] sm:$0x3f]  ;;  %v1042_v31 = vadd.f32 %v2819_v28, %v930_v26  ;;  %v932_v34 = vld [vmem:[#allocation2 + $0x110] sm:$0xff] }
  0xd7   :  { %v1041_v27 = vadd.f32 %v985_v24, %v929_v23  ;;  %1095 = vst.msk [vmem:[#allocation2 + $0xe8] sm:$0x3f] %vm10_vm1, %v1039_v21  ;;  %v1043_v33 = vadd.f32 %v987_v30, %v931_v29  ;;  %v2824_v35 = vld [vmem:[#allocation3 + $0x130] sm:$0xff]  ;;  %v933_v36 = vld [vmem:[#allocation2 + $0x118] sm:$0x3f]  ;;  %v934_v40 = vld [vmem:[#allocation2 + $0x120] sm:$0xff] }
  0xd8   :  { %1096 = vst.msk [vmem:[#allocation2 + $0xf0] sm:$0xff] %vm8_vm0, %v1040_v22  ;;  %v1044_v37 = vadd.f32 %v2824_v35, %v932_v34  ;;  %v989_v39 = vld [vmem:[#allocation3 + $0x138] sm:$0x3f]  ;;  %v2828_v41 = vld [vmem:[#allocation3 + $0x140] sm:$0xff]  ;;  %1098 = vst.msk [vmem:[#allocation2 + $0x100] sm:$0xff] %vm8_vm0, %v1042_v31 }
  0xd9   :  { %1097 = vst.msk [vmem:[#allocation2 + $0xf8] sm:$0x3f] %vm10_vm1, %v1041_v27  ;;  %1099 = vst.msk [vmem:[#allocation2 + $0x108] sm:$0x3f] %vm10_vm1, %v1043_v33  ;;  %v1045_v42 = vadd.f32 %v989_v39, %v933_v36  ;;  %v1046_v44 = vadd.f32 %v2828_v41, %v934_v40  ;;  %v935_v45 = vld [vmem:[#allocation2 + $0x128] sm:$0x3f] }
  0xda   :  { %v991_v46 = vld [vmem:[#allocation3 + $0x148] sm:$0x3f]  ;;  %v936_v47 = vld [vmem:[#allocation2 + $0x130] sm:$0xff]  ;;  %1100 = vst.msk [vmem:[#allocation2 + $0x110] sm:$0xff] %vm8_vm0, %v1044_v37  ;;  %v937_v51 = vld [vmem:[#allocation2 + $0x138] sm:$0x3f] }
  0xdb   :  { %v1047_v48 = vadd.f32 %v991_v46, %v935_v45  ;;  %v2834_v49 = vld [vmem:[#allocation3 + $0x150] sm:$0xff]  ;;  %v993_v52 = vld [vmem:[#allocation3 + $0x158] sm:$0x3f]  ;;  %1101 = vst.msk [vmem:[#allocation2 + $0x118] sm:$0x3f] %vm10_vm1, %v1045_v42  ;;  %v938_v55 = vld [vmem:[#allocation2 + $0x140] sm:$0xff] }
  0xdc   :  { %1102 = vst.msk [vmem:[#allocation2 + $0x120] sm:$0xff] %vm8_vm0, %v1046_v44  ;;  %v1048_v53 = vadd.f32 %v2834_v49, %v936_v47  ;;  %v1049_v54 = vadd.f32 %v993_v52, %v937_v51  ;;  %v2839_v57 = vld [vmem:[#allocation3 + $0x160] sm:$0xff]  ;;  %v939_v58 = vld [vmem:[#allocation2 + $0x148] sm:$0x3f]  ;;  %v940_v63 = vld [vmem:[#allocation2 + $0x150] sm:$0xff] }
  0xdd   :  { %1103 = vst.msk [vmem:[#allocation2 + $0x128] sm:$0x3f] %vm10_vm1, %v1047_v48  ;;  %v1050_v59 = vadd.f32 %v2839_v57, %v938_v55  ;;  %v995_v61 = vld [vmem:[#allocation3 + $0x168] sm:$0x3f]  ;;  %v2843_v0 = vld [vmem:[#allocation3 + $0x170] sm:$0xff]  ;;  %v942_v8 = vld [vmem:[#allocation2 + $0x160] sm:$0xff] }
  0xde   :  { %1104 = vst.msk [vmem:[#allocation2 + $0x130] sm:$0xff] %vm8_vm0, %v1048_v53  ;;  %v1051_v1 = vadd.f32 %v995_v61, %v939_v58  ;;  %v1052_v3 = vadd.f32 %v2843_v0, %v940_v63  ;;  %v941_v4 = vld [vmem:[#allocation2 + $0x158] sm:$0x3f]  ;;  %v2849_v10 = vld [vmem:[#allocation3 + $0x180] sm:$0xff]  ;;  %v943_v11 = vld [vmem:[#allocation2 + $0x168] sm:$0x3f] }
  0xdf   :  { %1105 = vst.msk [vmem:[#allocation2 + $0x138] sm:$0x3f] %vm10_vm1, %v1049_v54  ;;  %v997_v5 = vld [vmem:[#allocation3 + $0x178] sm:$0x3f]  ;;  %v999_v12 = vld [vmem:[#allocation3 + $0x188] sm:$0x3f]  ;;  %v1054_v13 = vadd.f32 %v2849_v10, %v942_v8 }
  0xe0   :  { %1106 = vst.msk [vmem:[#allocation2 + $0x140] sm:$0xff] %vm8_vm0, %v1050_v59  ;;  %v1053_v9 = vadd.f32 %v997_v5, %v941_v4  ;;  %1108 = vst.msk [vmem:[#allocation2 + $0x150] sm:$0xff] %vm8_vm0, %v1052_v3  ;;  %v1055_v15 = vadd.f32 %v999_v12, %v943_v11  ;;  %v944_v16 = vld [vmem:[#allocation2 + $0x170] sm:$0xff]  ;;  %v945_v18 = vld [vmem:[#allocation2 + $0x178] sm:$0x3f] }
  0xe1   :  { %1107 = vst.msk [vmem:[#allocation2 + $0x148] sm:$0x3f] %vm10_vm1, %v1051_v1  ;;  %v2854_v17 = vld [vmem:[#allocation3 + $0x190] sm:$0xff]  ;;  %v1001_v22 = vld [vmem:[#allocation3 + $0x198] sm:$0x3f]  ;;  %v946_v23 = vld [vmem:[#allocation2 + $0x180] sm:$0xff] }
  0xe2   :  { %1109 = vst.msk [vmem:[#allocation2 + $0x158] sm:$0x3f] %vm10_vm1, %v1053_v9  ;;  %v1056_v21 = vadd.f32 %v2854_v17, %v944_v16  ;;  %v2858_v24 = vld [vmem:[#allocation3 + $0x1a0] sm:$0xff]  ;;  %1111 = vst.msk [vmem:[#allocation2 + $0x168] sm:$0x3f] %vm10_vm1, %v1055_v15  ;;  %v1057_v26 = vadd.f32 %v1001_v22, %v945_v18  ;;  %v948_v31 = vld [vmem:[#allocation2 + $0x190] sm:$0xff] }
  0xe3   :  { %1110 = vst.msk [vmem:[#allocation2 + $0x160] sm:$0xff] %vm8_vm0, %v1054_v13  ;;  %v1058_v27 = vadd.f32 %v2858_v24, %v946_v23  ;;  %v947_v29 = vld [vmem:[#allocation2 + $0x188] sm:$0x3f]  ;;  %v2864_v34 = vld [vmem:[#allocation3 + $0x1b0] sm:$0xff]  ;;  %v949_v36 = vld [vmem:[#allocation2 + $0x198] sm:$0x3f] }
  0xe4   :  { %v1003_v30 = vld [vmem:[#allocation3 + $0x1a8] sm:$0x3f]  ;;  %1112 = vst.msk [vmem:[#allocation2 + $0x170] sm:$0xff] %vm8_vm0, %v1056_v21  ;;  %v1005_v37 = vld [vmem:[#allocation3 + $0x1b8] sm:$0x3f]  ;;  %v1060_v39 = vadd.f32 %v2864_v34, %v948_v31  ;;  %v950_v42 = vld [vmem:[#allocation2 + $0x1a0] sm:$0xff] }
  0xe5   :  { %v1059_v33 = vadd.f32 %v1003_v30, %v947_v29  ;;  %1113 = vst.msk [vmem:[#allocation2 + $0x178] sm:$0x3f] %vm10_vm1, %v1057_v26  ;;  %v1061_v40 = vadd.f32 %v1005_v37, %v949_v36  ;;  %v2869_v44 = vld [vmem:[#allocation3 + $0x1c0] sm:$0xff]  ;;  %v951_v45 = vld [vmem:[#allocation2 + $0x1a8] sm:$0x3f]  ;;  %v952_v48 = vld [vmem:[#allocation2 + $0x1b0] sm:$0xff] }
  0xe6   :  { %1114 = vst.msk [vmem:[#allocation2 + $0x180] sm:$0xff] %vm8_vm0, %v1058_v27  ;;  %v1062_v46 = vadd.f32 %v2869_v44, %v950_v42  ;;  %v1007_v47 = vld [vmem:[#allocation3 + $0x1c8] sm:$0x3f]  ;;  %v2873_v51 = vld [vmem:[#allocation3 + $0x1d0] sm:$0xff]  ;;  %1116 = vst.msk [vmem:[#allocation2 + $0x190] sm:$0xff] %vm8_vm0, %v1060_v39 }
  0xe7   :  { %1115 = vst.msk [vmem:[#allocation2 + $0x188] sm:$0x3f] %vm10_vm1, %v1059_v33  ;;  %1117 = vst.msk [vmem:[#allocation2 + $0x198] sm:$0x3f] %vm10_vm1, %v1061_v40  ;;  %v1063_v52 = vadd.f32 %v1007_v47, %v951_v45  ;;  %v1064_v53 = vadd.f32 %v2873_v51, %v952_v48  ;;  %v953_v54 = vld [vmem:[#allocation2 + $0x1b8] sm:$0x3f] }
  0xe8   :  { %v1009_v55 = vld [vmem:[#allocation3 + $0x1d8] sm:$0x3f]  ;;  %1118 = vst.msk [vmem:[#allocation2 + $0x1a0] sm:$0xff] %vm8_vm0, %v1062_v46  ;;  %v680_v61 = vld [vmem:[#allocation3 + $0xf0] sm:$0xff]  ;;  %v1122_v13 = vld [vmem:[#allocation2] sm:$0xff] }
  0xe9   :  { %v616_v58 = vld [vmem:[%s3292_s0 + $0xf2] sm:$0xff]  ;;  %v1065_v59 = vadd.f32 %v1009_v55, %v953_v54  ;;  %v617_v63 = vld [vmem:[%s3292_s0 + $0xfa] sm:$0x3f]  ;;  %1119 = vst.msk [vmem:[#allocation2 + $0x1a8] sm:$0x3f] %vm10_vm1, %v1063_v52  ;;  %v1235_v18 = vadd.f32 %v1122_v13, %v2747_v60  ;;  %v1126_v30 = vld [vmem:[#allocation2 + $0x20] sm:$0xff] }
  0xea   :  { %v681_v1 = vld [vmem:[#allocation3 + $0xf8] sm:$0x3f]  ;;  %1120 = vst.msk [vmem:[#allocation2 + $0x1b0] sm:$0xff] %vm8_vm0, %v1064_v53  ;;  %v744_v3 = vadd.f32 %v680_v61, %v616_v58  ;;  %v712_v8 = vld [vmem:[#allocation3 + $0x1f0] sm:$0xff]  ;;  %v1123_v15 = vld [vmem:[#allocation2 + $0x8] sm:$0x3f]  ;;  %v1239_v36 = vadd.f32 %v1126_v30, %v2756_v7 }
  0xeb   :  { %v745_v4 = vadd.f32 %v681_v1, %v617_v63  ;;  %v648_v5 = vld [vmem:[%s3292_s0 + $0x1f2] sm:$0xff]  ;;  %v649_v9 = vld [vmem:[%s3292_s0 + $0x1fa] sm:$0x3f]  ;;  %1121 = vst.msk [vmem:[#allocation2 + $0x1b8] sm:$0x3f] %vm10_vm1, %v1065_v59  ;;  %v1130_v46 = vld [vmem:[#allocation2 + $0x40] sm:$0xff] }
  0xec   :  { %v776_v11 = vadd.f32 %v712_v8, %v648_v5  ;;  %v713_v12 = vld [vmem:[#allocation3 + $0x1f8] sm:$0x3f]  ;;  %808 = vst.msk [vmem:[#allocation3 + $0xf0] sm:$0xff] %vm8_vm0, %v744_v3  ;;  %v1124_v22 = vld [vmem:[#allocation2 + $0x10] sm:$0xff]  ;;  %v1182_v29 = vld [vmem:[#allocation3 + $0x28] sm:$0x3f]  ;;  %v1243_v52 = vadd.f32 %v1130_v46, %v2767_v20 }
  0xed   :  { %809 = vst.msk [vmem:[#allocation3 + $0xf8] sm:$0x3f] %vm10_vm1, %v745_v4  ;;  %v777_v16 = vadd.f32 %v713_v12, %v649_v9  ;;  %v1180_v21 = vld [vmem:[#allocation3 + $0x18] sm:$0x3f]  ;;  %v1237_v27 = vadd.f32 %v1124_v22, %v2752_v2  ;;  %v1127_v31 = vld [vmem:[#allocation2 + $0x28] sm:$0x3f] }
  0xee   :  { %v1125_v23 = vld [vmem:[#allocation2 + $0x18] sm:$0x3f]  ;;  %840 = vst.msk [vmem:[#allocation3 + $0x1f0] sm:$0xff] %vm8_vm0, %v776_v11  ;;  %v1236_v26 = vadd.f32 %v1180_v21, %v1123_v15  ;;  %1291 = vst.msk [vmem:[#allocation2] sm:$0xff] %vm8_vm0, %v1235_v18  ;;  %v1128_v60 = vld [vmem:[#allocation2 + $0x30] sm:$0xff] }
  0xef   :  { %841 = vst.msk [vmem:[#allocation3 + $0x1f8] sm:$0x3f] %vm10_vm1, %v777_v16  ;;  %v1238_v33 = vadd.f32 %v1182_v29, %v1125_v23  ;;  %v1184_v37 = vld [vmem:[#allocation3 + $0x38] sm:$0x3f]  ;;  %v1241_v42 = vadd.f32 %v1128_v60, %v2762_v14  ;;  %v1186_v45 = vld [vmem:[#allocation3 + $0x48] sm:$0x3f] }
  0xf0   :  { %v1129_v39 = vld [vmem:[#allocation2 + $0x38] sm:$0x3f]  ;;  %1292 = vst.msk [vmem:[#allocation2 + $0x8] sm:$0x3f] %vm10_vm1, %v1236_v26  ;;  %v1240_v40 = vadd.f32 %v1184_v37, %v1127_v31  ;;  %v1131_v47 = vld [vmem:[#allocation2 + $0x48] sm:$0x3f] }
  0xf1   :  { %1293 = vst.msk [vmem:[#allocation2 + $0x10] sm:$0xff] %vm8_vm0, %v1237_v27  ;;  %1295 = vst.msk [vmem:[#allocation2 + $0x20] sm:$0xff] %vm8_vm0, %v1239_v36  ;;  %v1242_v48 = vadd.f32 %v1186_v45, %v1129_v39  ;;  %v1188_v53 = vld [vmem:[#allocation3 + $0x58] sm:$0x3f]  ;;  %v1132_v54 = vld [vmem:[#allocation2 + $0x50] sm:$0xff] }
  0xf2   :  { %1294 = vst.msk [vmem:[#allocation2 + $0x18] sm:$0x3f] %vm10_vm1, %v1238_v33  ;;  %v1133_v55 = vld [vmem:[#allocation2 + $0x58] sm:$0x3f]  ;;  %1296 = vst.msk [vmem:[#allocation2 + $0x28] sm:$0x3f] %vm10_vm1, %v1240_v40  ;;  %v1244_v58 = vadd.f32 %v1188_v53, %v1131_v47  ;;  %v1245_v59 = vadd.f32 %v1132_v54, %v2771_v25 }
  0xf3   :  { %1297 = vst.msk [vmem:[#allocation2 + $0x30] sm:$0xff] %vm8_vm0, %v1241_v42  ;;  %v1190_v61 = vld [vmem:[#allocation3 + $0x68] sm:$0x3f]  ;;  %v1134_v63 = vld [vmem:[#allocation2 + $0x60] sm:$0xff]  ;;  %1299 = vst.msk [vmem:[#allocation2 + $0x40] sm:$0xff] %vm8_vm0, %v1243_v52 }
  0xf4   :  { %v1135_v1 = vld [vmem:[#allocation2 + $0x68] sm:$0x3f]  ;;  %1298 = vst.msk [vmem:[#allocation2 + $0x38] sm:$0x3f] %vm10_vm1, %v1242_v48  ;;  %v1246_v3 = vadd.f32 %v1190_v61, %v1133_v55  ;;  %v1247_v4 = vadd.f32 %v1134_v63, %v2777_v32  ;;  %v1192_v5 = vld [vmem:[#allocation3 + $0x78] sm:$0x3f] }
  0xf5   :  { %v1136_v8 = vld [vmem:[#allocation2 + $0x70] sm:$0xff]  ;;  %v1137_v9 = vld [vmem:[#allocation2 + $0x78] sm:$0x3f]  ;;  %1300 = vst.msk [vmem:[#allocation2 + $0x48] sm:$0x3f] %vm10_vm1, %v1244_v58  ;;  %v1248_v11 = vadd.f32 %v1192_v5, %v1135_v1  ;;  %v1138_v15 = vld [vmem:[#allocation2 + $0x80] sm:$0xff] }
  0xf6   :  { %1301 = vst.msk [vmem:[#allocation2 + $0x50] sm:$0xff] %vm8_vm0, %v1245_v59  ;;  %v1249_v12 = vadd.f32 %v1136_v8, %v2782_v38  ;;  %v1194_v13 = vld [vmem:[#allocation3 + $0x88] sm:$0x3f]  ;;  %1303 = vst.msk [vmem:[#allocation2 + $0x60] sm:$0xff] %vm8_vm0, %v1247_v4  ;;  %v1251_v21 = vadd.f32 %v1138_v15, %v2786_v43  ;;  %v1196_v22 = vld [vmem:[#allocation3 + $0x98] sm:$0x3f] }
  0xf7   :  { %v1139_v16 = vld [vmem:[#allocation2 + $0x88] sm:$0x3f]  ;;  %1302 = vst.msk [vmem:[#allocation2 + $0x58] sm:$0x3f] %vm10_vm1, %v1246_v3  ;;  %v1250_v18 = vadd.f32 %v1194_v13, %v1137_v9  ;;  %v1140_v23 = vld [vmem:[#allocation2 + $0x90] sm:$0xff]  ;;  %v1142_v31 = vld [vmem:[#allocation2 + $0xa0] sm:$0xff] }
  0xf8   :  { %v1141_v26 = vld [vmem:[#allocation2 + $0x98] sm:$0x3f]  ;;  %1304 = vst.msk [vmem:[#allocation2 + $0x68] sm:$0x3f] %vm10_vm1, %v1248_v11  ;;  %v1252_v27 = vadd.f32 %v1196_v22, %v1139_v16  ;;  %v1253_v29 = vadd.f32 %v1140_v23, %v2792_v50  ;;  %v1198_v30 = vld [vmem:[#allocation3 + $0xa8] sm:$0x3f]  ;;  %v1255_v37 = vadd.f32 %v1142_v31, %v2797_v56 }
  0xf9   :  { %1305 = vst.msk [vmem:[#allocation2 + $0x70] sm:$0xff] %vm8_vm0, %v1249_v12  ;;  %v1143_v33 = vld [vmem:[#allocation2 + $0xa8] sm:$0x3f]  ;;  %1307 = vst.msk [vmem:[#allocation2 + $0x80] sm:$0xff] %vm8_vm0, %v1251_v21  ;;  %v1254_v36 = vadd.f32 %v1198_v30, %v1141_v26  ;;  %v1200_v60 = vld [vmem:[#allocation3 + $0xb8] sm:$0x3f] }
  0xfa   :  { %1306 = vst.msk [vmem:[#allocation2 + $0x78] sm:$0x3f] %vm10_vm1, %v1250_v18  ;;  %v1144_v39 = vld [vmem:[#allocation2 + $0xb0] sm:$0xff]  ;;  %v1145_v40 = vld [vmem:[#allocation2 + $0xb8] sm:$0x3f]  ;;  %v1256_v42 = vadd.f32 %v1200_v60, %v1143_v33  ;;  %v1146_v47 = vld [vmem:[#allocation2 + $0xc0] sm:$0xff] }
  0xfb   :  { %1308 = vst.msk [vmem:[#allocation2 + $0x88] sm:$0x3f] %vm10_vm1, %v1252_v27  ;;  %v1257_v45 = vadd.f32 %v1144_v39, %v2801_v62  ;;  %v1202_v46 = vld [vmem:[#allocation3 + $0xc8] sm:$0x3f]  ;;  %1310 = vst.msk [vmem:[#allocation2 + $0x98] sm:$0x3f] %vm10_vm1, %v1254_v36  ;;  %v1259_v53 = vadd.f32 %v1146_v47, %v2807_v6 }
  0xfc   :  { %1309 = vst.msk [vmem:[#allocation2 + $0x90] sm:$0xff] %vm8_vm0, %v1253_v29  ;;  %v1147_v48 = vld [vmem:[#allocation2 + $0xc8] sm:$0x3f]  ;;  %1311 = vst.msk [vmem:[#allocation2 + $0xa0] sm:$0xff] %vm8_vm0, %v1255_v37  ;;  %v1258_v52 = vadd.f32 %v1202_v46, %v1145_v40  ;;  %v1204_v54 = vld [vmem:[#allocation3 + $0xd8] sm:$0x3f] }
  0xfd   :  { %v1148_v55 = vld [vmem:[#allocation2 + $0xd0] sm:$0xff]  ;;  %v2932_v58 = vld [vmem:[#allocation3 + $0xe0] sm:$0xff]  ;;  %1312 = vst.msk [vmem:[#allocation2 + $0xa8] sm:$0x3f] %vm10_vm1, %v1256_v42  ;;  %v1260_v59 = vadd.f32 %v1204_v54, %v1147_v48  ;;  %v1149_v63 = vld [vmem:[#allocation2 + $0xd8] sm:$0x3f] }
  0xfe   :  { %1313 = vst.msk [vmem:[#allocation2 + $0xb0] sm:$0xff] %vm8_vm0, %v1257_v45  ;;  %v1261_v61 = vadd.f32 %v2932_v58, %v1148_v55  ;;  %v1206_v1 = vld [vmem:[#allocation3 + $0xe8] sm:$0x3f]  ;;  %v1150_v3 = vld [vmem:[#allocation2 + $0xe0] sm:$0xff]  ;;  %1315 = vst.msk [vmem:[#allocation2 + $0xc0] sm:$0xff] %vm8_vm0, %v1259_v53 }
  0xff   :  { %1314 = vst.msk [vmem:[#allocation2 + $0xb8] sm:$0x3f] %vm10_vm1, %v1258_v52  ;;  %v1262_v4 = vadd.f32 %v1206_v1, %v1149_v63  ;;  %v1263_v5 = vadd.f32 %v1150_v3, %v2813_v19  ;;  %v1151_v8 = vld [vmem:[#allocation2 + $0xe8] sm:$0x3f]  ;;  %v1208_v9 = vld [vmem:[#allocation3 + $0x118] sm:$0x3f] }
 0x100   :  { %v1152_v11 = vld [vmem:[#allocation2 + $0xf0] sm:$0xff]  ;;  %1316 = vst.msk [vmem:[#allocation2 + $0xc8] sm:$0x3f] %vm10_vm1, %v1260_v59  ;;  %v1264_v12 = vadd.f32 %v1208_v9, %v1151_v8  ;;  %v1153_v15 = vld [vmem:[#allocation2 + $0xf8] sm:$0x3f]  ;;  %v1154_v18 = vld [vmem:[#allocation2 + $0x100] sm:$0xff] }
 0x101   :  { %1317 = vst.msk [vmem:[#allocation2 + $0xd0] sm:$0xff] %vm8_vm0, %v1261_v61  ;;  %v1265_v13 = vadd.f32 %v1152_v11, %v2819_v28  ;;  %v1210_v16 = vld [vmem:[#allocation3 + $0x128] sm:$0x3f]  ;;  %1319 = vst.msk [vmem:[#allocation2 + $0xe0] sm:$0xff] %vm8_vm0, %v1263_v5  ;;  %v1267_v19 = vadd.f32 %v1154_v18, %v2824_v35  ;;  %v1212_v23 = vld [vmem:[#allocation3 + $0x138] sm:$0x3f] }
 0x102   :  { %1318 = vst.msk [vmem:[#allocation2 + $0xd8] sm:$0x3f] %vm10_vm1, %v1262_v4  ;;  %v1266_v21 = vadd.f32 %v1210_v16, %v1153_v15  ;;  %v1155_v22 = vld [vmem:[#allocation2 + $0x108] sm:$0x3f]  ;;  %v1156_v26 = vld [vmem:[#allocation2 + $0x110] sm:$0xff]  ;;  %v1158_v33 = vld [vmem:[#allocation2 + $0x120] sm:$0xff] }
 0x103   :  { %1320 = vst.msk [vmem:[#allocation2 + $0xe8] sm:$0x3f] %vm10_vm1, %v1264_v12  ;;  %v1268_v27 = vadd.f32 %v1212_v23, %v1155_v22  ;;  %v1269_v29 = vadd.f32 %v1156_v26, %v2828_v41  ;;  %v1157_v30 = vld [vmem:[#allocation2 + $0x118] sm:$0x3f]  ;;  %v1214_v31 = vld [vmem:[#allocation3 + $0x148] sm:$0x3f]  ;;  %v1271_v37 = vadd.f32 %v1158_v33, %v2834_v49 }
 0x104   :  { %1321 = vst.msk [vmem:[#allocation2 + $0xf0] sm:$0xff] %vm8_vm0, %v1265_v13  ;;  %1323 = vst.msk [vmem:[#allocation2 + $0x100] sm:$0xff] %vm8_vm0, %v1267_v19  ;;  %v1270_v36 = vadd.f32 %v1214_v31, %v1157_v30  ;;  %v1159_v60 = vld [vmem:[#allocation2 + $0x128] sm:$0x3f]  ;;  %v1216_v39 = vld [vmem:[#allocation3 + $0x158] sm:$0x3f] }
 0x105   :  { %1322 = vst.msk [vmem:[#allocation2 + $0xf8] sm:$0x3f] %vm10_vm1, %v1266_v21  ;;  %v1160_v40 = vld [vmem:[#allocation2 + $0x130] sm:$0xff]  ;;  %1324 = vst.msk [vmem:[#allocation2 + $0x108] sm:$0x3f] %vm10_vm1, %v1268_v27  ;;  %v1272_v42 = vadd.f32 %v1216_v39, %v1159_v60  ;;  %v1162_v48 = vld [vmem:[#allocation2 + $0x140] sm:$0xff] }
 0x106   :  { %1325 = vst.msk [vmem:[#allocation2 + $0x110] sm:$0xff] %vm8_vm0, %v1269_v29  ;;  %v1273_v45 = vadd.f32 %v1160_v40, %v2839_v57  ;;  %v1161_v46 = vld [vmem:[#allocation2 + $0x138] sm:$0x3f]  ;;  %v1218_v47 = vld [vmem:[#allocation3 + $0x168] sm:$0x3f]  ;;  %1327 = vst.msk [vmem:[#allocation2 + $0x120] sm:$0xff] %vm8_vm0, %v1271_v37  ;;  %v1275_v53 = vadd.f32 %v1162_v48, %v2843_v0 }
 0x107   :  { %1326 = vst.msk [vmem:[#allocation2 + $0x118] sm:$0x3f] %vm10_vm1, %v1270_v36  ;;  %v1274_v52 = vadd.f32 %v1218_v47, %v1161_v46  ;;  %v1163_v54 = vld [vmem:[#allocation2 + $0x148] sm:$0x3f]  ;;  %v1220_v55 = vld [vmem:[#allocation3 + $0x178] sm:$0x3f] }
 0x108   :  { %v1164_v59 = vld [vmem:[#allocation2 + $0x150] sm:$0xff]  ;;  %1328 = vst.msk [vmem:[#allocation2 + $0x128] sm:$0x3f] %vm10_vm1, %v1272_v42  ;;  %v1276_v61 = vadd.f32 %v1220_v55, %v1163_v54  ;;  %v1165_v1 = vld [vmem:[#allocation2 + $0x158] sm:$0x3f]  ;;  %v1166_v4 = vld [vmem:[#allocation2 + $0x160] sm:$0xff] }
 0x109   :  { %1329 = vst.msk [vmem:[#allocation2 + $0x130] sm:$0xff] %vm8_vm0, %v1273_v45  ;;  %v1277_v63 = vadd.f32 %v1164_v59, %v2849_v10  ;;  %v1222_v3 = vld [vmem:[#allocation3 + $0x188] sm:$0x3f]  ;;  %1331 = vst.msk [vmem:[#allocation2 + $0x140] sm:$0xff] %vm8_vm0, %v1275_v53  ;;  %v1279_v8 = vadd.f32 %v1166_v4, %v2854_v17  ;;  %v1224_v11 = vld [vmem:[#allocation3 + $0x198] sm:$0x3f] }
 0x10a   :  { %1330 = vst.msk [vmem:[#allocation2 + $0x138] sm:$0x3f] %vm10_vm1, %v1274_v52  ;;  %v1278_v5 = vadd.f32 %v1222_v3, %v1165_v1  ;;  %v1167_v9 = vld [vmem:[#allocation2 + $0x168] sm:$0x3f]  ;;  %v1168_v12 = vld [vmem:[#allocation2 + $0x170] sm:$0xff]  ;;  %v1170_v21 = vld [vmem:[#allocation2 + $0x180] sm:$0xff] }
 0x10b   :  { %1332 = vst.msk [vmem:[#allocation2 + $0x148] sm:$0x3f] %vm10_vm1, %v1276_v61  ;;  %v1280_v13 = vadd.f32 %v1224_v11, %v1167_v9  ;;  %v1281_v15 = vadd.f32 %v1168_v12, %v2858_v24  ;;  %v1169_v16 = vld [vmem:[#allocation2 + $0x178] sm:$0x3f]  ;;  %v1226_v18 = vld [vmem:[#allocation3 + $0x1a8] sm:$0x3f]  ;;  %v1283_v22 = vadd.f32 %v1170_v21, %v2864_v34 }
 0x10c   :  { %1333 = vst.msk [vmem:[#allocation2 + $0x150] sm:$0xff] %vm8_vm0, %v1277_v63  ;;  %1335 = vst.msk [vmem:[#allocation2 + $0x160] sm:$0xff] %vm8_vm0, %v1279_v8  ;;  %v1282_v19 = vadd.f32 %v1226_v18, %v1169_v16  ;;  %v1171_v23 = vld [vmem:[#allocation2 + $0x188] sm:$0x3f]  ;;  %v1228_v26 = vld [vmem:[#allocation3 + $0x1b8] sm:$0x3f] }
 0x10d   :  { %1334 = vst.msk [vmem:[#allocation2 + $0x158] sm:$0x3f] %vm10_vm1, %v1278_v5  ;;  %v1172_v27 = vld [vmem:[#allocation2 + $0x190] sm:$0xff]  ;;  %1336 = vst.msk [vmem:[#allocation2 + $0x168] sm:$0x3f] %vm10_vm1, %v1280_v13  ;;  %v1284_v29 = vadd.f32 %v1228_v26, %v1171_v23  ;;  %v1174_v36 = vld [vmem:[#allocation2 + $0x1a0] sm:$0xff] }
 0x10e   :  { %1337 = vst.msk [vmem:[#allocation2 + $0x170] sm:$0xff] %vm8_vm0, %v1281_v15  ;;  %v1285_v30 = vadd.f32 %v1172_v27, %v2869_v44  ;;  %v1173_v31 = vld [vmem:[#allocation2 + $0x198] sm:$0x3f]  ;;  %v1230_v33 = vld [vmem:[#allocation3 + $0x1c8] sm:$0x3f]  ;;  %1339 = vst.msk [vmem:[#allocation2 + $0x180] sm:$0xff] %vm8_vm0, %v1283_v22  ;;  %v1287_v60 = vadd.f32 %v1174_v36, %v2873_v51 }
 0x10f   :  { %1338 = vst.msk [vmem:[#allocation2 + $0x178] sm:$0x3f] %vm10_vm1, %v1282_v19  ;;  %v1286_v37 = vadd.f32 %v1230_v33, %v1173_v31  ;;  %v1175_v39 = vld [vmem:[#allocation2 + $0x1a8] sm:$0x3f]  ;;  %v1232_v40 = vld [vmem:[#allocation3 + $0x1d8] sm:$0x3f] }
 0x110   :  { %v1176_v42 = vld [vmem:[#allocation2 + $0x1b0] sm:$0xff]  ;;  %1340 = vst.msk [vmem:[#allocation2 + $0x188] sm:$0x3f] %vm10_vm1, %v1284_v29  ;;  %v1288_v45 = vadd.f32 %v1232_v40, %v1175_v39  ;;  %v2978_v46 = vld [vmem:[#allocation3 + $0x1e0] sm:$0xff]  ;;  %v1177_v47 = vld [vmem:[#allocation2 + $0x1b8] sm:$0x3f] }
 0x111   :  { %1341 = vst.msk [vmem:[#allocation2 + $0x190] sm:$0xff] %vm8_vm0, %v1285_v30  ;;  %v1234_v48 = vld [vmem:[#allocation3 + $0x1e8] sm:$0x3f]  ;;  %1343 = vst.msk [vmem:[#allocation2 + $0x1a0] sm:$0xff] %vm8_vm0, %v1287_v60  ;;  %v1289_v52 = vadd.f32 %v2978_v46, %v1176_v42  ;;  %v1347_v54 = vld [vmem:[#allocation2] sm:$0xff] }
 0x112   :  { %1342 = vst.msk [vmem:[#allocation2 + $0x198] sm:$0x3f] %vm10_vm1, %v1286_v37  ;;  %v1290_v53 = vadd.f32 %v1234_v48, %v1177_v47  ;;  %v1348_v55 = vld [vmem:[#allocation2 + $0x8] sm:$0x3f]  ;;  %1344 = vst.msk [vmem:[#allocation2 + $0x1a8] sm:$0x3f] %vm10_vm1, %v1288_v45  ;;  %v1460_v61 = vadd.f32 %v1347_v54, %v2752_v2 }
 0x113   :  { %v1405_v59 = vld [vmem:[#allocation3 + $0x28] sm:$0x3f]  ;;  %v1349_v1 = vld [vmem:[#allocation2 + $0x10] sm:$0xff]  ;;  %v1350_v3 = vld [vmem:[#allocation2 + $0x18] sm:$0x3f]  ;;  %1345 = vst.msk [vmem:[#allocation2 + $0x1b0] sm:$0xff] %vm8_vm0, %v1289_v52 }
 0x114   :  { %v1461_v63 = vadd.f32 %v1405_v59, %v1348_v55  ;;  %v1407_v4 = vld [vmem:[#allocation3 + $0x38] sm:$0x3f]  ;;  %1346 = vst.msk [vmem:[#allocation2 + $0x1b8] sm:$0x3f] %vm10_vm1, %v1290_v53  ;;  %v1462_v5 = vadd.f32 %v1349_v1, %v2756_v7  ;;  %v1351_v9 = vld [vmem:[#allocation2 + $0x20] sm:$0xff]  ;;  %v1353_v15 = vld [vmem:[#allocation2 + $0x30] sm:$0xff] }
 0x115   :  { %v1463_v8 = vadd.f32 %v1407_v4, %v1350_v3  ;;  %v1352_v11 = vld [vmem:[#allocation2 + $0x28] sm:$0x3f]  ;;  %1516 = vst.msk [vmem:[#allocation2] sm:$0xff] %vm8_vm0, %v1460_v61  ;;  %v1464_v2 = vadd.f32 %v1351_v9, %v2762_v14  ;;  %v1354_v16 = vld [vmem:[#allocation2 + $0x38] sm:$0x3f]  ;;  %v1466_v7 = vadd.f32 %v1353_v15, %v2767_v20  ;;  %v1355_v19 = vld [vmem:[#allocation2 + $0x40] sm:$0xff] }
 0x116   :  { %v1409_v12 = vld [vmem:[#allocation3 + $0x48] sm:$0x3f]  ;;  %1517 = vst.msk [vmem:[#allocation2 + $0x8] sm:$0x3f] %vm10_vm1, %v1461_v63  ;;  %v1411_v18 = vld [vmem:[#allocation3 + $0x58] sm:$0x3f]  ;;  %v1468_v14 = vadd.f32 %v1355_v19, %v2771_v25 }
 0x117   :  { %v1465_v13 = vadd.f32 %v1409_v12, %v1352_v11  ;;  %1518 = vst.msk [vmem:[#allocation2 + $0x10] sm:$0xff] %vm8_vm0, %v1462_v5  ;;  %v1467_v21 = vadd.f32 %v1411_v18, %v1354_v16  ;;  %v1356_v22 = vld [vmem:[#allocation2 + $0x48] sm:$0x3f]  ;;  %1520 = vst.msk [vmem:[#allocation2 + $0x20] sm:$0xff] %vm8_vm0, %v1464_v2  ;;  %v1357_v27 = vld [vmem:[#allocation2 + $0x50] sm:$0xff] }
 0x118   :  { %1519 = vst.msk [vmem:[#allocation2 + $0x18] sm:$0x3f] %vm10_vm1, %v1463_v8  ;;  %v1413_v23 = vld [vmem:[#allocation3 + $0x68] sm:$0x3f]  ;;  %v1358_v29 = vld [vmem:[#allocation2 + $0x58] sm:$0x3f]  ;;  %v1470_v20 = vadd.f32 %v1357_v27, %v2777_v32 }
 0x119   :  { %1521 = vst.msk [vmem:[#allocation2 + $0x28] sm:$0x3f] %vm10_vm1, %v1465_v13  ;;  %v1469_v26 = vadd.f32 %v1413_v23, %v1356_v22  ;;  %v1415_v30 = vld [vmem:[#allocation3 + $0x78] sm:$0x3f]  ;;  %1523 = vst.msk [vmem:[#allocation2 + $0x38] sm:$0x3f] %vm10_vm1, %v1467_v21 }
 0x11a   :  { %1522 = vst.msk [vmem:[#allocation2 + $0x30] sm:$0xff] %vm8_vm0, %v1466_v7  ;;  %v1471_v31 = vadd.f32 %v1415_v30, %v1358_v29  ;;  %v1359_v33 = vld [vmem:[#allocation2 + $0x60] sm:$0xff]  ;;  %v1360_v36 = vld [vmem:[#allocation2 + $0x68] sm:$0x3f]  ;;  %1524 = vst.msk [vmem:[#allocation2 + $0x40] sm:$0xff] %vm8_vm0, %v1468_v14 }
 0x11b   :  { %v1417_v37 = vld [vmem:[#allocation3 + $0x88] sm:$0x3f]  ;;  %1525 = vst.msk [vmem:[#allocation2 + $0x48] sm:$0x3f] %vm10_vm1, %v1469_v26  ;;  %v1472_v25 = vadd.f32 %v1359_v33, %v2782_v38  ;;  %v1361_v39 = vld [vmem:[#allocation2 + $0x70] sm:$0xff]  ;;  %v1363_v47 = vld [vmem:[#allocation2 + $0x80] sm:$0xff] }
 0x11c   :  { %v1473_v60 = vadd.f32 %v1417_v37, %v1360_v36  ;;  %v1362_v40 = vld [vmem:[#allocation2 + $0x78] sm:$0x3f]  ;;  %1526 = vst.msk [vmem:[#allocation2 + $0x50] sm:$0xff] %vm8_vm0, %v1470_v20  ;;  %v1474_v32 = vadd.f32 %v1361_v39, %v2786_v43  ;;  %v1364_v48 = vld [vmem:[#allocation2 + $0x88] sm:$0x3f]  ;;  %v1476_v38 = vadd.f32 %v1363_v47, %v2792_v50  ;;  %v1365_v54 = vld [vmem:[#allocation2 + $0x90] sm:$0xff] }
 0x11d   :  { %v1419_v42 = vld [vmem:[#allocation3 + $0x98] sm:$0x3f]  ;;  %1527 = vst.msk [vmem:[#allocation2 + $0x58] sm:$0x3f] %vm10_vm1, %v1471_v31  ;;  %v1421_v52 = vld [vmem:[#allocation3 + $0xa8] sm:$0x3f]  ;;  %v1478_v43 = vadd.f32 %v1365_v54, %v2797_v56 }
 0x11e   :  { %v1475_v45 = vadd.f32 %v1419_v42, %v1362_v40  ;;  %1528 = vst.msk [vmem:[#allocation2 + $0x60] sm:$0xff] %vm8_vm0, %v1472_v25  ;;  %v1477_v53 = vadd.f32 %v1421_v52, %v1364_v48  ;;  %v1366_v55 = vld [vmem:[#allocation2 + $0x98] sm:$0x3f]  ;;  %1530 = vst.msk [vmem:[#allocation2 + $0x70] sm:$0xff] %vm8_vm0, %v1474_v32  ;;  %v1367_v63 = vld [vmem:[#allocation2 + $0xa0] sm:$0xff] }
 0x11f   :  { %1529 = vst.msk [vmem:[#allocation2 + $0x68] sm:$0x3f] %vm10_vm1, %v1473_v60  ;;  %v1423_v59 = vld [vmem:[#allocation3 + $0xb8] sm:$0x3f]  ;;  %v1368_v1 = vld [vmem:[#allocation2 + $0xa8] sm:$0x3f]  ;;  %v1480_v50 = vadd.f32 %v1367_v63, %v2801_v62 }
 0x120   :  { %1531 = vst.msk [vmem:[#allocation2 + $0x78] sm:$0x3f] %vm10_vm1, %v1475_v45  ;;  %v1479_v61 = vadd.f32 %v1423_v59, %v1366_v55  ;;  %v1425_v3 = vld [vmem:[#allocation3 + $0xc8] sm:$0x3f]  ;;  %1533 = vst.msk [vmem:[#allocation2 + $0x88] sm:$0x3f] %vm10_vm1, %v1477_v53 }
 0x121   :  { %1532 = vst.msk [vmem:[#allocation2 + $0x80] sm:$0xff] %vm8_vm0, %v1476_v38  ;;  %v1481_v4 = vadd.f32 %v1425_v3, %v1368_v1  ;;  %v1369_v5 = vld [vmem:[#allocation2 + $0xb0] sm:$0xff]  ;;  %v1370_v8 = vld [vmem:[#allocation2 + $0xb8] sm:$0x3f]  ;;  %1534 = vst.msk [vmem:[#allocation2 + $0x90] sm:$0xff] %vm8_vm0, %v1478_v43 }
 0x122   :  { %v1427_v9 = vld [vmem:[#allocation3 + $0xd8] sm:$0x3f]  ;;  %1535 = vst.msk [vmem:[#allocation2 + $0x98] sm:$0x3f] %vm10_vm1, %v1479_v61  ;;  %v1482_v56 = vadd.f32 %v1369_v5, %v2807_v6  ;;  %v1371_v12 = vld [vmem:[#allocation2 + $0xc0] sm:$0xff]  ;;  %v1373_v16 = vld [vmem:[#allocation2 + $0xd0] sm:$0xff] }
 0x123   :  { %v1483_v11 = vadd.f32 %v1427_v9, %v1370_v8  ;;  %v1372_v2 = vld [vmem:[#allocation2 + $0xc8] sm:$0x3f]  ;;  %1536 = vst.msk [vmem:[#allocation2 + $0xa0] sm:$0xff] %vm8_vm0, %v1480_v50  ;;  %v1484_v62 = vadd.f32 %v1371_v12, %v2932_v58  ;;  %v1430_v18 = vld [vmem:[#allocation3 + $0xf0] sm:$0xff]  ;;  %v1374_v7 = vld [vmem:[#allocation2 + $0xd8] sm:$0x3f] }
 0x124   :  { %v1429_v13 = vld [vmem:[#allocation3 + $0xe8] sm:$0x3f]  ;;  %1537 = vst.msk [vmem:[#allocation2 + $0xa8] sm:$0x3f] %vm10_vm1, %v1481_v4  ;;  %v1486_v21 = vadd.f32 %v1430_v18, %v1373_v16  ;;  %v1431_v6 = vld [vmem:[#allocation3 + $0xf8] sm:$0x3f] }
 0x125   :  { %v1485_v15 = vadd.f32 %v1429_v13, %v1372_v2  ;;  %1538 = vst.msk [vmem:[#allocation2 + $0xb0] sm:$0xff] %vm8_vm0, %v1482_v56  ;;  %v1375_v19 = vld [vmem:[#allocation2 + $0xe0] sm:$0xff]  ;;  %v1376_v22 = vld [vmem:[#allocation2 + $0xe8] sm:$0x3f]  ;;  %1540 = vst.msk [vmem:[#allocation2 + $0xc0] sm:$0xff] %vm8_vm0, %v1484_v62  ;;  %v1487_v23 = vadd.f32 %v1431_v6, %v1374_v7 }
 0x126   :  { %1539 = vst.msk [vmem:[#allocation2 + $0xb8] sm:$0x3f] %vm10_vm1, %v1483_v11  ;;  %v1488_v14 = vadd.f32 %v1375_v19, %v2819_v28  ;;  %v1433_v58 = vld [vmem:[#allocation3 + $0x128] sm:$0x3f]  ;;  %v1377_v26 = vld [vmem:[#allocation2 + $0xf0] sm:$0xff]  ;;  %v1379_v31 = vld [vmem:[#allocation2 + $0x100] sm:$0xff] }
 0x127   :  { %1541 = vst.msk [vmem:[#allocation2 + $0xc8] sm:$0x3f] %vm10_vm1, %v1485_v15  ;;  %v1378_v27 = vld [vmem:[#allocation2 + $0xf8] sm:$0x3f]  ;;  %v1489_v29 = vadd.f32 %v1433_v58, %v1376_v22  ;;  %v1490_v30 = vadd.f32 %v1377_v26, %v2824_v35  ;;  %v1380_v33 = vld [vmem:[#allocation2 + $0x108] sm:$0x3f]  ;;  %v1492_v37 = vadd.f32 %v1379_v31, %v2828_v41 }
 0x128   :  { %1542 = vst.msk [vmem:[#allocation2 + $0xd0] sm:$0xff] %vm8_vm0, %v1486_v21  ;;  %v1435_v20 = vld [vmem:[#allocation3 + $0x138] sm:$0x3f]  ;;  %1544 = vst.msk [vmem:[#allocation2 + $0xe0] sm:$0xff] %vm8_vm0, %v1488_v14  ;;  %v1437_v25 = vld [vmem:[#allocation3 + $0x148] sm:$0x3f] }
 0x129   :  { %1543 = vst.msk [vmem:[#allocation2 + $0xd8] sm:$0x3f] %vm10_vm1, %v1487_v23  ;;  %v1491_v36 = vadd.f32 %v1435_v20, %v1378_v27  ;;  %v1381_v28 = vld [vmem:[#allocation2 + $0x110] sm:$0xff]  ;;  %v1382_v60 = vld [vmem:[#allocation2 + $0x118] sm:$0x3f]  ;;  %v1493_v39 = vadd.f32 %v1437_v25, %v1380_v33  ;;  %v1383_v42 = vld [vmem:[#allocation2 + $0x120] sm:$0xff] }
 0x12a   :  { %1545 = vst.msk [vmem:[#allocation2 + $0xe8] sm:$0x3f] %vm10_vm1, %v1489_v29  ;;  %v1494_v35 = vadd.f32 %v1381_v28, %v2834_v49  ;;  %v1439_v40 = vld [vmem:[#allocation3 + $0x158] sm:$0x3f]  ;;  %v1384_v32 = vld [vmem:[#allocation2 + $0x128] sm:$0x3f]  ;;  %v1496_v41 = vadd.f32 %v1383_v42, %v2839_v57 }
 0x12b   :  { %1546 = vst.msk [vmem:[#allocation2 + $0xf0] sm:$0xff] %vm8_vm0, %v1490_v30  ;;  %1548 = vst.msk [vmem:[#allocation2 + $0x100] sm:$0xff] %vm8_vm0, %v1492_v37  ;;  %v1495_v45 = vadd.f32 %v1439_v40, %v1382_v60  ;;  %v1441_v47 = vld [vmem:[#allocation3 + $0x168] sm:$0x3f]  ;;  %v1385_v48 = vld [vmem:[#allocation2 + $0x130] sm:$0xff] }
 0x12c   :  { %1547 = vst.msk [vmem:[#allocation2 + $0xf8] sm:$0x3f] %vm10_vm1, %v1491_v36  ;;  %v1386_v52 = vld [vmem:[#allocation2 + $0x138] sm:$0x3f]  ;;  %1549 = vst.msk [vmem:[#allocation2 + $0x108] sm:$0x3f] %vm10_vm1, %v1493_v39  ;;  %v1497_v38 = vadd.f32 %v1441_v47, %v1384_v32  ;;  %v1498_v49 = vadd.f32 %v1385_v48, %v2843_v0 }
 0x12d   :  { %1550 = vst.msk [vmem:[#allocation2 + $0x110] sm:$0xff] %vm8_vm0, %v1494_v35  ;;  %v1443_v53 = vld [vmem:[#allocation3 + $0x178] sm:$0x3f]  ;;  %v1387_v54 = vld [vmem:[#allocation2 + $0x140] sm:$0xff]  ;;  %v1388_v55 = vld [vmem:[#allocation2 + $0x148] sm:$0x3f] }
 0x12e   :  { %1551 = vst.msk [vmem:[#allocation2 + $0x118] sm:$0x3f] %vm10_vm1, %v1495_v45  ;;  %v1499_v59 = vadd.f32 %v1443_v53, %v1386_v52  ;;  %v1500_v57 = vadd.f32 %v1387_v54, %v2849_v10  ;;  %v1445_v43 = vld [vmem:[#allocation3 + $0x188] sm:$0x3f]  ;;  %v1389_v61 = vld [vmem:[#allocation2 + $0x150] sm:$0xff]  ;;  %v1391_v50 = vld [vmem:[#allocation2 + $0x160] sm:$0xff] }
 0x12f   :  { %1552 = vst.msk [vmem:[#allocation2 + $0x120] sm:$0xff] %vm8_vm0, %v1496_v41  ;;  %v1390_v63 = vld [vmem:[#allocation2 + $0x158] sm:$0x3f]  ;;  %1554 = vst.msk [vmem:[#allocation2 + $0x130] sm:$0xff] %vm8_vm0, %v1498_v49  ;;  %v1501_v1 = vadd.f32 %v1445_v43, %v1388_v55  ;;  %v1502_v0 = vadd.f32 %v1389_v61, %v2854_v17  ;;  %v1392_v4 = vld [vmem:[#allocation2 + $0x168] sm:$0x3f]  ;;  %v1504_v10 = vadd.f32 %v1391_v50, %v2858_v24 }
 0x130   :  { %1553 = vst.msk [vmem:[#allocation2 + $0x128] sm:$0x3f] %vm10_vm1, %v1497_v38  ;;  %v1447_v3 = vld [vmem:[#allocation3 + $0x198] sm:$0x3f]  ;;  %1555 = vst.msk [vmem:[#allocation2 + $0x138] sm:$0x3f] %vm10_vm1, %v1499_v59 }
 0x131   :  { %1556 = vst.msk [vmem:[#allocation2 + $0x140] sm:$0xff] %vm8_vm0, %v1500_v57  ;;  %v1503_v5 = vadd.f32 %v1447_v3, %v1390_v63  ;;  %v1449_v8 = vld [vmem:[#allocation3 + $0x1a8] sm:$0x3f]  ;;  %v1393_v9 = vld [vmem:[#allocation2 + $0x170] sm:$0xff]  ;;  %v1394_v56 = vld [vmem:[#allocation2 + $0x178] sm:$0x3f] }
 0x132   :  { %1557 = vst.msk [vmem:[#allocation2 + $0x148] sm:$0x3f] %vm10_vm1, %v1501_v1  ;;  %v1505_v11 = vadd.f32 %v1449_v8, %v1392_v4  ;;  %v1506_v17 = vadd.f32 %v1393_v9, %v2864_v34  ;;  %v1451_v12 = vld [vmem:[#allocation3 + $0x1b8] sm:$0x3f]  ;;  %v1395_v2 = vld [vmem:[#allocation2 + $0x180] sm:$0xff]  ;;  %v1397_v16 = vld [vmem:[#allocation2 + $0x190] sm:$0xff] }
 0x133   :  { %1558 = vst.msk [vmem:[#allocation2 + $0x150] sm:$0xff] %vm8_vm0, %v1502_v0  ;;  %v1396_v13 = vld [vmem:[#allocation2 + $0x188] sm:$0x3f]  ;;  %1560 = vst.msk [vmem:[#allocation2 + $0x160] sm:$0xff] %vm8_vm0, %v1504_v10  ;;  %v1507_v62 = vadd.f32 %v1451_v12, %v1394_v56  ;;  %v1508_v24 = vadd.f32 %v1395_v2, %v2869_v44  ;;  %v1398_v18 = vld [vmem:[#allocation2 + $0x198] sm:$0x3f]  ;;  %v1510_v34 = vadd.f32 %v1397_v16, %v2873_v51 }
 0x134   :  { %1559 = vst.msk [vmem:[#allocation2 + $0x158] sm:$0x3f] %vm10_vm1, %v1503_v5  ;;  %v1453_v15 = vld [vmem:[#allocation3 + $0x1c8] sm:$0x3f]  ;;  %1561 = vst.msk [vmem:[#allocation2 + $0x168] sm:$0x3f] %vm10_vm1, %v1505_v11 }
 0x135   :  { %1562 = vst.msk [vmem:[#allocation2 + $0x170] sm:$0xff] %vm8_vm0, %v1506_v17  ;;  %v1509_v7 = vadd.f32 %v1453_v15, %v1396_v13  ;;  %v1455_v21 = vld [vmem:[#allocation3 + $0x1d8] sm:$0x3f]  ;;  %v1399_v6 = vld [vmem:[#allocation2 + $0x1a0] sm:$0xff]  ;;  %v1400_v19 = vld [vmem:[#allocation2 + $0x1a8] sm:$0x3f] }
 0x136   :  { %1563 = vst.msk [vmem:[#allocation2 + $0x178] sm:$0x3f] %vm10_vm1, %v1507_v62  ;;  %v1511_v22 = vadd.f32 %v1455_v21, %v1398_v18  ;;  %v1512_v44 = vadd.f32 %v1399_v6, %v2978_v46  ;;  %v1457_v23 = vld [vmem:[#allocation3 + $0x1e8] sm:$0x3f]  ;;  %v1401_v14 = vld [vmem:[#allocation2 + $0x1b0] sm:$0xff]  ;;  %v1572_v30 = vld [vmem:[#allocation2] sm:$0xff] }
 0x137   :  { %1564 = vst.msk [vmem:[#allocation2 + $0x180] sm:$0xff] %vm8_vm0, %v1508_v24  ;;  %v1458_v58 = vld [vmem:[#allocation3 + $0x1f0] sm:$0xff]  ;;  %1566 = vst.msk [vmem:[#allocation2 + $0x190] sm:$0xff] %vm8_vm0, %v1510_v34  ;;  %v1513_v26 = vadd.f32 %v1457_v23, %v1400_v19  ;;  %v1402_v51 = vld [vmem:[#allocation2 + $0x1b8] sm:$0x3f] }
 0x138   :  { %1565 = vst.msk [vmem:[#allocation2 + $0x188] sm:$0x3f] %vm10_vm1, %v1509_v7  ;;  %v1514_v27 = vadd.f32 %v1458_v58, %v1401_v14  ;;  %v1459_v29 = vld [vmem:[#allocation3 + $0x1f8] sm:$0x3f]  ;;  %1567 = vst.msk [vmem:[#allocation2 + $0x198] sm:$0x3f] %vm10_vm1, %v1511_v22 }
 0x139   :  { %1568 = vst.msk [vmem:[#allocation2 + $0x1a0] sm:$0xff] %vm8_vm0, %v1512_v44  ;;  %v1515_v20 = vadd.f32 %v1459_v29, %v1402_v51  ;;  %v1628_v31 = vmul.f32 0.11111111, %v1572_v30  ;;  %v1573_v33 = vld [vmem:[#allocation2 + $0x8] sm:$0x3f]  ;;  %v1574_v46 = vld [vmem:[#allocation2 + $0x10] sm:$0xff] }
 0x13a   :  { %v1576_v36 = vld [vmem:[#allocation2 + $0x20] sm:$0xff]  ;;  %1569 = vst.msk [vmem:[#allocation2 + $0x1a8] sm:$0x3f] %vm10_vm1, %v1513_v26  ;;  %v1629_v37 = vmul.f32 0.11111111, %v1573_v33  ;;  %v1578_v42 = vld [vmem:[#allocation2 + $0x30] sm:$0xff] }
 0x13b   :  { %1570 = vst.msk [vmem:[#allocation2 + $0x1b0] sm:$0xff] %vm8_vm0, %v1514_v27  ;;  %v1630_v25 = vmul.f32 0.11111111, %v1574_v46  ;;  %v1575_v28 = vld [vmem:[#allocation2 + $0x18] sm:$0x3f]  ;;  %1684 = vst.msk [vmem:[%s3293_s1] sm:$0xff] %vm8_vm0, %v1628_v31 }
 0x13c   :  { %1571 = vst.msk [vmem:[#allocation2 + $0x1b8] sm:$0x3f] %vm10_vm1, %v1515_v20  ;;  %v1631_v60 = vmul.f32 0.11111111, %v1575_v28  ;;  %v1632_v39 = vmul.f32 0.11111111, %v1576_v36 }
 0x13d   :  { %v1577_v35 = vld [vmem:[#allocation2 + $0x28] sm:$0x3f]  ;;  %1685 = vst.msk [vmem:[%s3293_s1 + $0x8] sm:$0x3f] %vm10_vm1, %v1629_v37  ;;  %v1579_v32 = vld [vmem:[#allocation2 + $0x38] sm:$0x3f] }
 0x13e   :  { %1686 = vst.msk [vmem:[%s3293_s1 + $0x10] sm:$0xff] %vm8_vm0, %v1630_v25  ;;  %v1633_v40 = vmul.f32 0.11111111, %v1577_v35  ;;  %v1580_v45 = vld [vmem:[#allocation2 + $0x40] sm:$0xff]  ;;  %1688 = vst.msk [vmem:[%s3293_s1 + $0x20] sm:$0xff] %vm8_vm0, %v1632_v39  ;;  %v1582_v38 = vld [vmem:[#allocation2 + $0x50] sm:$0xff] }
 0x13f   :  { %1687 = vst.msk [vmem:[%s3293_s1 + $0x18] sm:$0x3f] %vm10_vm1, %v1631_v60  ;;  %v1634_v41 = vmul.f32 0.11111111, %v1578_v42  ;;  %v1635_v47 = vmul.f32 0.11111111, %v1579_v32 }
 0x140   :  { %v1636_v48 = vmul.f32 0.11111111, %v1580_v45  ;;  %1689 = vst.msk [vmem:[%s3293_s1 + $0x28] sm:$0x3f] %vm10_vm1, %v1633_v40  ;;  %v1581_v52 = vld [vmem:[#allocation2 + $0x48] sm:$0x3f] }
 0x141   :  { %v1583_v49 = vld [vmem:[#allocation2 + $0x58] sm:$0x3f]  ;;  %1690 = vst.msk [vmem:[%s3293_s1 + $0x30] sm:$0xff] %vm8_vm0, %v1634_v41  ;;  %v1637_v53 = vmul.f32 0.11111111, %v1581_v52  ;;  %v1584_v59 = vld [vmem:[#allocation2 + $0x60] sm:$0xff] }
 0x142   :  { %1691 = vst.msk [vmem:[%s3293_s1 + $0x38] sm:$0x3f] %vm10_vm1, %v1635_v47  ;;  %v1638_v54 = vmul.f32 0.11111111, %v1582_v38  ;;  %v1639_v55 = vmul.f32 0.11111111, %v1583_v49 }
 0x143   :  { %1692 = vst.msk [vmem:[%s3293_s1 + $0x40] sm:$0xff] %vm8_vm0, %v1636_v48  ;;  %v1585_v57 = vld [vmem:[#allocation2 + $0x68] sm:$0x3f]  ;;  %v1586_v43 = vld [vmem:[#allocation2 + $0x70] sm:$0xff]  ;;  %v1640_v61 = vmul.f32 0.11111111, %v1584_v59 }
 0x144   :  { %1693 = vst.msk [vmem:[%s3293_s1 + $0x48] sm:$0x3f] %vm10_vm1, %v1637_v53  ;;  %1695 = vst.msk [vmem:[%s3293_s1 + $0x58] sm:$0x3f] %vm10_vm1, %v1639_v55  ;;  %v1641_v63 = vmul.f32 0.11111111, %v1585_v57 }
 0x145   :  { %1694 = vst.msk [vmem:[%s3293_s1 + $0x50] sm:$0xff] %vm8_vm0, %v1638_v54  ;;  %v1642_v1 = vmul.f32 0.11111111, %v1586_v43  ;;  %v1587_v0 = vld [vmem:[#allocation2 + $0x78] sm:$0x3f]  ;;  %v1588_v3 = vld [vmem:[#allocation2 + $0x80] sm:$0xff] }
 0x146   :  { %v1589_v50 = vld [vmem:[#allocation2 + $0x88] sm:$0x3f]  ;;  %1696 = vst.msk [vmem:[%s3293_s1 + $0x60] sm:$0xff] %vm8_vm0, %v1640_v61  ;;  %v1643_v4 = vmul.f32 0.11111111, %v1587_v0  ;;  %v1590_v8 = vld [vmem:[#allocation2 + $0x90] sm:$0xff] }
 0x147   :  { %1697 = vst.msk [vmem:[%s3293_s1 + $0x68] sm:$0x3f] %vm10_vm1, %v1641_v63  ;;  %v1644_v5 = vmul.f32 0.11111111, %v1588_v3  ;;  %v1645_v10 = vmul.f32 0.11111111, %v1589_v50 }
 0x148   :  { %1698 = vst.msk [vmem:[%s3293_s1 + $0x70] sm:$0xff] %vm8_vm0, %v1642_v1  ;;  %v1591_v9 = vld [vmem:[#allocation2 + $0x98] sm:$0x3f]  ;;  %v1592_v56 = vld [vmem:[#allocation2 + $0xa0] sm:$0xff]  ;;  %v1646_v11 = vmul.f32 0.11111111, %v1590_v8 }
 0x149   :  { %1699 = vst.msk [vmem:[%s3293_s1 + $0x78] sm:$0x3f] %vm10_vm1, %v1643_v4  ;;  %1701 = vst.msk [vmem:[%s3293_s1 + $0x88] sm:$0x3f] %vm10_vm1, %v1645_v10  ;;  %v1647_v17 = vmul.f32 0.11111111, %v1591_v9 }
 0x14a   :  { %1700 = vst.msk [vmem:[%s3293_s1 + $0x80] sm:$0xff] %vm8_vm0, %v1644_v5  ;;  %v1648_v12 = vmul.f32 0.11111111, %v1592_v56  ;;  %v1593_v2 = vld [vmem:[#allocation2 + $0xa8] sm:$0x3f]  ;;  %v1594_v13 = vld [vmem:[#allocation2 + $0xb0] sm:$0xff] }
 0x14b   :  { %v1595_v62 = vld [vmem:[#allocation2 + $0xb8] sm:$0x3f]  ;;  %1702 = vst.msk [vmem:[%s3293_s1 + $0x90] sm:$0xff] %vm8_vm0, %v1646_v11  ;;  %v1649_v24 = vmul.f32 0.11111111, %v1593_v2  ;;  %v1596_v18 = vld [vmem:[#allocation2 + $0xc0] sm:$0xff] }
 0x14c   :  { %1703 = vst.msk [vmem:[%s3293_s1 + $0x98] sm:$0x3f] %vm10_vm1, %v1647_v17  ;;  %v1650_v15 = vmul.f32 0.11111111, %v1594_v13  ;;  %v1651_v16 = vmul.f32 0.11111111, %v1595_v62 }
 0x14d   :  { %1704 = vst.msk [vmem:[%s3293_s1 + $0xa0] sm:$0xff] %vm8_vm0, %v1648_v12  ;;  %v1597_v7 = vld [vmem:[#allocation2 + $0xc8] sm:$0x3f]  ;;  %v1598_v34 = vld [vmem:[#allocation2 + $0xd0] sm:$0xff]  ;;  %v1652_v21 = vmul.f32 0.11111111, %v1596_v18 }
 0x14e   :  { %1705 = vst.msk [vmem:[%s3293_s1 + $0xa8] sm:$0x3f] %vm10_vm1, %v1649_v24  ;;  %1707 = vst.msk [vmem:[%s3293_s1 + $0xb8] sm:$0x3f] %vm10_vm1, %v1651_v16  ;;  %v1653_v6 = vmul.f32 0.11111111, %v1597_v7 }
 0x14f   :  { %1706 = vst.msk [vmem:[%s3293_s1 + $0xb0] sm:$0xff] %vm8_vm0, %v1650_v15  ;;  %v1654_v19 = vmul.f32 0.11111111, %v1598_v34  ;;  %v1599_v22 = vld [vmem:[#allocation2 + $0xd8] sm:$0x3f]  ;;  %v1600_v44 = vld [vmem:[#allocation2 + $0xe0] sm:$0xff] }
 0x150   :  { %v1601_v23 = vld [vmem:[#allocation2 + $0xe8] sm:$0x3f]  ;;  %1708 = vst.msk [vmem:[%s3293_s1 + $0xc0] sm:$0xff] %vm8_vm0, %v1652_v21  ;;  %v1655_v14 = vmul.f32 0.11111111, %v1599_v22  ;;  %v1602_v27 = vld [vmem:[#allocation2 + $0xf0] sm:$0xff] }
 0x151   :  { %1709 = vst.msk [vmem:[%s3293_s1 + $0xc8] sm:$0x3f] %vm10_vm1, %v1653_v6  ;;  %v1656_v58 = vmul.f32 0.11111111, %v1600_v44  ;;  %v1657_v26 = vmul.f32 0.11111111, %v1601_v23 }
 0x152   :  { %1710 = vst.msk [vmem:[%s3293_s1 + $0xd0] sm:$0xff] %vm8_vm0, %v1654_v19  ;;  %v1603_v51 = vld [vmem:[#allocation2 + $0xf8] sm:$0x3f]  ;;  %v1604_v29 = vld [vmem:[#allocation2 + $0x100] sm:$0xff]  ;;  %v1658_v30 = vmul.f32 0.11111111, %v1602_v27 }
 0x153   :  { %1711 = vst.msk [vmem:[%s3293_s1 + $0xd8] sm:$0x3f] %vm10_vm1, %v1655_v14  ;;  %1713 = vst.msk [vmem:[%s3293_s1 + $0xe8] sm:$0x3f] %vm10_vm1, %v1657_v26  ;;  %v1659_v20 = vmul.f32 0.11111111, %v1603_v51 }
 0x154   :  { %1712 = vst.msk [vmem:[%s3293_s1 + $0xe0] sm:$0xff] %vm8_vm0, %v1656_v58  ;;  %v1660_v31 = vmul.f32 0.11111111, %v1604_v29  ;;  %v1605_v33 = vld [vmem:[#allocation2 + $0x108] sm:$0x3f]  ;;  %v1606_v46 = vld [vmem:[#allocation2 + $0x110] sm:$0xff] }
 0x155   :  { %v1607_v36 = vld [vmem:[#allocation2 + $0x118] sm:$0x3f]  ;;  %1714 = vst.msk [vmem:[%s3293_s1 + $0xf0] sm:$0xff] %vm8_vm0, %v1658_v30  ;;  %v1661_v37 = vmul.f32 0.11111111, %v1605_v33  ;;  %v1608_v60 = vld [vmem:[#allocation2 + $0x120] sm:$0xff] }
 0x156   :  { %1715 = vst.msk [vmem:[%s3293_s1 + $0xf8] sm:$0x3f] %vm10_vm1, %v1659_v20  ;;  %v1662_v25 = vmul.f32 0.11111111, %v1606_v46  ;;  %v1663_v28 = vmul.f32 0.11111111, %v1607_v36 }
 0x157   :  { %1716 = vst.msk [vmem:[%s3293_s1 + $0x100] sm:$0xff] %vm8_vm0, %v1660_v31  ;;  %v1609_v39 = vld [vmem:[#allocation2 + $0x128] sm:$0x3f]  ;;  %v1610_v35 = vld [vmem:[#allocation2 + $0x130] sm:$0xff]  ;;  %v1664_v40 = vmul.f32 0.11111111, %v1608_v60 }
 0x158   :  { %1717 = vst.msk [vmem:[%s3293_s1 + $0x108] sm:$0x3f] %vm10_vm1, %v1661_v37  ;;  %1719 = vst.msk [vmem:[%s3293_s1 + $0x118] sm:$0x3f] %vm10_vm1, %v1663_v28  ;;  %v1665_v42 = vmul.f32 0.11111111, %v1609_v39 }
 0x159   :  { %1718 = vst.msk [vmem:[%s3293_s1 + $0x110] sm:$0xff] %vm8_vm0, %v1662_v25  ;;  %v1666_v32 = vmul.f32 0.11111111, %v1610_v35  ;;  %v1611_v45 = vld [vmem:[#allocation2 + $0x138] sm:$0x3f]  ;;  %v1612_v41 = vld [vmem:[#allocation2 + $0x140] sm:$0xff] }
 0x15a   :  { %v1613_v47 = vld [vmem:[#allocation2 + $0x148] sm:$0x3f]  ;;  %1720 = vst.msk [vmem:[%s3293_s1 + $0x120] sm:$0xff] %vm8_vm0, %v1664_v40  ;;  %v1667_v48 = vmul.f32 0.11111111, %v1611_v45  ;;  %v1614_v49 = vld [vmem:[#allocation2 + $0x150] sm:$0xff] }
 0x15b   :  { %1721 = vst.msk [vmem:[%s3293_s1 + $0x128] sm:$0x3f] %vm10_vm1, %v1665_v42  ;;  %v1668_v52 = vmul.f32 0.11111111, %v1612_v41  ;;  %v1669_v38 = vmul.f32 0.11111111, %v1613_v47 }
 0x15c   :  { %1722 = vst.msk [vmem:[%s3293_s1 + $0x130] sm:$0xff] %vm8_vm0, %v1666_v32  ;;  %v1615_v53 = vld [vmem:[#allocation2 + $0x158] sm:$0x3f]  ;;  %v1616_v54 = vld [vmem:[#allocation2 + $0x160] sm:$0xff]  ;;  %v1670_v55 = vmul.f32 0.11111111, %v1614_v49 }
 0x15d   :  { %1723 = vst.msk [vmem:[%s3293_s1 + $0x138] sm:$0x3f] %vm10_vm1, %v1667_v48  ;;  %1725 = vst.msk [vmem:[%s3293_s1 + $0x148] sm:$0x3f] %vm10_vm1, %v1669_v38  ;;  %v1671_v59 = vmul.f32 0.11111111, %v1615_v53 }
 0x15e   :  { %1724 = vst.msk [vmem:[%s3293_s1 + $0x140] sm:$0xff] %vm8_vm0, %v1668_v52  ;;  %v1672_v57 = vmul.f32 0.11111111, %v1616_v54  ;;  %v1617_v43 = vld [vmem:[#allocation2 + $0x168] sm:$0x3f]  ;;  %v1618_v61 = vld [vmem:[#allocation2 + $0x170] sm:$0xff] }
 0x15f   :  { %v1619_v63 = vld [vmem:[#allocation2 + $0x178] sm:$0x3f]  ;;  %1726 = vst.msk [vmem:[%s3293_s1 + $0x150] sm:$0xff] %vm8_vm0, %v1670_v55  ;;  %v1673_v1 = vmul.f32 0.11111111, %v1617_v43  ;;  %v1620_v50 = vld [vmem:[#allocation2 + $0x180] sm:$0xff] }
 0x160   :  { %1727 = vst.msk [vmem:[%s3293_s1 + $0x158] sm:$0x3f] %vm10_vm1, %v1671_v59  ;;  %v1674_v0 = vmul.f32 0.11111111, %v1618_v61  ;;  %v1675_v3 = vmul.f32 0.11111111, %v1619_v63 }
 0x161   :  { %1728 = vst.msk [vmem:[%s3293_s1 + $0x160] sm:$0xff] %vm8_vm0, %v1672_v57  ;;  %v1621_v4 = vld [vmem:[#allocation2 + $0x188] sm:$0x3f]  ;;  %v1622_v5 = vld [vmem:[#allocation2 + $0x190] sm:$0xff]  ;;  %v1676_v10 = vmul.f32 0.11111111, %v1620_v50 }
 0x162   :  { %1729 = vst.msk [vmem:[%s3293_s1 + $0x168] sm:$0x3f] %vm10_vm1, %v1673_v1  ;;  %1731 = vst.msk [vmem:[%s3293_s1 + $0x178] sm:$0x3f] %vm10_vm1, %v1675_v3  ;;  %v1677_v8 = vmul.f32 0.11111111, %v1621_v4 }
 0x163   :  { %1730 = vst.msk [vmem:[%s3293_s1 + $0x170] sm:$0xff] %vm8_vm0, %v1674_v0  ;;  %v1678_v9 = vmul.f32 0.11111111, %v1622_v5  ;;  %v1623_v56 = vld [vmem:[#allocation2 + $0x198] sm:$0x3f]  ;;  %v1624_v11 = vld [vmem:[#allocation2 + $0x1a0] sm:$0xff] }
 0x164   :  { %v1625_v17 = vld [vmem:[#allocation2 + $0x1a8] sm:$0x3f]  ;;  %1732 = vst.msk [vmem:[%s3293_s1 + $0x180] sm:$0xff] %vm8_vm0, %v1676_v10  ;;  %v1679_v12 = vmul.f32 0.11111111, %v1623_v56  ;;  %v1626_v62 = vld [vmem:[#allocation2 + $0x1b0] sm:$0xff] }
 0x165   :  { %1733 = vst.msk [vmem:[%s3293_s1 + $0x188] sm:$0x3f] %vm10_vm1, %v1677_v8  ;;  %v1680_v2 = vmul.f32 0.11111111, %v1624_v11  ;;  %v1681_v13 = vmul.f32 0.11111111, %v1625_v17 }
 0x166   :  { %1734 = vst.msk [vmem:[%s3293_s1 + $0x190] sm:$0xff] %vm8_vm0, %v1678_v9  ;;  %v1627_v24 = vld [vmem:[#allocation2 + $0x1b8] sm:$0x3f]  ;;  %v1682_v15 = vmul.f32 0.11111111, %v1626_v62 }
 0x167   :  { %1735 = vst.msk [vmem:[%s3293_s1 + $0x198] sm:$0x3f] %vm10_vm1, %v1679_v12  ;;  %1737 = vst.msk [vmem:[%s3293_s1 + $0x1a8] sm:$0x3f] %vm10_vm1, %v1681_v13  ;;  %v1683_v16 = vmul.f32 0.11111111, %v1627_v24 }
 0x168   :  { %1736 = vst.msk [vmem:[%s3293_s1 + $0x1a0] sm:$0xff] %vm8_vm0, %v1680_v2  ;;  %1738 = vst.msk [vmem:[%s3293_s1 + $0x1b0] sm:$0xff] %vm8_vm0, %v1682_v15 }
 0x169   :  { %1739 = vst.msk [vmem:[%s3293_s1 + $0x1b8] sm:$0x3f] %vm10_vm1, %v1683_v16 }

</bundles_post_ra>
